<compile_context>
chip_gen: v5e
topology: v5e:2x2
jax: 0.10.0
libtpu: 0.0.40
codegen_flags: <defaults>
</compile_context>

<pallas_src>
import functools

import jax
import jax.numpy as jnp
from jax.experimental import pallas as pl
from jax.experimental.pallas import tpu as pltpu

NEG_SLOPE = 0.01     # default negative_slope of nn.LeakyReLU / F.leaky_relu
_KC = 8              # in-channel chunk streamed per reduction grid step
_EA = 8              # edge-attr features padded 4 -> 8 (sublane-aligned contraction)


def _vmem_limit_bytes():
    # v5e/v6e have 128 MiB VMEM, v7x only 64 MiB per TensorCore -> leave headroom.
    try:
        cap = int(pltpu.get_tpu_info().vmem_capacity_bytes)
    except Exception:
        cap = 64 * 1024 * 1024
    return max(32 * 1024 * 1024, min(cap * 3 // 4, 96 * 1024 * 1024))


VMEM_LIMIT = _vmem_limit_bytes()


def _round_up(a, b):
    return (a + b - 1) // b * b


def _leaky(y):
    return jnp.where(y >= 0, y, NEG_SLOPE * y)


def _sigmoid(y):
    # numerically stable sigmoid (no inf from exp of large |y|)
    z = jnp.exp(-jnp.abs(y))
    return jnp.where(y >= 0, 1.0 / (1.0 + z), z / (1.0 + z))


def _cp(dims):
    return pltpu.CompilerParams(dimension_semantics=dims,
                                vmem_limit_bytes=VMEM_LIMIT)


def _node_tiling(N):
    N8 = _round_up(max(N, 8), 8)
    tn = N8 if N8 <= 512 else 512
    return tn, _round_up(N8, tn)


def _edge_tiling(E):
    # Big edge tiles -> W2-slab reuse (review item #1); >=2 tiles when possible so both
    # v7x TensorCores get work on the "parallel" edge axis.
    E128 = _round_up(max(E, 128), 128)
    if E128 >= 1024:
        te = 512
    elif E128 >= 256 and (E128 // 2) % 128 == 0:
        te = E128 // 2
    else:
        te = E128
    return te, _round_up(E128, te)


# --------------------------------------------------------------------------
# Fused edge-MLP (layer 1 + layer 2) + per-edge message kernel.
# Never materializes wflat = nn(edge_attr) ([E, in*out], up to ~130 MiB).
#
#   h        = leaky(edge_attr @ W1 + b1)                      (once per edge tile)
#   msgs[e,o] = sum_k xs[e,k] * ( h[e] @ W2[:, k*O + o] + b2[k*O + o] )
#
# Grid: (edge tiles, in-channel chunks). Per step, _KC well-shaped [TE,H]@[H,O] MXU
# matmuls produce the weight slab chunk-by-chunk; the per-channel weighting is a VPU
# broadcast multiply-add into a resident f32 accumulator, emitted as bf16 at the end.
# --------------------------------------------------------------------------

def _edge_msg_kernel(ea_ref, xs_ref, w1_ref, b1_ref, w2_ref, b2_ref, o_ref,
                     h_sc, acc_sc, *, kc, out_ch):
    k = pl.program_id(1)

    @pl.when(k == 0)
    def _():
        # Fused edge-MLP layer 1, computed once per edge tile, reused across k chunks.
        h = jnp.dot(ea_ref[...], w1_ref[...],
                    preferred_element_type=jnp.float32) + b1_ref[...]
        h_sc[...] = _leaky(h).astype(h_sc.dtype)
        acc_sc[...] = jnp.zeros_like(acc_sc)

    h16 = h_sc[...]
    xsk = xs_ref[0]                      # [TE, KC] source-feature chunk (contiguous DMA)
    acc = acc_sc[...]
    for kk in range(kc):
        # Edge-MLP layer 2, one [H, out] column slab at a time: keeps the live wslab at
        # [TE, out] (v5e vector-store friendly) while the MXU stays well shaped.
        wk = jnp.dot(h16, w2_ref[:, kk * out_ch:(kk + 1) * out_ch],
                     preferred_element_type=jnp.float32) \
             + b2_ref[:, kk * out_ch:(kk + 1) * out_ch]
        acc = acc + xsk[:, kk:kk + 1] * wk
    acc_sc[...] = acc

    @pl.when(k == pl.num_programs(1) - 1)
    def _():
        o_ref[...] = acc_sc[...].astype(o_ref.dtype)   # bf16 writeback


def pallas_nnconv_messages(edge_attr_pad, xs_src, w1, b1, w2, b2, out_ch, te):
    """edge_attr_pad: [E_pad, 8], xs_src: [E_pad, in_ch] gathered source features,
    w1: [4, H], w2: [H, in_ch*out_ch]  ->  msgs [E_pad, out_ch] bf16."""
    E_pad = edge_attr_pad.shape[0]
    H = w1.shape[1]
    in_ch = xs_src.shape[1]
    K_pad = _round_up(in_ch, _KC)
    nk = K_pad // _KC

    # pad the in-channel axis with zeros (k-major flat layout -> append at the end)
    if K_pad > in_ch:
        w2 = jnp.concatenate(
            [w2, jnp.zeros((H, (K_pad - in_ch) * out_ch), w2.dtype)], axis=1)
        b2 = jnp.concatenate(
            [b2, jnp.zeros(((K_pad - in_ch) * out_ch,), b2.dtype)])
        xs_src = jnp.concatenate(
            [xs_src, jnp.zeros((E_pad, K_pad - in_ch), xs_src.dtype)], axis=1)

    # bf16 on the dominant HBM stream (W2) and the MXU inputs; f32 accumulation.
    w2_16 = w2.astype(jnp.bfloat16)
    b2_2d = b2.astype(jnp.float32).reshape(1, K_pad * out_ch)
    w1p = jnp.zeros((_EA, H), jnp.float32).at[:w1.shape[0]].set(w1.astype(jnp.float32))
    b1_2d = b1.astype(jnp.float32).reshape(1, H)
    # [nk, E_pad, KC]: one contiguous [TE, KC] chunk per (edge tile, k chunk) step.
    xs_chunks = xs_src.astype(jnp.float32).reshape(E_pad, nk, _KC).transpose(1, 0, 2)

    return pl.pallas_call(
        functools.partial(_edge_msg_kernel, kc=_KC, out_ch=out_ch),
        out_shape=jax.ShapeDtypeStruct((E_pad, out_ch), jnp.bfloat16),
        grid_spec=pltpu.PrefetchScalarGridSpec(
            num_scalar_prefetch=0,
            grid=(E_pad // te, nk),
            in_specs=[
                pl.BlockSpec((te, _EA), lambda e, k: (e, 0)),          # edge_attr tile
                pl.BlockSpec((1, te, _KC), lambda e, k: (k, e, 0)),    # xs chunk
                pl.BlockSpec((_EA, H), lambda e, k: (0, 0)),           # W1
                pl.BlockSpec((1, H), lambda e, k: (0, 0)),             # b1
                pl.BlockSpec((H, _KC * out_ch), lambda e, k: (0, k)),  # W2 slab (bf16)
                pl.BlockSpec((1, _KC * out_ch), lambda e, k: (0, k)),  # b2 slab
            ],
            out_specs=pl.BlockSpec((te, out_ch), lambda e, k: (e, 0)),
            scratch_shapes=[pltpu.VMEM((te, H), jnp.bfloat16),         # fused layer-1 h
                            pltpu.VMEM((te, out_ch), jnp.float32)],    # f32 accumulator
        ),
        compiler_params=_cp(("parallel", "arbitrary")),
    )(edge_attr_pad, xs_chunks, w1p, b1_2d, w2_16, b2_2d)


# --------------------------------------------------------------------------
# NNConv combine: out = leaky( (A_bin @ msgs) * (1/deg) + x @ W_root + bias )
# A_bin is the exact {0,1} scatter matrix in bf16; msgs are bf16; accumulation is f32;
# the mean scaling happens in the last-step epilogue BEFORE the root/bias add.
# --------------------------------------------------------------------------

def _combine_kernel(a_ref, m_ref, x_ref, wr_ref, b_ref, invd_ref, o_ref, acc_ref):
    e = pl.program_id(1)

    @pl.when(e == 0)
    def _():
        acc_ref[...] = jnp.zeros_like(acc_ref)

    acc_ref[...] += jnp.dot(a_ref[...], m_ref[...],
                            preferred_element_type=jnp.float32)

    @pl.when(e == pl.num_programs(1) - 1)
    def _():
        root = jnp.dot(x_ref[...], wr_ref[...], preferred_element_type=jnp.float32)
        o_ref[...] = _leaky(acc_ref[...] * invd_ref[...] + root + b_ref[...])


def pallas_nnconv_combine(A_bin, msgs, inv_deg, x, w_root, bias, tn):
    N_pad, E_pad = A_bin.shape
    O = msgs.shape[1]
    K = x.shape[1]
    # biggest reduction tile (multiple of 128, <= 2048) that divides E_pad
    tec = 128
    for cand in range(128, min(E_pad, 2048) + 1, 128):
        if E_pad % cand == 0:
            tec = cand
    return pl.pallas_call(
        _combine_kernel,
        out_shape=jax.ShapeDtypeStruct((N_pad, O), jnp.float32),
        grid_spec=pltpu.PrefetchScalarGridSpec(
            num_scalar_prefetch=0,
            grid=(N_pad // tn, E_pad // tec),
            in_specs=[
                pl.BlockSpec((tn, tec), lambda n, e: (n, e)),    # A (binary, bf16)
                pl.BlockSpec((tec, O), lambda n, e: (e, 0)),     # msgs (bf16)
                pl.BlockSpec((tn, K), lambda n, e: (n, 0)),      # x
                pl.BlockSpec((K, O), lambda n, e: (0, 0)),       # W_root
                pl.BlockSpec((1, O), lambda n, e: (0, 0)),       # bias
                pl.BlockSpec((tn, 1), lambda n, e: (n, 0)),      # 1/deg
            ],
            out_specs=pl.BlockSpec((tn, O), lambda n, e: (n, 0)),
            scratch_shapes=[pltpu.VMEM((tn, O), jnp.float32)],
        ),
        compiler_params=_cp(("parallel", "arbitrary")),
    )(A_bin, msgs, x.astype(jnp.float32), w_root.astype(jnp.float32),
      bias.reshape(1, O).astype(jnp.float32), inv_deg.astype(jnp.float32))


# --------------------------------------------------------------------------
# Readout + MLP head, tiled over the node axis:
#   pooled = (P_bin @ d3) * (1/|g|)    (f32 scratch accumulator over N tiles)
#   out    = sigmoid(fc3(leaky(fc2(leaky(fc1(pooled))))))   (last-step epilogue)
# --------------------------------------------------------------------------

def _head_kernel(p_ref, d_ref, invc_ref, w1_ref, b1_ref, w2_ref, b2_ref,
                 w3_ref, b3_ref, o_ref, pooled_sc):
    n = pl.program_id(0)

    @pl.when(n == 0)
    def _():
        pooled_sc[...] = jnp.zeros_like(pooled_sc)

    pooled_sc[...] += jnp.dot(p_ref[...], d_ref[...],
                              preferred_element_type=jnp.float32)

    @pl.when(n == pl.num_programs(0) - 1)
    def _():
        pooled = pooled_sc[...] * invc_ref[...]
        h = _leaky(jnp.dot(pooled, w1_ref[...],
                           preferred_element_type=jnp.float32) + b1_ref[...])
        h = _leaky(jnp.dot(h, w2_ref[...],
                           preferred_element_type=jnp.float32) + b2_ref[...])
        y = jnp.dot(h, w3_ref[...], preferred_element_type=jnp.float32) + b3_ref[...]
        o_ref[...] = _sigmoid(y)


def pallas_readout_head(P, d3, inv_cnt, w1, b1, w2, b2, w3, b3, tn):
    B_pad, N_pad = P.shape
    D = d3.shape[1]
    H1 = w1.shape[1]
    H2 = w2.shape[1]
    return pl.pallas_call(
        _head_kernel,
        out_shape=jax.ShapeDtypeStruct((B_pad, 1), jnp.float32),
        grid_spec=pltpu.PrefetchScalarGridSpec(
            num_scalar_prefetch=0,
            grid=(N_pad // tn,),
            in_specs=[
                pl.BlockSpec((B_pad, tn), lambda n: (0, n)),
                pl.BlockSpec((tn, D), lambda n: (n, 0)),
                pl.BlockSpec((B_pad, 1), lambda n: (0, 0)),
                pl.BlockSpec((D, H1), lambda n: (0, 0)),
                pl.BlockSpec((1, H1), lambda n: (0, 0)),
                pl.BlockSpec((H1, H2), lambda n: (0, 0)),
                pl.BlockSpec((1, H2), lambda n: (0, 0)),
                pl.BlockSpec((H2, 1), lambda n: (0, 0)),
                pl.BlockSpec((1, 1), lambda n: (0, 0)),
            ],
            out_specs=pl.BlockSpec((B_pad, 1), lambda n: (0, 0)),
            scratch_shapes=[pltpu.VMEM((B_pad, D), jnp.float32)],
        ),
        compiler_params=_cp(("arbitrary",)),
    )(P.astype(jnp.float32), d3.astype(jnp.float32), inv_cnt.astype(jnp.float32),
      w1.astype(jnp.float32), b1.reshape(1, -1).astype(jnp.float32),
      w2.astype(jnp.float32), b2.reshape(1, -1).astype(jnp.float32),
      w3.astype(jnp.float32), b3.reshape(1, -1).astype(jnp.float32))


# --------------------------------------------------------------------------
# Model glue
# --------------------------------------------------------------------------

def reward_net_forward(params, x, edge_index, edge_attr, batch, num_graphs):
    x = x.astype(jnp.float32)
    N, F = x.shape
    E = edge_index.shape[1]

    tn, N_pad = _node_tiling(N)
    te, E_pad = _edge_tiling(E)
    B_pad = _round_up(max(num_graphs, 8), 8)

    src = edge_index[0]
    tgt = edge_index[1]

    x_pad = jnp.zeros((N_pad, F), jnp.float32).at[:N].set(x)
    # edge-attr padded to 8 feature lanes + E_pad rows (padded rows contribute zero msgs)
    ea_pad = jnp.zeros((E_pad, _EA), jnp.float32).at[:E, :4].set(
        edge_attr.astype(jnp.float32))

    # mean aggregation: exact binary scatter matrix in bf16; 1/deg applied in-kernel.
    # TODO(synk): replace the dense A / P scatter matrices with a scalar-prefetch
    # (index-driven) segment-sum formulation for very large graphs.
    deg = jnp.zeros((N_pad,), jnp.float32).at[tgt].add(1.0)
    A_bin = jnp.zeros((N_pad, E_pad), jnp.float32).at[
        tgt, jnp.arange(E)].set(1.0).astype(jnp.bfloat16)
    inv_deg = (1.0 / jnp.maximum(deg, 1.0)).reshape(N_pad, 1)

    # scatter_mean over batch: binary pooling matrix + 1/|g| applied in-kernel.
    cnt = jnp.zeros((B_pad,), jnp.float32).at[batch].add(1.0)
    P = jnp.zeros((B_pad, N_pad), jnp.float32).at[batch, jnp.arange(N)].set(1.0)
    inv_cnt = (1.0 / jnp.maximum(cnt, 1.0)).reshape(B_pad, 1)

    def gather_src(feat):
        # TODO(synk): the data-dependent per-edge source gather has no clean BlockSpec
        # expression; plain-JAX gather (cheap relative to the conv kernels).
        return jnp.zeros((E_pad, feat.shape[1]), jnp.float32).at[:E].set(feat[src])

    def conv(x_nodes, p, out_ch):
        msgs = pallas_nnconv_messages(ea_pad, gather_src(x_nodes),
                                      p["nn_w1"], p["nn_b1"],
                                      p["nn_w2"], p["nn_b2"], out_ch, te)
        return pallas_nnconv_combine(A_bin, msgs, inv_deg, x_nodes,
                                     p["root_w"], p["bias"], tn)

    d1 = jnp.concatenate([conv(x_pad, params["conv1"], 256), x_pad], axis=-1)
    d2 = jnp.concatenate([conv(d1, params["conv2"], 256), x_pad], axis=-1)
    d3 = jnp.concatenate([conv(d2, params["conv3"], 512), x_pad], axis=-1)

    out = pallas_readout_head(P, d3, inv_cnt,
                              params["fc1_w"], params["fc1_b"],
                              params["fc2_w"], params["fc2_b"],
                              params["fc3_w"], params["fc3_b"], tn)
    return out[:num_graphs]                      # [num_graphs, 1], sigmoid'd


# --------------------------------------------------------------------------
# Deterministic parameter init (PyTorch-Linear-like uniform(-1/sqrt(fan_in), ...))
# --------------------------------------------------------------------------

def _init_linear(key, fan_in, fan_out):
    kw, kb = jax.random.split(key)
    bound = 1.0 / (fan_in ** 0.5)
    w = jax.random.uniform(kw, (fan_in, fan_out), jnp.float32, -bound, bound)
    b = jax.random.uniform(kb, (fan_out,), jnp.float32, -bound, bound)
    return w, b


def init_params(key, node_feature_dims):
    F = node_feature_dims
    keys = jax.random.split(key, 12)

    def conv_params(k0, k1, k2, hidden, in_ch, out_ch):
        w1, b1 = _init_linear(k0, 4, hidden)
        w2, b2 = _init_linear(k1, hidden, in_ch * out_ch)
        rw, rb = _init_linear(k2, in_ch, out_ch)
        return {"nn_w1": w1, "nn_b1": b1, "nn_w2": w2, "nn_b2": b2,
                "root_w": rw, "bias": rb}

    p = {}
    p["conv1"] = conv_params(keys[0], keys[1], keys[2], 256, F, 256)
    p["conv2"] = conv_params(keys[3], keys[4], keys[5], 512, 256 + F, 256)
    p["conv3"] = conv_params(keys[6], keys[7], keys[8], 512, 256 + F, 512)
    p["fc1_w"], p["fc1_b"] = _init_linear(keys[9], 512 + F, 768)
    p["fc2_w"], p["fc2_b"] = _init_linear(keys[10], 768, 1024)
    p["fc3_w"], p["fc3_b"] = _init_linear(keys[11], 1024, 1)
    return p


if __name__ == "__main__":
    key = jax.random.PRNGKey(0)
    k_param, k_x, k_e = jax.random.split(key, 3)

    node_feature_dims = 4            # args.node_feature_dims
    params = init_params(k_param, node_feature_dims)

    # small graph batch: 8 nodes, 10 directed edges, 2 graphs of 4 nodes each
    N, E, B = 8, 10, 2
    x = jax.random.normal(k_x, (N, node_feature_dims), jnp.float32)
    edge_index = jnp.array([[0, 1, 1, 2, 3, 4, 5, 6, 7, 5],
                            [1, 0, 2, 3, 0, 5, 6, 7, 4, 4]], dtype=jnp.int32)
    edge_attr = jax.random.normal(k_e, (E, 4), jnp.float32)
    batch = jnp.array([0, 0, 0, 0, 1, 1, 1, 1], dtype=jnp.int32)

    out = reward_net_forward(params, x, edge_index, edge_attr, batch, B)
    out = jax.block_until_ready(out)
    assert out.shape == (B, 1), out.shape
    assert bool(jnp.all(jnp.isfinite(out)))
    assert bool(jnp.all((out >= 0.0) & (out <= 1.0)))   # sigmoid output range
    print("KERNEL_OK")
</pallas_src>

<mosaic_0001>
module attributes {stable_mosaic.version = 11 : i64} {
  func.func @_edge_msg_kernel(%arg0: i32, %arg1: i32, %arg2: memref<128x8xf32, #tpu.memory_space<vmem>>, %arg3: memref<1x128x8xf32, #tpu.memory_space<vmem>>, %arg4: memref<8x256xf32, #tpu.memory_space<vmem>>, %arg5: memref<1x256xf32, #tpu.memory_space<vmem>>, %arg6: memref<256x2048xbf16, #tpu.memory_space<vmem>>, %arg7: memref<1x2048xf32, #tpu.memory_space<vmem>>, %arg8: memref<128x256xbf16, #tpu.memory_space<vmem>>, %arg9: memref<128x256xbf16, #tpu.memory_space<vmem>>, %arg10: memref<128x256xf32, #tpu.memory_space<vmem>>) attributes {dimension_semantics = [#tpu.dimension_semantics<parallel>, #tpu.dimension_semantics<arbitrary>], iteration_bounds = array<i64: 1, 1>, scalar_prefetch = 0 : i64, scratch_operands = 2 : i64, tpu.core_type = #tpu.core_type<tc>, window_params = [{transform_indices = @transform_0, window_bounds = array<i64: 128, 8>}, {transform_indices = @transform_1, window_bounds = array<i64: 1, 128, 8>}, {pipeline_mode = #tpu.pipeline_mode<synchronous>, transform_indices = @transform_2, window_bounds = array<i64: 8, 256>}, {pipeline_mode = #tpu.pipeline_mode<synchronous>, transform_indices = @transform_3, window_bounds = array<i64: 1, 256>}, {transform_indices = @transform_4, window_bounds = array<i64: 256, 2048>}, {transform_indices = @transform_5, window_bounds = array<i64: 1, 2048>}, {transform_indices = @transform_6, window_bounds = array<i64: 128, 256>}]} {
    %c0_i32 = arith.constant 0 : i32
    %0 = arith.cmpi eq, %arg1, %c0_i32 : i32
    %1 = arith.extui %0 : i1 to i32
    %c0_i32_0 = arith.constant 0 : i32
    %2 = arith.cmpi ne, %1, %c0_i32_0 : i32
    scf.if %2 {
      %c0_43 = arith.constant 0 : index
      %c0_44 = arith.constant 0 : index
      %83 = vector.load %arg2[%c0_43, %c0_44] : memref<128x8xf32, #tpu.memory_space<vmem>>, vector<128x8xf32>
      %c0_45 = arith.constant 0 : index
      %c0_46 = arith.constant 0 : index
      %84 = vector.load %arg4[%c0_45, %c0_46] : memref<8x256xf32, #tpu.memory_space<vmem>>, vector<8x256xf32>
      %cst_47 = arith.constant dense<0.000000e+00> : vector<128x256xf32>
      %85 = tpu.matmul %83, %84, %cst_47 {dimension_numbers = #tpu.dot_dimension_numbers<[1], [0], [0], [1], [0, 0, 1, 1], [], []>} : vector<128x8xf32>, vector<8x256xf32>, vector<128x256xf32> -> vector<128x256xf32>
      %c0_48 = arith.constant 0 : index
      %c0_49 = arith.constant 0 : index
      %86 = vector.load %arg5[%c0_48, %c0_49] : memref<1x256xf32, #tpu.memory_space<vmem>>, vector<1x256xf32>
      %87 = vector.broadcast %86 : vector<1x256xf32> to vector<128x256xf32>
      %88 = arith.addf %85, %87 : vector<128x256xf32>
      %cst_50 = arith.constant 0.000000e+00 : f32
      %89 = vector.broadcast %cst_50 : f32 to vector<128x256xf32>
      %90 = arith.cmpf oge, %88, %89 : vector<128x256xf32>
      %cst_51 = arith.constant 0.00999999977 : f32
      %91 = vector.broadcast %cst_51 : f32 to vector<128x256xf32>
      %92 = arith.mulf %91, %88 : vector<128x256xf32>
      %93 = arith.select %90, %88, %92 : vector<128x256xi1>, vector<128x256xf32>
      %94 = arith.truncf %93 : vector<128x256xf32> to vector<128x256xbf16>
      %c0_52 = arith.constant 0 : index
      %c0_53 = arith.constant 0 : index
      %95 = vector.load %arg9[%c0_52, %c0_53] : memref<128x256xbf16, #tpu.memory_space<vmem>>, vector<128x256xbf16>
      tpu.vector_store %arg9[%c0_52, %c0_53], %94 {strides = array<i32>} : memref<128x256xbf16, #tpu.memory_space<vmem>>, vector<128x256xbf16>,
      %cst_54 = arith.constant 0.000000e+00 : f32
      %96 = vector.broadcast %cst_54 : f32 to vector<128x256xf32>
      %c0_55 = arith.constant 0 : index
      %c0_56 = arith.constant 0 : index
      %97 = vector.load %arg10[%c0_55, %c0_56] : memref<128x256xf32, #tpu.memory_space<vmem>>, vector<128x256xf32>
      tpu.vector_store %arg10[%c0_55, %c0_56], %96 {strides = array<i32>} : memref<128x256xf32, #tpu.memory_space<vmem>>, vector<128x256xf32>,
    } else {
    }
    %c0 = arith.constant 0 : index
    %c0_1 = arith.constant 0 : index
    %3 = vector.load %arg9[%c0, %c0_1] : memref<128x256xbf16, #tpu.memory_space<vmem>>, vector<128x256xbf16>
    %c0_2 = arith.constant 0 : index
    %c0_3 = arith.constant 0 : index
    %c0_4 = arith.constant 0 : index
    %4 = vector.load %arg3[%c0_2, %c0_3, %c0_4] : memref<1x128x8xf32, #tpu.memory_space<vmem>>, vector<1x128x8xf32>
    %5 = vector.shape_cast %4 : vector<1x128x8xf32> to vector<128x8xf32>
    %c0_5 = arith.constant 0 : index
    %c0_6 = arith.constant 0 : index
    %6 = vector.load %arg10[%c0_5, %c0_6] : memref<128x256xf32, #tpu.memory_space<vmem>>, vector<128x256xf32>
    %c0_7 = arith.constant 0 : index
    %c0_8 = arith.constant 0 : index
    %7 = vector.load %arg6[%c0_7, %c0_8] : memref<256x2048xbf16, #tpu.memory_space<vmem>>, vector<256x256xbf16>
    %cst = arith.constant dense<0.000000e+00> : vector<128x256xf32>
    %8 = tpu.matmul %3, %7, %cst {dimension_numbers = #tpu.dot_dimension_numbers<[1], [0], [0], [1], [0, 0, 1, 1], [], []>} : vector<128x256xbf16>, vector<256x256xbf16>, vector<128x256xf32> -> vector<128x256xf32>
    %c0_9 = arith.constant 0 : index
    %c0_10 = arith.constant 0 : index
    %9 = vector.load %arg7[%c0_9, %c0_10] : memref<1x2048xf32, #tpu.memory_space<vmem>>, vector<1x256xf32>
    %10 = vector.broadcast %9 : vector<1x256xf32> to vector<128x256xf32>
    %11 = arith.addf %8, %10 : vector<128x256xf32>
    %12 = vector.extract_strided_slice %5 {offsets = [0, 0], sizes = [128, 1], strides = [1, 1]} : vector<128x8xf32> to vector<128x1xf32>
    %13 = vector.broadcast %12 : vector<128x1xf32> to vector<128x256xf32>
    %14 = arith.mulf %13, %11 : vector<128x256xf32>
    %15 = arith.addf %6, %14 : vector<128x256xf32>
    %c0_11 = arith.constant 0 : index
    %c256 = arith.constant 256 : index
    %16 = vector.load %arg6[%c0_11, %c256] : memref<256x2048xbf16, #tpu.memory_space<vmem>>, vector<256x256xbf16>
    %cst_12 = arith.constant dense<0.000000e+00> : vector<128x256xf32>
    %17 = tpu.matmul %3, %16, %cst_12 {dimension_numbers = #tpu.dot_dimension_numbers<[1], [0], [0], [1], [0, 0, 1, 1], [], []>} : vector<128x256xbf16>, vector<256x256xbf16>, vector<128x256xf32> -> vector<128x256xf32>
    %c0_13 = arith.constant 0 : index
    %c256_14 = arith.constant 256 : index
    %18 = vector.load %arg7[%c0_13, %c256_14] : memref<1x2048xf32, #tpu.memory_space<vmem>>, vector<1x256xf32>
    %19 = vector.broadcast %18 : vector<1x256xf32> to vector<128x256xf32>
    %20 = arith.addf %17, %19 : vector<128x256xf32>
    %21 = vector.extract_strided_slice %5 {offsets = [0, 1], sizes = [128, 1], strides = [1, 1]} : vector<128x8xf32> to vector<128x1xf32>
    %22 = vector.broadcast %21 : vector<128x1xf32> to vector<128x256xf32>
    %23 = arith.mulf %22, %20 : vector<128x256xf32>
    %24 = arith.addf %15, %23 : vector<128x256xf32>
    %c0_15 = arith.constant 0 : index
    %c512 = arith.constant 512 : index
    %25 = vector.load %arg6[%c0_15, %c512] : memref<256x2048xbf16, #tpu.memory_space<vmem>>, vector<256x256xbf16>
    %cst_16 = arith.constant dense<0.000000e+00> : vector<128x256xf32>
    %26 = tpu.matmul %3, %25, %cst_16 {dimension_numbers = #tpu.dot_dimension_numbers<[1], [0], [0], [1], [0, 0, 1, 1], [], []>} : vector<128x256xbf16>, vector<256x256xbf16>, vector<128x256xf32> -> vector<128x256xf32>
    %c0_17 = arith.constant 0 : index
    %c512_18 = arith.constant 512 : index
    %27 = vector.load %arg7[%c0_17, %c512_18] : memref<1x2048xf32, #tpu.memory_space<vmem>>, vector<1x256xf32>
    %28 = vector.broadcast %27 : vector<1x256xf32> to vector<128x256xf32>
    %29 = arith.addf %26, %28 : vector<128x256xf32>
    %30 = vector.extract_strided_slice %5 {offsets = [0, 2], sizes = [128, 1], strides = [1, 1]} : vector<128x8xf32> to vector<128x1xf32>
    %31 = vector.broadcast %30 : vector<128x1xf32> to vector<128x256xf32>
    %32 = arith.mulf %31, %29 : vector<128x256xf32>
    %33 = arith.addf %24, %32 : vector<128x256xf32>
    %c0_19 = arith.constant 0 : index
    %c768 = arith.constant 768 : index
    %34 = vector.load %arg6[%c0_19, %c768] : memref<256x2048xbf16, #tpu.memory_space<vmem>>, vector<256x256xbf16>
    %cst_20 = arith.constant dense<0.000000e+00> : vector<128x256xf32>
    %35 = tpu.matmul %3, %34, %cst_20 {dimension_numbers = #tpu.dot_dimension_numbers<[1], [0], [0], [1], [0, 0, 1, 1], [], []>} : vector<128x256xbf16>, vector<256x256xbf16>, vector<128x256xf32> -> vector<128x256xf32>
    %c0_21 = arith.constant 0 : index
    %c768_22 = arith.constant 768 : index
    %36 = vector.load %arg7[%c0_21, %c768_22] : memref<1x2048xf32, #tpu.memory_space<vmem>>, vector<1x256xf32>
    %37 = vector.broadcast %36 : vector<1x256xf32> to vector<128x256xf32>
    %38 = arith.addf %35, %37 : vector<128x256xf32>
    %39 = vector.extract_strided_slice %5 {offsets = [0, 3], sizes = [128, 1], strides = [1, 1]} : vector<128x8xf32> to vector<128x1xf32>
    %40 = vector.broadcast %39 : vector<128x1xf32> to vector<128x256xf32>
    %41 = arith.mulf %40, %38 : vector<128x256xf32>
    %42 = arith.addf %33, %41 : vector<128x256xf32>
    %c0_23 = arith.constant 0 : index
    %c1024 = arith.constant 1024 : index
    %43 = vector.load %arg6[%c0_23, %c1024] : memref<256x2048xbf16, #tpu.memory_space<vmem>>, vector<256x256xbf16>
    %cst_24 = arith.constant dense<0.000000e+00> : vector<128x256xf32>
    %44 = tpu.matmul %3, %43, %cst_24 {dimension_numbers = #tpu.dot_dimension_numbers<[1], [0], [0], [1], [0, 0, 1, 1], [], []>} : vector<128x256xbf16>, vector<256x256xbf16>, vector<128x256xf32> -> vector<128x256xf32>
    %c0_25 = arith.constant 0 : index
    %c1024_26 = arith.constant 1024 : index
    %45 = vector.load %arg7[%c0_25, %c1024_26] : memref<1x2048xf32, #tpu.memory_space<vmem>>, vector<1x256xf32>
    %46 = vector.broadcast %45 : vector<1x256xf32> to vector<128x256xf32>
    %47 = arith.addf %44, %46 : vector<128x256xf32>
    %48 = vector.extract_strided_slice %5 {offsets = [0, 4], sizes = [128, 1], strides = [1, 1]} : vector<128x8xf32> to vector<128x1xf32>
    %49 = vector.broadcast %48 : vector<128x1xf32> to vector<128x256xf32>
    %50 = arith.mulf %49, %47 : vector<128x256xf32>
    %51 = arith.addf %42, %50 : vector<128x256xf32>
    %c0_27 = arith.constant 0 : index
    %c1280 = arith.constant 1280 : index
    %52 = vector.load %arg6[%c0_27, %c1280] : memref<256x2048xbf16, #tpu.memory_space<vmem>>, vector<256x256xbf16>
    %cst_28 = arith.constant dense<0.000000e+00> : vector<128x256xf32>
    %53 = tpu.matmul %3, %52, %cst_28 {dimension_numbers = #tpu.dot_dimension_numbers<[1], [0], [0], [1], [0, 0, 1, 1], [], []>} : vector<128x256xbf16>, vector<256x256xbf16>, vector<128x256xf32> -> vector<128x256xf32>
    %c0_29 = arith.constant 0 : index
    %c1280_30 = arith.constant 1280 : index
    %54 = vector.load %arg7[%c0_29, %c1280_30] : memref<1x2048xf32, #tpu.memory_space<vmem>>, vector<1x256xf32>
    %55 = vector.broadcast %54 : vector<1x256xf32> to vector<128x256xf32>
    %56 = arith.addf %53, %55 : vector<128x256xf32>
    %57 = vector.extract_strided_slice %5 {offsets = [0, 5], sizes = [128, 1], strides = [1, 1]} : vector<128x8xf32> to vector<128x1xf32>
    %58 = vector.broadcast %57 : vector<128x1xf32> to vector<128x256xf32>
    %59 = arith.mulf %58, %56 : vector<128x256xf32>
    %60 = arith.addf %51, %59 : vector<128x256xf32>
    %c0_31 = arith.constant 0 : index
    %c1536 = arith.constant 1536 : index
    %61 = vector.load %arg6[%c0_31, %c1536] : memref<256x2048xbf16, #tpu.memory_space<vmem>>, vector<256x256xbf16>
    %cst_32 = arith.constant dense<0.000000e+00> : vector<128x256xf32>
    %62 = tpu.matmul %3, %61, %cst_32 {dimension_numbers = #tpu.dot_dimension_numbers<[1], [0], [0], [1], [0, 0, 1, 1], [], []>} : vector<128x256xbf16>, vector<256x256xbf16>, vector<128x256xf32> -> vector<128x256xf32>
    %c0_33 = arith.constant 0 : index
    %c1536_34 = arith.constant 1536 : index
    %63 = vector.load %arg7[%c0_33, %c1536_34] : memref<1x2048xf32, #tpu.memory_space<vmem>>, vector<1x256xf32>
    %64 = vector.broadcast %63 : vector<1x256xf32> to vector<128x256xf32>
    %65 = arith.addf %62, %64 : vector<128x256xf32>
    %66 = vector.extract_strided_slice %5 {offsets = [0, 6], sizes = [128, 1], strides = [1, 1]} : vector<128x8xf32> to vector<128x1xf32>
    %67 = vector.broadcast %66 : vector<128x1xf32> to vector<128x256xf32>
    %68 = arith.mulf %67, %65 : vector<128x256xf32>
    %69 = arith.addf %60, %68 : vector<128x256xf32>
    %c0_35 = arith.constant 0 : index
    %c1792 = arith.constant 1792 : index
    %70 = vector.load %arg6[%c0_35, %c1792] : memref<256x2048xbf16, #tpu.memory_space<vmem>>, vector<256x256xbf16>
    %cst_36 = arith.constant dense<0.000000e+00> : vector<128x256xf32>
    %71 = tpu.matmul %3, %70, %cst_36 {dimension_numbers = #tpu.dot_dimension_numbers<[1], [0], [0], [1], [0, 0, 1, 1], [], []>} : vector<128x256xbf16>, vector<256x256xbf16>, vector<128x256xf32> -> vector<128x256xf32>
    %c0_37 = arith.constant 0 : index
    %c1792_38 = arith.constant 1792 : index
    %72 = vector.load %arg7[%c0_37, %c1792_38] : memref<1x2048xf32, #tpu.memory_space<vmem>>, vector<1x256xf32>
    %73 = vector.broadcast %72 : vector<1x256xf32> to vector<128x256xf32>
    %74 = arith.addf %71, %73 : vector<128x256xf32>
    %75 = vector.extract_strided_slice %5 {offsets = [0, 7], sizes = [128, 1], strides = [1, 1]} : vector<128x8xf32> to vector<128x1xf32>
    %76 = vector.broadcast %75 : vector<128x1xf32> to vector<128x256xf32>
    %77 = arith.mulf %76, %74 : vector<128x256xf32>
    %78 = arith.addf %69, %77 : vector<128x256xf32>
    %c0_39 = arith.constant 0 : index
    %c0_40 = arith.constant 0 : index
    %79 = vector.load %arg10[%c0_39, %c0_40] : memref<128x256xf32, #tpu.memory_space<vmem>>, vector<128x256xf32>
    tpu.vector_store %arg10[%c0_39, %c0_40], %78 {strides = array<i32>} : memref<128x256xf32, #tpu.memory_space<vmem>>, vector<128x256xf32>,
    %c0_i32_41 = arith.constant 0 : i32
    %80 = arith.cmpi eq, %arg1, %c0_i32_41 : i32
    %81 = arith.extui %80 : i1 to i32
    %c0_i32_42 = arith.constant 0 : i32
    %82 = arith.cmpi ne, %81, %c0_i32_42 : i32
    scf.if %82 {
      %c0_43 = arith.constant 0 : index
      %c0_44 = arith.constant 0 : index
      %83 = vector.load %arg10[%c0_43, %c0_44] : memref<128x256xf32, #tpu.memory_space<vmem>>, vector<128x256xf32>
      %84 = arith.truncf %83 : vector<128x256xf32> to vector<128x256xbf16>
      %c0_45 = arith.constant 0 : index
      %c0_46 = arith.constant 0 : index
      %85 = vector.load %arg8[%c0_45, %c0_46] : memref<128x256xbf16, #tpu.memory_space<vmem>>, vector<128x256xbf16>
      tpu.vector_store %arg8[%c0_45, %c0_46], %84 {strides = array<i32>} : memref<128x256xbf16, #tpu.memory_space<vmem>>, vector<128x256xbf16>,
    } else {
    }
    return
  }
  func.func @transform_0(%arg0: i32, %arg1: i32) -> (i32, i32) {
    %c0_i32 = arith.constant 0 : i32
    %c0_i32_0 = arith.constant 0 : i32
    return %arg0, %c0_i32 : i32, i32
  }
  func.func @transform_1(%arg0: i32, %arg1: i32) -> (i32, i32, i32) {
    %c0_i32 = arith.constant 0 : i32
    %c0_i32_0 = arith.constant 0 : i32
    return %arg1, %arg0, %c0_i32 : i32, i32, i32
  }
  func.func @transform_2(%arg0: i32, %arg1: i32) -> (i32, i32) {
    %c0_i32 = arith.constant 0 : i32
    %c0_i32_0 = arith.constant 0 : i32
    %c0_i32_1 = arith.constant 0 : i32
    return %c0_i32, %c0_i32_0 : i32, i32
  }
  func.func @transform_3(%arg0: i32, %arg1: i32) -> (i32, i32) {
    %c0_i32 = arith.constant 0 : i32
    %c0_i32_0 = arith.constant 0 : i32
    %c0_i32_1 = arith.constant 0 : i32
    return %c0_i32, %c0_i32_0 : i32, i32
  }
  func.func @transform_4(%arg0: i32, %arg1: i32) -> (i32, i32) {
    %c0_i32 = arith.constant 0 : i32
    %c0_i32_0 = arith.constant 0 : i32
    return %c0_i32, %arg1 : i32, i32
  }
  func.func @transform_5(%arg0: i32, %arg1: i32) -> (i32, i32) {
    %c0_i32 = arith.constant 0 : i32
    %c0_i32_0 = arith.constant 0 : i32
    return %c0_i32, %arg1 : i32, i32
  }
  func.func @transform_6(%arg0: i32, %arg1: i32) -> (i32, i32) {
    %c0_i32 = arith.constant 0 : i32
    %c0_i32_0 = arith.constant 0 : i32
    return %arg0, %c0_i32 : i32, i32
  }
}

</mosaic_0001>

<bundles_post_ra>
// kernel: tpu_custom_call.1
= control target key start
LH: loop header
LB: loop body
LE: loop exit
PB: predicated region body
PF: predicated region fallthrough
CT: control target
= control target key end

     0   :  { %11 = vsyncpa [#allocation5], 0  ;;  %s8295_s0 = inlined_call_operand.vmem [shape: f32[128,8], index: 0, kind: input, shape index: {}]   ;;  %s8296_s1 = inlined_call_operand.vmem [shape: f32[1,128,8], index: 1, kind: input, shape index: {}]   ;;  %s8297_s2 = inlined_call_operand.vmem [shape: f32[8,256], index: 2, kind: input, shape index: {}]   ;;  %s8298_s3 = inlined_call_operand.vmem [shape: f32[1,256], index: 3, kind: input, shape index: {}]   ;;  %s8299_s4 = inlined_call_operand.hbm [shape: bf16[256,2048], index: 4, kind: input, shape index: {}]   ;;  %s8300_s5 = inlined_call_operand.vmem [shape: f32[1,2048], index: 5, kind: input, shape index: {}]   ;;  %s8301_s6 = inlined_call_operand.hbm [shape: bf16[128,256], index: 6, kind: output, shape index: {}]  }
   0x1   :  { %12 = vsyncpa [#allocation6], 0  ;;  %s25_s23 = sshll.u32 %s8299_s4, 4  ;;  %s6393_s24 = smov [#allocation4]   ;;  %s26_s23 = int_to_ptr.hbm [resolvable:$true] %s25_s23 }
   0x2   :  { %s27_s25 = sshll.u32 %s6393_s24, 4  ;;  %s6394_s26 = smov 1024   ;;  %s28_s25 = int_to_ptr.vmem [resolvable:$true] %s27_s25 }
   0x3   :  { %s6395_s27 = smov 64  }
   0x4   :  { %33 = dma.hbm_to_vmem [thread:$0]  %s26_s23, 32768, %s28_s25, [#allocation5], %s6394_s26, %s6394_s26, %s6395_s27  }
   0x5   :  { %6389 = dma.done.wait [#allocation5], 32768  }
   0x6   :  { %6390 = vsyncadd [#allocation5], 4294934528  ;;  %vm68_vm0 = vcmask 64512   ;;  %v60_v0 = vld [vmem:[%s8297_s2] sm:$0xff]  ;;  %v61_v1 = vld [vmem:[%s8297_s2 + $0x8] sm:$0xff]  ;;  %s4848_s18 = sshll.u32 %s8301_s6, 4  ;;  %s4849_s18 = int_to_ptr.hbm [resolvable:$true] %s4848_s18 }
   0x7   :  { %v44_v2 = vld [vmem:[%s8295_s0] sm:$0xff]  ;;  %132 = vmatpush.msra.mxu0 %v60_v0  ;;  %197 = vmatpush.msra.mxu1 %v61_v1  ;;  %v45_v3 = vld [vmem:[%s8295_s0 + $0x8] sm:$0xff]  ;;  %v46_v4 = vld [vmem:[%s8295_s0 + $0x10] sm:$0xff]  ;;  %s6405_s19 = smov 128   ;;  %s6406_s20 = smov 8  }
   0x8   :  { %4861 = vmatmul.msk.f32.vlgmr.msra.gmra.mxu0 %vm68_vm0, %v44_v2  ;;  %4877 = vmatmul.msk.f32.vlgmr.msra.gmra.mxu1 %vm68_vm0, %v44_v2  ;;  %v6467_v5 = vld [vmem:[%s8295_s0 + $0x40] sm:$0xff]  ;;  %v47_v6 = vld [vmem:[%s8295_s0 + $0x18] sm:$0xff]  ;;  %v53_v7 = vld [vmem:[%s8295_s0 + $0x48] sm:$0xff] }
   0x9   :  { %6254 = vmatpush.msra.mxu3 %v61_v1  ;;  %6253 = vmatpush.msra.mxu2 %v60_v0  ;;  %v48_v8 = vld [vmem:[%s8295_s0 + $0x20] sm:$0xff]  ;;  %v54_v9 = vld [vmem:[%s8295_s0 + $0x50] sm:$0xff]  ;;  %v49_v21 = vld [vmem:[%s8295_s0 + $0x28] sm:$0xff] }
   0xa   :  { %4885 = vmatmul.msk.f32.vlgmr.msra.gmra.mxu3 %vm68_vm0, %v6467_v5  ;;  %4870 = vmatmul.msk.f32.vlgmr.msra.gmra.mxu2 %vm68_vm0, %v53_v7  ;;  %v6011_v10 = vld [vmem:[#allocation4 + $0x384] sm:$0xf]  ;;  %v5079_v12 = vld [vmem:[#allocation4 + $0x780] sm:$0xf]  ;;  %v55_v29 = vld [vmem:[%s8295_s0 + $0x58] sm:$0xff] }
   0xb   :  { %v5017_v11 = vld [vmem:[#allocation4 + $0x3c0] sm:$0xf0]  ;;  %v6028_v14 = vld [vmem:[#allocation4 + $0x7bc] sm:$0xf0]  ;;  %v50_v54 = vld [vmem:[%s8295_s0 + $0x30] sm:$0xff] }
   0xc   :  { %v5020_v13 = vor.u32 %v6011_v10, %v5017_v11  ;;  %v6009_v15 = vld [vmem:[#allocation4 + $0x304] sm:$0xf]  ;;  %v5080_v17 = vor.u32 %v6028_v14, %v5079_v12  ;;  %v5015_v18 = vld [vmem:[#allocation4 + $0x380] sm:$0xf]  ;;  %v58_v10 = vld [vmem:[%s8295_s0 + $0x70] sm:$0xff] }
   0xd   :  { %v5009_v16 = vld [vmem:[#allocation4 + $0x340] sm:$0xf0]  ;;  %v6012_v19 = vld [vmem:[#allocation4 + $0x3bc] sm:$0xf0]  ;;  %v59_v11 = vld [vmem:[%s8295_s0 + $0x78] sm:$0xff] }
   0xe   :  { %v6027_v20 = vld [vmem:[#allocation4 + $0x784] sm:$0xf]  ;;  %847 = vmatpush.bf16.msrb.mxu0 %v5020_v13  ;;  %v5016_v22 = vor.u32 %v6012_v19, %v5015_v18  ;;  %v5071_v24 = vld [vmem:[#allocation4 + $0x700] sm:$0xf]  ;;  %798 = vmatpush.bf16.msrb.mxu3 %v5080_v17  ;;  %v5012_v30 = vor.u32 %v6009_v15, %v5009_v16 }
   0xf   :  { %v5081_v23 = vld [vmem:[#allocation4 + $0x7c0] sm:$0xf0]  ;;  %v6026_v26 = vld [vmem:[#allocation4 + $0x73c] sm:$0xf0] }
  0x10   :  { %4862 = vmatmul.msk.f32.gmra.mxu0 %vm68_vm0, %v45_v3  ;;  %4878 = vmatmul.msk.f32.gmra.mxu1 %vm68_vm0, %v45_v3  ;;  %v5084_v25 = vor.u32 %v6027_v20, %v5081_v23  ;;  %v5007_v27 = vld [vmem:[#allocation4 + $0x300] sm:$0xf]  ;;  %v5072_v31 = vor.u32 %v6026_v26, %v5071_v24  ;;  %v6025_v32 = vld [vmem:[#allocation4 + $0x704] sm:$0xf] }
  0x11   :  { %v6010_v28 = vld [vmem:[#allocation4 + $0x33c] sm:$0xf0]  ;;  %749 = vmatpush.bf16.msrb.mxu2 %v5016_v22  ;;  %v6007_v34 = vld [vmem:[#allocation4 + $0x284] sm:$0xf] }
  0x12   :  { %4886 = vmatmul.msk.f32.gmra.mxu3 %vm68_vm0, %v53_v7  ;;  %4871 = vmatmul.msk.f32.gmra.mxu2 %vm68_vm0, %v54_v9  ;;  %v5008_v33 = vor.u32 %v6010_v28, %v5007_v27  ;;  %v5001_v35 = vld [vmem:[#allocation4 + $0x2c0] sm:$0xf0]  ;;  %v5063_v38 = vld [vmem:[#allocation4 + $0x680] sm:$0xf] }
  0x13   :  { %896 = vmatpush.bf16.msrb.mxu1 %v5084_v25  ;;  %v5073_v36 = vld [vmem:[#allocation4 + $0x740] sm:$0xf0]  ;;  %v6024_v39 = vld [vmem:[#allocation4 + $0x6bc] sm:$0xf0]  ;;  %848 = vmatpush.bf16.msrb.mxu0 %v5012_v30  ;;  %v5004_v41 = vor.u32 %v6007_v34, %v5001_v35 }
  0x14   :  { %v5076_v37 = vor.u32 %v6025_v32, %v5073_v36  ;;  %v4999_v40 = vld [vmem:[#allocation4 + $0x280] sm:$0xf]  ;;  %799 = vmatpush.bf16.msrb.mxu3 %v5072_v31  ;;  %v5064_v42 = vor.u32 %v6024_v39, %v5063_v38  ;;  %v6023_v44 = vld [vmem:[#allocation4 + $0x684] sm:$0xf] }
  0x15   :  { %v6008_v43 = vld [vmem:[#allocation4 + $0x2bc] sm:$0xf0]  ;;  %v5065_v45 = vld [vmem:[#allocation4 + $0x6c0] sm:$0xf0]  ;;  %750 = vmatpush.bf16.msrb.mxu2 %v5008_v33 }
  0x16   :  { %v5000_v46 = vor.u32 %v6008_v43, %v4999_v40  ;;  %v5068_v47 = vor.u32 %v6023_v44, %v5065_v45  ;;  %v6005_v48 = vld [vmem:[#allocation4 + $0x204] sm:$0xf]  ;;  %v5055_v50 = vld [vmem:[#allocation4 + $0x600] sm:$0xf] }
  0x17   :  { %897 = vmatpush.bf16.msrb.mxu1 %v5076_v37  ;;  %v4993_v49 = vld [vmem:[#allocation4 + $0x240] sm:$0xf0]  ;;  %v6022_v51 = vld [vmem:[#allocation4 + $0x63c] sm:$0xf0]  ;;  %849 = vmatpush.bf16.msrb.mxu0 %v5004_v41 }
  0x18   :  { %4863 = vmatmul.msk.f32.gmra.mxu0 %vm68_vm0, %v46_v4  ;;  %4879 = vmatmul.msk.f32.gmra.mxu1 %vm68_vm0, %v46_v4  ;;  %v4991_v52 = vld [vmem:[#allocation4 + $0x200] sm:$0xf]  ;;  %v6021_v55 = vld [vmem:[#allocation4 + $0x604] sm:$0xf]  ;;  %v4996_v58 = vor.u32 %v6005_v48, %v4993_v49  ;;  %v5056_v59 = vor.u32 %v6022_v51, %v5055_v50 }
  0x19   :  { %v6006_v53 = vld [vmem:[#allocation4 + $0x23c] sm:$0xf0]  ;;  %v5057_v56 = vld [vmem:[#allocation4 + $0x640] sm:$0xf0]  ;;  %800 = vmatpush.bf16.msrb.mxu3 %v5064_v42  ;;  %751 = vmatpush.bf16.msrb.mxu2 %v5000_v46 }
  0x1a   :  { %4887 = vmatmul.msk.f32.gmra.mxu3 %vm68_vm0, %v54_v9  ;;  %4872 = vmatmul.msk.f32.gmra.mxu2 %vm68_vm0, %v55_v29  ;;  %v56_v57 = vld [vmem:[%s8295_s0 + $0x60] sm:$0xff]  ;;  %v4992_v61 = vor.u32 %v6006_v53, %v4991_v52  ;;  %v5060_v62 = vor.u32 %v6021_v55, %v5057_v56  ;;  %v57_v9 = vld [vmem:[%s8295_s0 + $0x68] sm:$0xff] }
  0x1b   :  { %v5047_v60 = vld [vmem:[#allocation4 + $0x580] sm:$0xf]  ;;  %898 = vmatpush.bf16.msrb.mxu1 %v5068_v47  ;;  %v6003_v0 = vld [vmem:[#allocation4 + $0x184] sm:$0xf]  ;;  %850 = vmatpush.bf16.msrb.mxu0 %v4996_v58 }
  0x1c   :  { %v6020_v63 = vld [vmem:[#allocation4 + $0x5bc] sm:$0xf0]  ;;  %v4985_v1 = vld [vmem:[#allocation4 + $0x1c0] sm:$0xf0] }
  0x1d   :  { %v4983_v2 = vld [vmem:[#allocation4 + $0x180] sm:$0xf]  ;;  %801 = vmatpush.bf16.msrb.mxu3 %v5056_v59  ;;  %v5048_v4 = vor.u32 %v6020_v63, %v5047_v60  ;;  %752 = vmatpush.bf16.msrb.mxu2 %v4992_v61  ;;  %v6019_v12 = vld [vmem:[#allocation4 + $0x584] sm:$0xf] }
  0x1e   :  { %v6004_v3 = vld [vmem:[#allocation4 + $0x1bc] sm:$0xf0]  ;;  %v5049_v13 = vld [vmem:[#allocation4 + $0x5c0] sm:$0xf0] }
  0x1f   :  { %899 = vmatpush.bf16.msrb.mxu1 %v5060_v62  ;;  %v4984_v7 = vor.u32 %v6004_v3, %v4983_v2  ;;  %v5052_v14 = vor.u32 %v6019_v12, %v5049_v13  ;;  %v5039_v15 = vld [vmem:[#allocation4 + $0x500] sm:$0xf]  ;;  %v6001_v19 = vld [vmem:[#allocation4 + $0x104] sm:$0xf] }
  0x20   :  { %4864 = vmatmul.msk.f32.gmra.mxu0 %vm68_vm0, %v47_v6  ;;  %4880 = vmatmul.msk.f32.gmra.mxu1 %vm68_vm0, %v47_v6  ;;  %v4988_v6 = vor.u32 %v6003_v0, %v4985_v1  ;;  %v6018_v16 = vld [vmem:[#allocation4 + $0x53c] sm:$0xf0]  ;;  %v4977_v20 = vld [vmem:[#allocation4 + $0x140] sm:$0xf0]  ;;  %v5143_v0 = vld [vmem:[#allocation4 + $0x388] sm:$0xf] }
  0x21   :  { %802 = vmatpush.bf16.msrb.mxu3 %v5048_v4  ;;  %753 = vmatpush.bf16.msrb.mxu2 %v4984_v7  ;;  %v4975_v17 = vld [vmem:[#allocation4 + $0x100] sm:$0xf]  ;;  %v4980_v22 = vor.u32 %v6001_v19, %v4977_v20  ;;  %v6017_v23 = vld [vmem:[#allocation4 + $0x504] sm:$0xf]  ;;  %v6044_v1 = vld [vmem:[#allocation4 + $0x3c4] sm:$0xf0] }
  0x22   :  { %4888 = vmatmul.msk.f32.gmra.mxu3 %vm68_vm0, %v55_v29  ;;  %4873 = vmatmul.msk.f32.gmra.mxu2 %vm68_vm0, %v56_v57  ;;  %v6002_v18 = vld [vmem:[#allocation4 + $0x13c] sm:$0xf0]  ;;  %v5041_v24 = vld [vmem:[#allocation4 + $0x540] sm:$0xf0]  ;;  %v5144_v4 = vor.u32 %v6044_v1, %v5143_v0  ;;  %v6060_v7 = vld [vmem:[#allocation4 + $0x7c4] sm:$0xf0] }
  0x23   :  { %851 = vmatpush.bf16.msrb.mxu0 %v4988_v6  ;;  %900 = vmatpush.bf16.msrb.mxu1 %v5052_v14  ;;  %v5044_v25 = vor.u32 %v6017_v23, %v5041_v24  ;;  %v4967_v26 = vld [vmem:[#allocation4 + $0x80] sm:$0xf]  ;;  %v5999_v31 = vld [vmem:[#allocation4 + $0x84] sm:$0xf]  ;;  %v5207_v6 = vld [vmem:[#allocation4 + $0x788] sm:$0xf] }
  0x24   :  { %v6000_v27 = vld [vmem:[#allocation4 + $0xbc] sm:$0xf0]  ;;  %v4969_v32 = vld [vmem:[#allocation4 + $0xc0] sm:$0xf0]  ;;  %v6059_v19 = vld [vmem:[#allocation4 + $0x78c] sm:$0xf] }
  0x25   :  { %v5031_v28 = vld [vmem:[#allocation4 + $0x480] sm:$0xf]  ;;  %v4968_v29 = vor.u32 %v6000_v27, %v4967_v26  ;;  %v4972_v34 = vor.u32 %v5999_v31, %v4969_v32  ;;  %v6015_v35 = vld [vmem:[#allocation4 + $0x484] sm:$0xf]  ;;  %v5209_v23 = vld [vmem:[#allocation4 + $0x7c8] sm:$0xf0] }
  0x26   :  { %v6016_v30 = vld [vmem:[#allocation4 + $0x4bc] sm:$0xf0]  ;;  %v5033_v36 = vld [vmem:[#allocation4 + $0x4c0] sm:$0xf0]  ;;  %v6557_v24 = vld [vmem:[%s8296_s1 + $0x8] sm:$0xff] }
  0x27   :  { %852 = vmatpush.bf16.msrb.mxu0 %v4980_v22  ;;  %901 = vmatpush.bf16.msrb.mxu1 %v5044_v25  ;;  %v5032_v33 = vor.u32 %v6016_v30, %v5031_v28  ;;  %v5036_v37 = vor.u32 %v6015_v35, %v5033_v36  ;;  %v4959_v38 = vld [vmem:[#allocation4] sm:$0xf]  ;;  %v5997_v43 = vld [vmem:[#allocation4 + $0x4] sm:$0xf]  ;;  %v5212_v25 = vor.u32 %v6059_v19, %v5209_v23 }
  0x28   :  { %4865 = vmatmul.msk.f32.gmra.mxu0 %vm68_vm0, %v48_v8  ;;  %4881 = vmatmul.msk.f32.gmra.mxu1 %vm68_vm0, %v48_v8  ;;  %v51_v8 = vld [vmem:[%s8295_s0 + $0x38] sm:$0xff]  ;;  %v5998_v39 = vld [vmem:[#allocation4 + $0x3c] sm:$0xf0]  ;;  %v4961_v44 = vld [vmem:[#allocation4 + $0x40] sm:$0xf0] }
  0x29   :  { %v5023_v40 = vld [vmem:[#allocation4 + $0x400] sm:$0xf]  ;;  %v4960_v41 = vor.u32 %v5998_v39, %v4959_v38  ;;  %v4964_v46 = vor.u32 %v5997_v43, %v4961_v44  ;;  %v6013_v47 = vld [vmem:[#allocation4 + $0x404] sm:$0xf] }
  0x2a   :  { %4889 = vmatmul.msk.f32.gmra.mxu3 %vm68_vm0, %v56_v57  ;;  %4874 = vmatmul.msk.f32.gmra.mxu2 %vm68_vm0, %v57_v9  ;;  %v6014_v42 = vld [vmem:[#allocation4 + $0x43c] sm:$0xf0]  ;;  %v5025_v48 = vld [vmem:[#allocation4 + $0x440] sm:$0xf0] }
  0x2b   :  { %853 = vmatpush.bf16.msrb.mxu0 %v4972_v34  ;;  %902 = vmatpush.bf16.msrb.mxu1 %v5036_v37  ;;  %v5024_v45 = vor.u32 %v6014_v42, %v5023_v40  ;;  %v5028_v49 = vor.u32 %v6013_v47, %v5025_v48  ;;  %v62_v50 = vld [vmem:[%s8298_s3] sm:$0x3]  ;;  %v5135_v40 = vld [vmem:[#allocation4 + $0x308] sm:$0xf]  ;;  %v6573_v48 = vld [vmem:[%s8296_s1 + $0x10] sm:$0xff] }
  0x2c   :  { %v6538_v51 = vperm.slane %v62_v50, 0  ;;  %v6540_v52 = vperm.slane %v62_v50, 1 }
  0x2f   :  { %854 = vmatpush.bf16.msrb.mxu0 %v4964_v46  ;;  %903 = vmatpush.bf16.msrb.mxu1 %v5028_v49  ;;  %v6058_v46 = vld [vmem:[#allocation4 + $0x744] sm:$0xf0] }
  0x30   :  { %4866 = vmatmul.msk.f32.gmra.mxu0 %vm68_vm0, %v49_v21  ;;  %4882 = vmatmul.msk.f32.gmra.mxu1 %vm68_vm0, %v49_v21  ;;  %v4976_v21 = vor.u32 %v6002_v18, %v4975_v17  ;;  %v5145_v18 = vld [vmem:[#allocation4 + $0x3c8] sm:$0xf0] }
  0x32   :  { %4890 = vmatmul.msk.f32.gmra.mxu3 %vm68_vm0, %v57_v9  ;;  %4875 = vmatmul.msk.f32.gmra.mxu2 %vm68_vm0, %v58_v10  ;;  %v6549_v9 = vld [vmem:[%s8296_s1] sm:$0xff] }
  0x33   :  { %754 = vmatpush.bf16.msrb.mxu2 %v4976_v21  ;;  %1434 = vmatpush.bf16.msra.mxu1 %v5212_v25 }
  0x37   :  { %755 = vmatpush.bf16.msrb.mxu2 %v4968_v29 }
  0x38   :  { %4867 = vmatmul.msk.f32.gmra.mxu0 %vm68_vm0, %v50_v54  ;;  %4883 = vmatmul.msk.f32.gmra.mxu1 %vm68_vm0, %v50_v54 }
  0x3a   :  { %4891 = vmatmul.msk.f32.gmra.mxu3 %vm68_vm0, %v58_v10  ;;  %4876 = vmatmul.msk.f32.gmra.mxu2 %vm68_vm0, %v59_v11  ;;  %v5208_v10 = vor.u32 %v6060_v7, %v5207_v6  ;;  %v6585_v7 = vld [vmem:[%s8296_s1 + $0x18] sm:$0xff] }
  0x3b   :  { %756 = vmatpush.bf16.msrb.mxu2 %v4960_v41  ;;  %v6042_v41 = vld [vmem:[#allocation4 + $0x344] sm:$0xf0] }
  0x3c   :  { %v5136_v44 = vor.u32 %v6042_v41, %v5135_v40 }
  0x3f   :  { %1287 = vmatpush.bf16.msra.mxu2 %v5144_v4 }
  0x40   :  { %4868 = vmatmul.msk.f32.gmra.mxu0 %vm68_vm0, %v51_v8  ;;  %4884 = vmatmul.msk.f32.gmra.mxu1 %vm68_vm0, %v51_v8  ;;  %v6396_v8 = vmov 0  }
  0x41   :  { %6269 = vset.pattern.permute.xlu0 %v6396_v8  ;;  %6270 = vset.pattern.permute.xlu1 %v6396_v8 }
  0x42   :  { %4892 = vmatmul.msk.f32.gmra.mxu3 %vm68_vm0, %v59_v11  ;;  %947 = vperm.xlu0 %6269, %v6549_v9  }
  0x43   :  { %6271 = vset.pattern.permute.xlu2 %v6396_v8  ;;  %1288 = vmatpush.bf16.msra.mxu2 %v5136_v44 }
  0x44   :  { %957 = vperm.xlu1 %6270, %v6573_v48  }
  0x48   :  { %4869 = vmatmul.msk.f32.gmra.mxu0 %vm68_vm0, %v6467_v5  ;;  %v5040_v5 = vor.u32 %v6018_v16, %v5039_v15  ;;  %v6043_v16 = vld [vmem:[#allocation4 + $0x38c] sm:$0xf] }
  0x49   :  { %v5148_v22 = vor.u32 %v6043_v16, %v5145_v18 }
  0x4a   :  { %803 = vmatpush.bf16.msrb.mxu3 %v5040_v5  ;;  %952 = vperm.xlu0 %6269, %v6557_v24  }
  0x4b   :  { %1385 = vmatpush.bf16.msra.mxu0 %v5148_v22 }
  0x4c   :  { %962 = vperm.xlu1 %6270, %v6585_v7  }
  0x4e   :  { %804 = vmatpush.bf16.msrb.mxu3 %v5032_v33 }
  0x52   :  { %805 = vmatpush.bf16.msrb.mxu3 %v5024_v45  ;;  %v5199_v45 = vld [vmem:[#allocation4 + $0x708] sm:$0xf] }
  0x53   :  { %v5200_v47 = vor.u32 %v6058_v46, %v5199_v45 }
  0x56   :  { %1336 = vmatpush.bf16.msra.mxu3 %v5208_v10 }
  0x5a   :  { %1337 = vmatpush.bf16.msra.mxu3 %v5200_v47 }
  0x85   :  { %v134_v53 = vpop.f32.mrf.mxu0  ;;  %v199_v54 = vpop.f32.mrf.mxu1 }
  0x86   :  { %v135_v55 = vadd.f32 %v134_v53, %v6538_v51  ;;  %v200_v56 = vadd.f32 %v199_v54, %v6540_v52 }
  0x88   :  { %vm247_vm1 = vcmp.ge.f32.partialorder %v135_v55, 0.0  ;;  %v279_v57 = vmul.f32 0.01, %v135_v55  ;;  %vm248_vm2 = vcmp.ge.f32.partialorder %v200_v56, 0.0  ;;  %v280_v58 = vmul.f32 0.01, %v200_v56 }
  0x8a   :  { %v311_v59 = vsel %vm247_vm1, %v135_v55, %v279_v57  ;;  %v312_v60 = vsel %vm248_vm2, %v200_v56, %v280_v58  ;;  %v6041_v56 = vld [vmem:[#allocation4 + $0x30c] sm:$0xf] }
  0x8b   :  { %v343_v61 = vpack.c.bf16 %v312_v60, %v311_v59 }
  0x8d   :  { %359 = vst [vmem:[#allocation2] sm:$0xff] %v343_v61  ;;  %v137_v62 = vpop.f32.mrf.mxu0  ;;  %v202_v63 = vpop.f32.mrf.mxu1  ;;  %v5137_v61 = vld [vmem:[#allocation4 + $0x348] sm:$0xf0] }
  0x8e   :  { %v138_v2 = vadd.f32 %v137_v62, %v6538_v51  ;;  %v203_v3 = vadd.f32 %v202_v63, %v6540_v52  ;;  %v6560_v35 = vpop.f32.mrf.mxu3  ;;  %v161_v57 = vpop.f32.mrf.mxu2  ;;  %v6057_v62 = vld [vmem:[#allocation4 + $0x70c] sm:$0xf]  ;;  %v5140_v1 = vor.u32 %v6041_v56, %v5137_v61 }
  0x8f   :  { %v162_v4 = vadd.f32 %v161_v57, %v6538_v51  ;;  %v6039_v57 = vld [vmem:[#allocation4 + $0x28c] sm:$0xf] }
  0x90   :  { %vm249_vm3 = vcmp.ge.f32.partialorder %v138_v2, 0.0  ;;  %v281_v11 = vmul.f32 0.01, %v138_v2  ;;  %vm250_vm4 = vcmp.ge.f32.partialorder %v203_v3, 0.0  ;;  %v282_v12 = vmul.f32 0.01, %v203_v3  ;;  %1386 = vmatpush.bf16.msra.mxu0 %v5140_v1 }
  0x91   :  { %vm265_vm11 = vcmp.ge.f32.partialorder %v162_v4, 0.0 }
  0x92   :  { %v313_v13 = vsel %vm249_vm3, %v138_v2, %v281_v11  ;;  %v314_v14 = vsel %vm250_vm4, %v203_v3, %v282_v12  ;;  %v5201_v2 = vld [vmem:[#allocation4 + $0x748] sm:$0xf0]  ;;  %v297_v11 = vmul.f32 0.01, %v162_v4 }
  0x93   :  { %v344_v15 = vpack.c.bf16 %v314_v14, %v313_v13  ;;  %v5204_v3 = vor.u32 %v6057_v62, %v5201_v2 }
  0x94   :  { %v5981_v30 = vld [vmem:[#allocation2 + $0x4] sm:$0xf]  ;;  %v4895_v32 = vld [vmem:[#allocation2] sm:$0xf] }
  0x95   :  { %360 = vst [vmem:[#allocation2 + $0x8] sm:$0xff] %v344_v15  ;;  %v140_v17 = vpop.f32.mrf.mxu0  ;;  %v205_v5 = vpop.f32.mrf.mxu1  ;;  %1435 = vmatpush.bf16.msra.mxu1 %v5204_v3 }
  0x96   :  { %v141_v20 = vadd.f32 %v140_v17, %v6538_v51  ;;  %v206_v21 = vadd.f32 %v205_v5, %v6540_v52  ;;  %v226_v58 = vpop.f32.mrf.mxu3  ;;  %v329_v17 = vsel %vm265_vm11, %v162_v4, %v297_v11  ;;  %v164_v22 = vpop.f32.mrf.mxu2 }
  0x97   :  { %v227_v6 = vadd.f32 %v226_v58, %v6540_v52  ;;  %v5129_v58 = vld [vmem:[#allocation4 + $0x2c8] sm:$0xf0] }
  0x98   :  { %vm251_vm5 = vcmp.ge.f32.partialorder %v141_v20, 0.0  ;;  %v283_v26 = vmul.f32 0.01, %v141_v20  ;;  %vm252_vm6 = vcmp.ge.f32.partialorder %v206_v21, 0.0  ;;  %v284_v27 = vmul.f32 0.01, %v206_v21 }
  0x99   :  { %v298_v12 = vmul.f32 0.01, %v227_v6  ;;  %vm266_vm12 = vcmp.ge.f32.partialorder %v227_v6, 0.0  ;;  %v5132_v62 = vor.u32 %v6039_v57, %v5129_v58  ;;  %v5111_v57 = vld [vmem:[#allocation4 + $0x188] sm:$0xf] }
  0x9a   :  { %v315_v28 = vsel %vm251_vm5, %v141_v20, %v283_v26  ;;  %v316_v29 = vsel %vm252_vm6, %v206_v21, %v284_v27 }
  0x9b   :  { %v345_v31 = vpack.c.bf16 %v316_v29, %v315_v28  ;;  %v330_v5 = vsel %vm266_vm12, %v227_v6, %v298_v12  ;;  %v5127_v29 = vld [vmem:[#allocation4 + $0x288] sm:$0xf]  ;;  %1387 = vmatpush.bf16.msra.mxu0 %v5132_v62 }
  0x9c   :  { %v4897_v33 = vld [vmem:[#allocation2 + $0x8] sm:$0xf0]  ;;  %v5982_v34 = vld [vmem:[#allocation2 + $0x4] sm:$0xf0]  ;;  %v352_v21 = vpack.c.bf16 %v330_v5, %v329_v17 }
  0x9d   :  { %v6562_v36 = vor.u32 %v5982_v34, %v4895_v32  ;;  %v6564_v37 = vor.u32 %v5981_v30, %v4897_v33  ;;  %361 = vst [vmem:[#allocation2 + $0x10] sm:$0xff] %v345_v31  ;;  %v143_v38 = vpop.f32.mrf.mxu0  ;;  %v208_v39 = vpop.f32.mrf.mxu1  ;;  %v6040_v30 = vld [vmem:[#allocation4 + $0x2c4] sm:$0xf0] }
  0x9e   :  { %v144_v42 = vadd.f32 %v143_v38, %v6538_v51  ;;  %v209_v43 = vadd.f32 %v208_v39, %v6540_v52  ;;  %v229_v23 = vpop.f32.mrf.mxu3  ;;  %v5128_v33 = vor.u32 %v6040_v30, %v5127_v29  ;;  %v5191_v34 = vld [vmem:[#allocation4 + $0x688] sm:$0xf]  ;;  %368 = vst [vmem:[#allocation2 + $0x48] sm:$0xff] %v352_v21  ;;  %v167_v45 = vpop.f32.mrf.mxu2  ;;  %v6037_v21 = vld [vmem:[#allocation4 + $0x20c] sm:$0xf] }
  0x9f   :  { %8352 = vst [vmem:[#allocation10_spill] sm:$0xff] %v6562_v36  ;;  %757 = vmatmul.bf16.vlgmr.msrb.gmra.mxu2 %v6562_v36  ;;  %806 = vmatmul.bf16.vlgmr.msrb.gmra.mxu3 %v6564_v37  ;;  %v6056_v38 = vld [vmem:[#allocation4 + $0x6c4] sm:$0xf0] }
  0xa0   :  { %8353 = vst [vmem:[#allocation11_spill] sm:$0xff] %v6564_v37  ;;  %vm253_vm7 = vcmp.ge.f32.partialorder %v144_v42, 0.0  ;;  %v285_v49 = vmul.f32 0.01, %v144_v42  ;;  %vm254_vm8 = vcmp.ge.f32.partialorder %v209_v43, 0.0  ;;  %855 = vmatmul.bf16.vlgmr.msrb.gmra.mxu0 %v6562_v36  ;;  %904 = vmatmul.bf16.vlgmr.msrb.gmra.mxu1 %v6564_v37  ;;  %v5192_v39 = vor.u32 %v6056_v38, %v5191_v34 }
  0xa1   :  { %v286_v50 = vmul.f32 0.01, %v209_v43  ;;  %1289 = vmatpush.bf16.msra.mxu2 %v5128_v33  ;;  %v6054_v17 = vld [vmem:[#allocation4 + $0x644] sm:$0xf0] }
  0xa2   :  { %v317_v53 = vsel %vm253_vm7, %v144_v42, %v285_v49  ;;  %1338 = vmatpush.bf16.msra.mxu3 %v5192_v39  ;;  %v5175_v62 = vld [vmem:[#allocation4 + $0x588] sm:$0xf] }
  0xa3   :  { %v318_v54 = vsel %vm254_vm8, %v209_v43, %v286_v50  ;;  %v165_v50 = vadd.f32 %v164_v22, %v6538_v51  ;;  %v5121_v22 = vld [vmem:[#allocation4 + $0x248] sm:$0xf0] }
  0xa4   :  { %v346_v55 = vpack.c.bf16 %v318_v54, %v317_v53  ;;  %v5983_v15 = vld [vmem:[#allocation2 + $0x14] sm:$0xf]  ;;  %v4903_v18 = vld [vmem:[#allocation2 + $0x10] sm:$0xf]  ;;  %v230_v53 = vadd.f32 %v229_v23, %v6540_v52  ;;  %v5124_v30 = vor.u32 %v6037_v21, %v5121_v22  ;;  %v5177_v21 = vld [vmem:[#allocation4 + $0x5c8] sm:$0xf0] }
  0xa5   :  { %v146_v59 = vpop.f32.mrf.mxu0  ;;  %v211_v60 = vpop.f32.mrf.mxu1  ;;  %v6603_v54 = vld [vmem:[%s8296_s1 + $0x30] sm:$0xff]  ;;  %vm267_vm15 = vcmp.ge.f32.partialorder %v165_v50, 0.0 }
  0xa6   :  { %362 = vst [vmem:[#allocation2 + $0x18] sm:$0xff] %v346_v55  ;;  %v147_v63 = vadd.f32 %v146_v59, %v6538_v51  ;;  %v212_v0 = vadd.f32 %v211_v60, %v6540_v52  ;;  %v232_v46 = vpop.f32.mrf.mxu3  ;;  %v6055_v59 = vld [vmem:[#allocation4 + $0x68c] sm:$0xf]  ;;  %v168_v60 = vadd.f32 %v167_v45, %v6538_v51  ;;  %977 = vperm.xlu0 %6269, %v6603_v54   ;;  %vm268_vm0 = vcmp.ge.f32.partialorder %v230_v53, 0.0 }
  0xa7   :  { %v233_v61 = vadd.f32 %v232_v46, %v6540_v52  ;;  %v300_v6 = vmul.f32 0.01, %v230_v53  ;;  %1388 = vmatpush.bf16.msra.mxu0 %v5124_v30 }
  0xa8   :  { %vm255_vm9 = vcmp.ge.f32.partialorder %v147_v63, 0.0  ;;  %v287_v8 = vmul.f32 0.01, %v147_v63  ;;  %vm256_vm10 = vcmp.ge.f32.partialorder %v212_v0, 0.0  ;;  %v288_v10 = vmul.f32 0.01, %v212_v0 }
  0xa9   :  { %vm269_vm3 = vcmp.ge.f32.partialorder %v168_v60, 0.0  ;;  %vm270_vm4 = vcmp.ge.f32.partialorder %v233_v61, 0.0 }
  0xaa   :  { %v319_v13 = vsel %vm255_vm9, %v147_v63, %v287_v8  ;;  %v320_v14 = vsel %vm256_vm10, %v212_v0, %v288_v10  ;;  %v5193_v63 = vld [vmem:[#allocation4 + $0x6c8] sm:$0xf0]  ;;  %v299_v0 = vmul.f32 0.01, %v165_v50  ;;  %v5119_v8 = vld [vmem:[#allocation4 + $0x208] sm:$0xf] }
  0xab   :  { %v347_v16 = vpack.c.bf16 %v320_v14, %v319_v13  ;;  %v5196_v3 = vor.u32 %v6055_v59, %v5193_v63  ;;  %v6038_v10 = vld [vmem:[#allocation4 + $0x244] sm:$0xf0] }
  0xac   :  { %v331_v4 = vsel %vm267_vm15, %v165_v50, %v299_v0 }
  0xad   :  { %v4905_v19 = vld [vmem:[#allocation2 + $0x18] sm:$0xf0]  ;;  %v5984_v20 = vld [vmem:[#allocation2 + $0x14] sm:$0xf0]  ;;  %363 = vst [vmem:[#allocation2 + $0x20] sm:$0xff] %v347_v16  ;;  %v149_v27 = vpop.f32.mrf.mxu0  ;;  %v214_v28 = vpop.f32.mrf.mxu1  ;;  %1436 = vmatpush.bf16.msra.mxu1 %v5196_v3 }
  0xae   :  { %v6588_v25 = vor.u32 %v5984_v20, %v4903_v18  ;;  %v6590_v26 = vor.u32 %v5983_v15, %v4905_v19  ;;  %v150_v31 = vadd.f32 %v149_v27, %v6538_v51  ;;  %v215_v32 = vadd.f32 %v214_v28, %v6540_v52  ;;  %v5183_v16 = vld [vmem:[#allocation4 + $0x608] sm:$0xf]  ;;  %v6035_v3 = vld [vmem:[#allocation4 + $0x18c] sm:$0xf] }
  0xaf   :  { %v5120_v15 = vor.u32 %v6038_v10, %v5119_v8  ;;  %v332_v18 = vsel %vm268_vm0, %v230_v53, %v300_v6  ;;  %v5184_v19 = vor.u32 %v6054_v17, %v5183_v16  ;;  %v301_v20 = vmul.f32 0.01, %v168_v60  ;;  %v6641_v17 = vld [vmem:[%s8296_s1 + $0x38] sm:$0xff] }
  0xb0   :  { %8354 = vst [vmem:[#allocation12_spill] sm:$0xff] %v6590_v26  ;;  %762 = vmatmul.bf16.gmra.mxu2 %v6588_v25  ;;  %811 = vmatmul.bf16.gmra.mxu3 %v6590_v26  ;;  %vm257_vm13 = vcmp.ge.f32.partialorder %v150_v31, 0.0  ;;  %v289_v40 = vmul.f32 0.01, %v150_v31  ;;  %vm258_vm14 = vcmp.ge.f32.partialorder %v215_v32, 0.0  ;;  %v6613_v28 = vadd.f32 %v6560_v35, %v6540_v52 }
  0xb1   :  { %v290_v41 = vmul.f32 0.01, %v215_v32  ;;  %860 = vmatmul.bf16.gmra.mxu0 %v6588_v25  ;;  %909 = vmatmul.bf16.gmra.mxu1 %v6590_v26  ;;  %v353_v29 = vpack.c.bf16 %v332_v18, %v331_v4  ;;  %v6632_v4 = vld [vmem:[%s8296_s1 + $0x20] sm:$0xff] }
  0xb2   :  { %v321_v42 = vsel %vm257_vm13, %v150_v31, %v289_v40  ;;  %1290 = vmatpush.bf16.msra.mxu2 %v5120_v15  ;;  %v170_v31 = vpop.f32.mrf.mxu2  ;;  %1339 = vmatpush.bf16.msra.mxu3 %v5184_v19  ;;  %v333_v40 = vsel %vm269_vm3, %v168_v60, %v301_v20  ;;  %vm264_vm9 = vcmp.ge.f32.partialorder %v6613_v28, 0.0  ;;  %v6051_v20 = vld [vmem:[#allocation4 + $0x58c] sm:$0xf] }
  0xb3   :  { %v322_v43 = vsel %vm258_vm14, %v215_v32, %v290_v41  ;;  %v235_v32 = vpop.f32.mrf.mxu3  ;;  %v302_v41 = vmul.f32 0.01, %v233_v61  ;;  %369 = vst [vmem:[#allocation2 + $0x50] sm:$0xff] %v353_v29  ;;  %v171_v45 = vadd.f32 %v170_v31, %v6538_v51  ;;  %967 = vperm.xlu2 %6271, %v6632_v4   ;;  %982 = vperm.xlu1 %6270, %v6641_v17   ;;  %v6649_v31 = vld [vmem:[%s8296_s1 + $0x28] sm:$0xff] }
  0xb4   :  { %v348_v44 = vpack.c.bf16 %v322_v43, %v321_v42  ;;  %v5985_v11 = vld [vmem:[#allocation2 + $0x24] sm:$0xf]  ;;  %v4911_v12 = vld [vmem:[#allocation2 + $0x20] sm:$0xf]  ;;  %v6053_v42 = vld [vmem:[#allocation4 + $0x60c] sm:$0xf] }
  0xb5   :  { %v152_v47 = vpop.f32.mrf.mxu0  ;;  %v217_v49 = vpop.f32.mrf.mxu1  ;;  %v334_v46 = vsel %vm270_vm4, %v233_v61, %v302_v41  ;;  %vm271_vm7 = vcmp.ge.f32.partialorder %v171_v45, 0.0  ;;  %v6036_v61 = vld [vmem:[#allocation4 + $0x1c4] sm:$0xf0] }
  0xb6   :  { %364 = vst [vmem:[#allocation2 + $0x28] sm:$0xff] %v348_v44  ;;  %v153_v55 = vadd.f32 %v152_v47, %v6538_v51  ;;  %v218_v56 = vadd.f32 %v217_v49, %v6540_v52  ;;  %v5185_v44 = vld [vmem:[#allocation4 + $0x648] sm:$0xf0]  ;;  %v236_v49 = vadd.f32 %v235_v32, %v6540_v52 }
  0xb7   :  { %v5188_v47 = vor.u32 %v6053_v42, %v5185_v44 }
  0xb8   :  { %vm259_vm1 = vcmp.ge.f32.partialorder %v153_v55, 0.0  ;;  %v291_v1 = vmul.f32 0.01, %v153_v55  ;;  %vm260_vm2 = vcmp.ge.f32.partialorder %v218_v56, 0.0  ;;  %v292_v2 = vmul.f32 0.01, %v218_v56 }
  0xb9   :  { %1437 = vmatpush.bf16.msra.mxu1 %v5188_v47  ;;  %vm272_vm8 = vcmp.ge.f32.partialorder %v236_v49, 0.0  ;;  %v304_v60 = vmul.f32 0.01, %v236_v49 }
  0xba   :  { %v323_v13 = vsel %vm259_vm1, %v153_v55, %v291_v1  ;;  %v324_v14 = vsel %vm260_vm2, %v218_v56, %v292_v2  ;;  %v354_v55 = vpack.c.bf16 %v334_v46, %v333_v40  ;;  %v303_v56 = vmul.f32 0.01, %v171_v45  ;;  %v6052_v2 = vld [vmem:[#allocation4 + $0x5c4] sm:$0xf0]  ;;  %v173_v10 = vpop.f32.mrf.mxu2 }
  0xbb   :  { %v349_v5 = vpack.c.bf16 %v324_v14, %v323_v13  ;;  %v5112_v1 = vor.u32 %v6036_v61, %v5111_v57  ;;  %v336_v6 = vsel %vm272_vm8, %v236_v49, %v304_v60  ;;  %v5176_v8 = vor.u32 %v6052_v2, %v5175_v62  ;;  %972 = vperm.xlu2 %6271, %v6649_v31   ;;  %v6034_v57 = vld [vmem:[#allocation4 + $0x144] sm:$0xf0] }
  0xbc   :  { %370 = vst [vmem:[#allocation2 + $0x58] sm:$0xff] %v354_v55  ;;  %v335_v0 = vsel %vm271_vm7, %v171_v45, %v303_v56  ;;  %v174_v15 = vadd.f32 %v173_v10, %v6538_v51  ;;  %v5103_v56 = vld [vmem:[#allocation4 + $0x108] sm:$0xf]  ;;  %v5169_v10 = vld [vmem:[#allocation4 + $0x548] sm:$0xf0] }
  0xbd   :  { %v4913_v23 = vld [vmem:[#allocation2 + $0x28] sm:$0xf0]  ;;  %v5986_v27 = vld [vmem:[#allocation2 + $0x24] sm:$0xf0]  ;;  %365 = vst [vmem:[#allocation2 + $0x30] sm:$0xff] %v349_v5  ;;  %v155_v38 = vpop.f32.mrf.mxu0  ;;  %v220_v39 = vpop.f32.mrf.mxu1  ;;  %v355_v14 = vpack.c.bf16 %v336_v6, %v335_v0  ;;  %1291 = vmatpush.bf16.msra.mxu2 %v5112_v1  ;;  %1340 = vmatpush.bf16.msra.mxu3 %v5176_v8  ;;  %v5104_v61 = vor.u32 %v6034_v57, %v5103_v56 }
  0xbe   :  { %v6615_v33 = vor.u32 %v5986_v27, %v4911_v12  ;;  %v6617_v34 = vor.u32 %v5985_v11, %v4913_v23  ;;  %v156_v35 = vadd.f32 %v155_v38, %v6538_v51  ;;  %v221_v43 = vadd.f32 %v220_v39, %v6540_v52  ;;  %v238_v11 = vpop.f32.mrf.mxu3  ;;  %v5113_v12 = vld [vmem:[#allocation4 + $0x1c8] sm:$0xf0]  ;;  %v6050_v62 = vld [vmem:[#allocation4 + $0x544] sm:$0xf0] }
  0xbf   :  { %v239_v16 = vadd.f32 %v238_v11, %v6540_v52  ;;  %v296_v5 = vmul.f32 0.01, %v6613_v28  ;;  %v5116_v19 = vor.u32 %v6035_v3, %v5113_v12  ;;  %371 = vst [vmem:[#allocation2 + $0x60] sm:$0xff] %v355_v14  ;;  %vm273_vm10 = vcmp.ge.f32.partialorder %v174_v15, 0.0  ;;  %v5105_v0 = vld [vmem:[#allocation4 + $0x148] sm:$0xf0] }
  0xc0   :  { %8355 = vst [vmem:[#allocation13_spill] sm:$0xff] %v6615_v33  ;;  %767 = vmatmul.bf16.gmra.mxu2 %v6615_v33  ;;  %816 = vmatmul.bf16.gmra.mxu3 %v6617_v34  ;;  %vm261_vm5 = vcmp.ge.f32.partialorder %v156_v35, 0.0  ;;  %v293_v50 = vmul.f32 0.01, %v156_v35  ;;  %vm262_vm6 = vcmp.ge.f32.partialorder %v221_v43, 0.0  ;;  %v5180_v23 = vor.u32 %v6051_v20, %v5177_v21  ;;  %v6668_v6 = vld [vmem:[%s8296_s1 + $0x48] sm:$0xff] }
  0xc1   :  { %8356 = vst [vmem:[#allocation14_spill] sm:$0xff] %v6617_v34  ;;  %v294_v53 = vmul.f32 0.01, %v221_v43  ;;  %865 = vmatmul.bf16.gmra.mxu0 %v6615_v33  ;;  %914 = vmatmul.bf16.gmra.mxu1 %v6617_v34  ;;  %v305_v22 = vmul.f32 0.01, %v174_v15  ;;  %vm274_vm11 = vcmp.ge.f32.partialorder %v239_v16, 0.0  ;;  %v328_v32 = vsel %vm264_vm9, %v6613_v28, %v296_v5 }
  0xc2   :  { %v325_v58 = vsel %vm261_vm5, %v156_v35, %v293_v50  ;;  %v306_v29 = vmul.f32 0.01, %v239_v16  ;;  %1389 = vmatpush.bf16.msra.mxu0 %v5116_v19  ;;  %1438 = vmatpush.bf16.msra.mxu1 %v5180_v23  ;;  %v176_v45 = vpop.f32.mrf.mxu2  ;;  %v6049_v8 = vld [vmem:[#allocation4 + $0x50c] sm:$0xf]  ;;  %v6674_v12 = vld [vmem:[%s8296_s1 + $0x50] sm:$0xff] }
  0xc3   :  { %v326_v59 = vsel %vm262_vm6, %v221_v43, %v294_v53  ;;  %v337_v30 = vsel %vm273_vm10, %v174_v15, %v305_v22  ;;  %v177_v50 = vadd.f32 %v176_v45, %v6538_v51  ;;  %1292 = vmatpush.bf16.msra.mxu2 %v5104_v61  ;;  %992 = vperm.xlu0 %6269, %v6668_v6   ;;  %v4929_v19 = vld [vmem:[#allocation2 + $0x48] sm:$0xf0]  ;;  %v5990_v22 = vld [vmem:[#allocation2 + $0x44] sm:$0xf0]  ;;  %v4937_v56 = vld [vmem:[#allocation2 + $0x58] sm:$0xf0] }
  0xc4   :  { %v350_v63 = vpack.c.bf16 %v326_v59, %v325_v58  ;;  %v338_v39 = vsel %vm274_vm11, %v239_v16, %v306_v29  ;;  %v5987_v40 = vld [vmem:[#allocation2 + $0x34] sm:$0xf]  ;;  %v4919_v35 = vld [vmem:[#allocation2 + $0x30] sm:$0xf]  ;;  %v5167_v58 = vld [vmem:[#allocation4 + $0x508] sm:$0xf]  ;;  %v5172_v11 = vor.u32 %v6049_v8, %v5169_v10  ;;  %997 = vperm.xlu1 %6270, %v6674_v12  }
  0xc5   :  { %v158_v13 = vpop.f32.mrf.mxu0  ;;  %v356_v42 = vpack.c.bf16 %v338_v39, %v337_v30  ;;  %vm275_vm13 = vcmp.ge.f32.partialorder %v177_v50, 0.0  ;;  %v307_v53 = vmul.f32 0.01, %v177_v50  ;;  %v5168_v2 = vor.u32 %v6050_v62, %v5167_v58  ;;  %v6047_v45 = vld [vmem:[#allocation4 + $0x48c] sm:$0xf] }
  0xc6   :  { %366 = vst [vmem:[#allocation2 + $0x38] sm:$0xff] %v350_v63  ;;  %v159_v18 = vadd.f32 %v158_v13, %v6538_v51  ;;  %v241_v46 = vpop.f32.mrf.mxu3  ;;  %v6033_v63 = vld [vmem:[#allocation4 + $0x10c] sm:$0xf]  ;;  %1439 = vmatpush.bf16.msra.mxu1 %v5172_v11  ;;  %v5992_v57 = vld [vmem:[#allocation2 + $0x54] sm:$0xf0] }
  0xc7   :  { %v242_v28 = vadd.f32 %v241_v46, %v6540_v52  ;;  %372 = vst [vmem:[#allocation2 + $0x68] sm:$0xff] %v356_v42  ;;  %v339_v59 = vsel %vm275_vm13, %v177_v50, %v307_v53  ;;  %v5108_v3 = vor.u32 %v6033_v63, %v5105_v0  ;;  %1341 = vmatpush.bf16.msra.mxu3 %v5168_v2  ;;  %v5097_v42 = vld [vmem:[#allocation4 + $0xc8] sm:$0xf0]  ;;  %v5991_v53 = vld [vmem:[#allocation2 + $0x54] sm:$0xf] }
  0xc8   :  { %vm263_vm12 = vcmp.ge.f32.partialorder %v159_v18, 0.0  ;;  %v295_v27 = vmul.f32 0.01, %v159_v18  ;;  %v5161_v46 = vld [vmem:[#allocation4 + $0x4c8] sm:$0xf0] }
  0xc9   :  { %vm276_vm14 = vcmp.ge.f32.partialorder %v242_v28, 0.0  ;;  %v308_v55 = vmul.f32 0.01, %v242_v28  ;;  %1390 = vmatpush.bf16.msra.mxu0 %v5108_v3  ;;  %v5164_v50 = vor.u32 %v6047_v45, %v5161_v46  ;;  %v6030_v61 = vld [vmem:[#allocation4 + $0x44] sm:$0xf0] }
  0xca   :  { %v327_v38 = vsel %vm263_vm12, %v159_v18, %v295_v27  ;;  %v179_v13 = vpop.f32.mrf.mxu2  ;;  %v5151_v62 = vld [vmem:[#allocation4 + $0x408] sm:$0xf]  ;;  %v5089_v2 = vld [vmem:[#allocation4 + $0x48] sm:$0xf0] }
  0xcb   :  { %v351_v41 = vpack.c.bf16 %v328_v32, %v327_v38  ;;  %v340_v60 = vsel %vm276_vm14, %v242_v28, %v308_v55  ;;  %v180_v15 = vadd.f32 %v179_v13, %v6538_v51  ;;  %v6032_v32 = vld [vmem:[#allocation4 + $0xc4] sm:$0xf0]  ;;  %v6696_v28 = vld [vmem:[%s8296_s1 + $0x60] sm:$0xff]  ;;  %1440 = vmatpush.bf16.msra.mxu1 %v5164_v50  ;;  %v4935_v55 = vld [vmem:[#allocation2 + $0x50] sm:$0xf] }
  0xcc   :  { %v357_v1 = vpack.c.bf16 %v340_v60, %v339_v59  ;;  %v5159_v38 = vld [vmem:[#allocation4 + $0x488] sm:$0xf]  ;;  %1007 = vperm.xlu0 %6269, %v6696_v28   ;;  %v6699_v58 = vor.u32 %v5992_v57, %v4935_v55  ;;  %v6701_v59 = vor.u32 %v5991_v53, %v4937_v56  ;;  %v6045_v11 = vld [vmem:[#allocation4 + $0x40c] sm:$0xf]  ;;  %v6397_v57 = vmov 1  }
  0xcd   :  { %v4921_v43 = vld [vmem:[#allocation2 + $0x38] sm:$0xf0]  ;;  %v5988_v44 = vld [vmem:[#allocation2 + $0x34] sm:$0xf0]  ;;  %367 = vst [vmem:[#allocation2 + $0x40] sm:$0xff] %v351_v41  ;;  %vm277_vm15 = vcmp.ge.f32.partialorder %v180_v15, 0.0 }
  0xce   :  { %v6655_v47 = vor.u32 %v5988_v44, %v4919_v35  ;;  %v6657_v49 = vor.u32 %v5987_v40, %v4921_v43  ;;  %373 = vst [vmem:[#allocation2 + $0x70] sm:$0xff] %v357_v1  ;;  %v244_v14 = vpop.f32.mrf.mxu3  ;;  %v309_v5 = vmul.f32 0.01, %v180_v15  ;;  %v6048_v40 = vld [vmem:[#allocation4 + $0x4c4] sm:$0xf0]  ;;  %v6690_v44 = vld [vmem:[%s8296_s1 + $0x40] sm:$0xff] }
  0xcf   :  { %v245_v16 = vadd.f32 %v244_v14, %v6540_v52  ;;  %v5095_v52 = vld [vmem:[#allocation4 + $0x88] sm:$0xf]  ;;  %v6031_v41 = vld [vmem:[#allocation4 + $0x8c] sm:$0xf]  ;;  %v5160_v35 = vor.u32 %v6048_v40, %v5159_v38  ;;  %987 = vperm.xlu2 %6271, %v6690_v44   ;;  %v6730_v38 = vld [vmem:[%s8296_s1 + $0x78] sm:$0xff] }
  0xd0   :  { %772 = vmatmul.bf16.gmra.mxu2 %v6655_v47  ;;  %821 = vmatmul.bf16.gmra.mxu3 %v6657_v49  ;;  %v341_v20 = vsel %vm277_vm15, %v180_v15, %v309_v5  ;;  %v5096_v39 = vor.u32 %v6032_v32, %v5095_v52  ;;  %v5100_v43 = vor.u32 %v6031_v41, %v5097_v42  ;;  %v5087_v60 = vld [vmem:[#allocation4 + $0x8] sm:$0xf]  ;;  %v6029_v1 = vld [vmem:[#allocation4 + $0xc] sm:$0xf]  ;;  %v5993_v15 = vld [vmem:[#allocation2 + $0x64] sm:$0xf] }
  0xd1   :  { %870 = vmatmul.bf16.gmra.mxu0 %v6655_v47  ;;  %919 = vmatmul.bf16.gmra.mxu1 %v6657_v49  ;;  %vm278_vm0 = vcmp.ge.f32.partialorder %v245_v16, 0.0  ;;  %v310_v18 = vmul.f32 0.01, %v245_v16  ;;  %v5088_v63 = vor.u32 %v6030_v61, %v5087_v60  ;;  %v6046_v0 = vld [vmem:[#allocation4 + $0x444] sm:$0xf0]  ;;  %v5092_v8 = vor.u32 %v6029_v1, %v5089_v2  ;;  %v6746_v2 = vld [vmem:[%s8296_s1 + $0x70] sm:$0xff] }
  0xd2   :  { %1293 = vmatpush.bf16.msra.mxu2 %v5096_v39  ;;  %1342 = vmatpush.bf16.msra.mxu3 %v5160_v35  ;;  %v5152_v3 = vor.u32 %v6046_v0, %v5151_v62  ;;  %v6710_v10 = vld [vmem:[%s8296_s1 + $0x68] sm:$0xff]  ;;  %v6092_v52 = vld [vmem:[#allocation4 + $0x7cc] sm:$0xf0]  ;;  %v6075_v39 = vld [vmem:[#allocation4 + $0x394] sm:$0xf] }
  0xd3   :  { %v342_v21 = vsel %vm278_vm0, %v245_v16, %v310_v18  ;;  %1391 = vmatpush.bf16.msra.mxu0 %v5100_v43  ;;  %v5153_v13 = vld [vmem:[#allocation4 + $0x448] sm:$0xf0]  ;;  %1012 = vperm.xlu1 %6270, %v6710_v10   ;;  %v4943_v16 = vld [vmem:[#allocation2 + $0x60] sm:$0xf]  ;;  %v5994_v18 = vld [vmem:[#allocation2 + $0x64] sm:$0xf0] }
  0xd4   :  { %v5989_v23 = vld [vmem:[#allocation2 + $0x44] sm:$0xf]  ;;  %v4927_v27 = vld [vmem:[#allocation2 + $0x40] sm:$0xf]  ;;  %v358_v29 = vpack.c.bf16 %v342_v21, %v341_v20  ;;  %v5156_v14 = vor.u32 %v6045_v11, %v5153_v13  ;;  %v4945_v5 = vld [vmem:[#allocation2 + $0x68] sm:$0xf0]  ;;  %1022 = vperm.xlu0 %6269, %v6730_v38  }
  0xd5   :  { %v6679_v30 = vor.u32 %v5990_v22, %v4927_v27  ;;  %v6681_v51 = vor.u32 %v5989_v23, %v4929_v19  ;;  %v6713_v19 = vor.u32 %v5994_v18, %v4943_v16  ;;  %v6715_v20 = vor.u32 %v5993_v15, %v4945_v5  ;;  %v6720_v21 = vld [vmem:[%s8296_s1 + $0x58] sm:$0xff]  ;;  %v5271_v22 = vld [vmem:[#allocation4 + $0x390] sm:$0xf]  ;;  %v5273_v40 = vld [vmem:[#allocation4 + $0x3d0] sm:$0xf0]  ;;  %v948_v16 = vpop.permute.xlu0 %947 }
  0xd6   :  { %374 = vst [vmem:[#allocation2 + $0x78] sm:$0xff] %v358_v29  ;;  %1294 = vmatpush.bf16.msra.mxu2 %v5088_v63  ;;  %1343 = vmatpush.bf16.msra.mxu3 %v5152_v3  ;;  %v6076_v23 = vld [vmem:[#allocation4 + $0x3cc] sm:$0xf0]  ;;  %v6091_v41 = vld [vmem:[#allocation4 + $0x794] sm:$0xf]  ;;  %v5276_v35 = vor.u32 %v6075_v39, %v5273_v40 }
  0xd7   :  { %1392 = vmatpush.bf16.msra.mxu0 %v5092_v8  ;;  %1441 = vmatpush.bf16.msra.mxu1 %v5156_v14  ;;  %8357 = vst [vmem:[#allocation15_spill] sm:$0xff] %v6713_v19  ;;  %v5272_v27 = vor.u32 %v6076_v23, %v5271_v22  ;;  %v5335_v29 = vld [vmem:[#allocation4 + $0x790] sm:$0xf]  ;;  %v5995_v42 = vld [vmem:[#allocation2 + $0x74] sm:$0xf] }
  0xd8   :  { %8358 = vst [vmem:[#allocation16_spill] sm:$0xff] %v6715_v20  ;;  %1002 = vperm.xlu2 %6271, %v6720_v21   ;;  %v5336_v32 = vor.u32 %v6092_v52, %v5335_v29  ;;  %v5337_v43 = vld [vmem:[#allocation4 + $0x7d0] sm:$0xf0]  ;;  %v4951_v45 = vld [vmem:[#allocation2 + $0x70] sm:$0xf] }
  0xd9   :  { %v5340_v53 = vor.u32 %v6091_v41, %v5337_v43  ;;  %v5263_v60 = vld [vmem:[#allocation4 + $0x310] sm:$0xf]  ;;  %v503_v3 = vld [vmem:[%s8300_s5] sm:$0x3]  ;;  %v5265_v8 = vld [vmem:[#allocation4 + $0x350] sm:$0xf0] }
  0xda   :  { %1809 = vmatpush.bf16.msrb.mxu2 %v5272_v27  ;;  %1858 = vmatpush.bf16.msrb.mxu3 %v5336_v32  ;;  %v6074_v61 = vld [vmem:[#allocation4 + $0x34c] sm:$0xf0]  ;;  %v6089_v11 = vld [vmem:[#allocation4 + $0x714] sm:$0xf]  ;;  %v6759_v23 = vperm.slane %v503_v3, 0 }
  0xdb   :  { %1907 = vmatpush.bf16.msrb.mxu0 %v5276_v35  ;;  %1956 = vmatpush.bf16.msrb.mxu1 %v5340_v53  ;;  %v5264_v62 = vor.u32 %v6074_v61, %v5263_v60  ;;  %v5327_v63 = vld [vmem:[#allocation4 + $0x710] sm:$0xf]  ;;  %v5329_v14 = vld [vmem:[#allocation4 + $0x750] sm:$0xf0] }
  0xdc   :  { %6272 = vset.pattern.permute.xlu1 %v6397_v57  ;;  %6274 = vset.pattern.permute.xlu0 %v6397_v57  ;;  %v6090_v0 = vld [vmem:[#allocation4 + $0x74c] sm:$0xf0]  ;;  %v5332_v15 = vor.u32 %v6089_v11, %v5329_v14  ;;  %v6071_v60 = vld [vmem:[#allocation4 + $0x294] sm:$0xf] }
  0xdd   :  { %v4953_v46 = vld [vmem:[#allocation2 + $0x78] sm:$0xf0]  ;;  %v5996_v50 = vld [vmem:[#allocation2 + $0x74] sm:$0xf0]  ;;  %1484 = vperm.xlu1 %6272, %v6549_v9   ;;  %1492 = vperm.xlu0 %6274, %v6573_v48   ;;  %v5328_v1 = vor.u32 %v6090_v0, %v5327_v63  ;;  %v6073_v9 = vld [vmem:[#allocation4 + $0x314] sm:$0xf]  ;;  %v953_v53 = vpop.permute.xlu0 %952 }
  0xde   :  { %v6733_v55 = vor.u32 %v5996_v50, %v4951_v45  ;;  %v6735_v56 = vor.u32 %v5995_v42, %v4953_v46  ;;  %1810 = vmatpush.bf16.msrb.mxu2 %v5264_v62  ;;  %v5268_v13 = vor.u32 %v6073_v9, %v5265_v8  ;;  %v6753_v48 = vperm.slane %v503_v3, 1  ;;  %v5319_v40 = vld [vmem:[#allocation4 + $0x690] sm:$0xf]  ;;  %v5257_v61 = vld [vmem:[#allocation4 + $0x2d0] sm:$0xf0]  ;;  %v958_v8 = vpop.permute.xlu1 %957 }
  0xdf   :  { %1859 = vmatpush.bf16.msrb.mxu3 %v5328_v1  ;;  %1957 = vmatpush.bf16.msrb.mxu1 %v5332_v15  ;;  %v6088_v41 = vld [vmem:[#allocation4 + $0x6cc] sm:$0xf0]  ;;  %v6087_v62 = vld [vmem:[#allocation4 + $0x694] sm:$0xf] }
  0xe0   :  { %777 = vmatmul.bf16.gmra.mxu2 %v6679_v30  ;;  %826 = vmatmul.bf16.gmra.mxu3 %v6681_v51  ;;  %v5320_v35 = vor.u32 %v6088_v41, %v5319_v40  ;;  %v5321_v63 = vld [vmem:[#allocation4 + $0x6d0] sm:$0xf0] }
  0xe1   :  { %875 = vmatmul.bf16.gmra.mxu0 %v6679_v30  ;;  %924 = vmatmul.bf16.gmra.mxu1 %v6681_v51  ;;  %v5324_v3 = vor.u32 %v6087_v62, %v5321_v63  ;;  %v5313_v62 = vld [vmem:[#allocation4 + $0x650] sm:$0xf0] }
  0xe2   :  { %1017 = vperm.xlu2 %6271, %v6746_v2   ;;  %1908 = vmatpush.bf16.msrb.mxu0 %v5268_v13 }
  0xe3   :  { %1860 = vmatpush.bf16.msrb.mxu3 %v5320_v35  ;;  %1958 = vmatpush.bf16.msrb.mxu1 %v5324_v3 }
  0xe5   :  { %1496 = vperm.xlu1 %6272, %v6585_v7   ;;  %1512 = vperm.xlu0 %6274, %v6641_v17   ;;  %v5255_v7 = vld [vmem:[#allocation4 + $0x290] sm:$0xf] }
  0xe6   :  { %v6072_v17 = vld [vmem:[#allocation4 + $0x2cc] sm:$0xf0] }
  0xe7   :  { %v5256_v29 = vor.u32 %v6072_v17, %v5255_v7 }
  0xe9   :  { %1811 = vmatpush.bf16.msrb.mxu2 %v5256_v29  ;;  %v5311_v29 = vld [vmem:[#allocation4 + $0x610] sm:$0xf] }
  0xea   :  { %6273 = vset.pattern.permute.xlu2 %v6397_v57 }
  0xeb   :  { %1488 = vperm.xlu2 %6273, %v6557_v24   ;;  %v5260_v24 = vor.u32 %v6071_v60, %v5257_v61  ;;  %v6085_v60 = vld [vmem:[#allocation4 + $0x614] sm:$0xf] }
  0xed   :  { %1504 = vperm.xlu1 %6272, %v6649_v31   ;;  %1524 = vperm.xlu0 %6274, %v6674_v12  }
  0xee   :  { %1909 = vmatpush.bf16.msrb.mxu0 %v5260_v24 }
  0xf0   :  { %782 = vmatmul.bf16.gmra.mxu2 %v6699_v58  ;;  %831 = vmatmul.bf16.gmra.mxu3 %v6701_v59 }
  0xf1   :  { %880 = vmatmul.bf16.gmra.mxu0 %v6699_v58  ;;  %929 = vmatmul.bf16.gmra.mxu1 %v6701_v59 }
  0xf3   :  { %1500 = vperm.xlu2 %6273, %v6632_v4   ;;  %v5247_v4 = vld [vmem:[#allocation4 + $0x210] sm:$0xf] }
  0xf5   :  { %1516 = vperm.xlu1 %6272, %v6690_v44   ;;  %1536 = vperm.xlu0 %6274, %v6710_v10  }
  0xfb   :  { %1508 = vperm.xlu2 %6273, %v6603_v54  }
  0xfd   :  { %1528 = vperm.xlu1 %6272, %v6720_v21  }
 0x100   :  { %787 = vmatmul.bf16.gmra.mxu2 %v6713_v19  ;;  %836 = vmatmul.bf16.gmra.mxu3 %v6715_v20 }
 0x101   :  { %885 = vmatmul.bf16.gmra.mxu0 %v6713_v19  ;;  %934 = vmatmul.bf16.gmra.mxu1 %v6715_v20 }
 0x103   :  { %1520 = vperm.xlu2 %6273, %v6668_v6   ;;  %v5239_v6 = vld [vmem:[#allocation4 + $0x190] sm:$0xf] }
 0x105   :  { %1540 = vperm.xlu1 %6272, %v6746_v2  }
 0x10b   :  { %1532 = vperm.xlu2 %6273, %v6696_v28  }
 0x10d   :  { %v968_v3 = vpop.permute.xlu2 %967 }
 0x110   :  { %792 = vmatmul.bf16.gmra.mxu2 %v6733_v55  ;;  %841 = vmatmul.bf16.gmra.mxu3 %v6735_v56 }
 0x111   :  { %890 = vmatmul.bf16.gmra.mxu0 %v6733_v55  ;;  %939 = vmatmul.bf16.gmra.mxu1 %v6735_v56 }
 0x113   :  { %1544 = vperm.xlu2 %6273, %v6730_v38  }
 0x11d   :  { %v856_v5 = vpop.f32.mrf.mxu0  ;;  %v905_v18 = vpop.f32.mrf.mxu1 }
 0x11e   :  { %v857_v22 = vadd.f32 %v856_v5, %v6753_v48 }
 0x120   :  { %1295 = vmatmul.bf16.vlgmr.msra.gmra.mxu2 %v6562_v36  ;;  %1344 = vmatmul.bf16.vlgmr.msra.gmra.mxu3 %v6564_v37  ;;  %v906_v27 = vadd.f32 %v905_v18, %v857_v22  ;;  %v6070_v18 = vld [vmem:[#allocation4 + $0x24c] sm:$0xf0] }
 0x121   :  { %1393 = vmatmul.bf16.vlgmr.msra.gmra.mxu0 %v6562_v36  ;;  %1442 = vmatmul.bf16.vlgmr.msra.gmra.mxu1 %v6564_v37  ;;  %v5248_v22 = vor.u32 %v6070_v18, %v5247_v4 }
 0x122   :  { %v6764_v52 = vmul.f32 %v948_v16, %v906_v27  ;;  %v758_v32 = vpop.f32.mrf.mxu2  ;;  %v807_v39 = vpop.f32.mrf.mxu3 }
 0x123   :  { %v759_v42 = vadd.f32 %v758_v32, %v6759_v23  ;;  %v6086_v32 = vld [vmem:[#allocation4 + $0x64c] sm:$0xf0]  ;;  %1812 = vmatpush.bf16.msrb.mxu2 %v5248_v22 }
 0x124   :  { %v5312_v40 = vor.u32 %v6086_v32, %v5311_v29  ;;  %v6084_v29 = vld [vmem:[#allocation4 + $0x5cc] sm:$0xf0] }
 0x125   :  { %v808_v43 = vadd.f32 %v807_v39, %v759_v42  ;;  %v858_v45 = vpop.f32.mrf.mxu0  ;;  %v907_v46 = vpop.f32.mrf.mxu1 }
 0x126   :  { %v859_v31 = vadd.f32 %v858_v45, %v6753_v48  ;;  %1861 = vmatpush.bf16.msrb.mxu3 %v5312_v40 }
 0x127   :  { %v6770_v50 = vmul.f32 %v948_v16, %v808_v43 }
 0x128   :  { %v908_v57 = vadd.f32 %v907_v46, %v859_v31  ;;  %v963_v46 = vpop.permute.xlu1 %962 }
 0x12a   :  { %v6773_v12 = vmul.f32 %v953_v53, %v908_v57  ;;  %v760_v0 = vpop.f32.mrf.mxu2  ;;  %v809_v1 = vpop.f32.mrf.mxu3  ;;  %v5249_v57 = vld [vmem:[#allocation4 + $0x250] sm:$0xf0] }
 0x12b   :  { %v761_v9 = vadd.f32 %v760_v0, %v6759_v23  ;;  %v5316_v0 = vor.u32 %v6085_v60, %v5313_v62  ;;  %v6083_v60 = vld [vmem:[#allocation4 + $0x594] sm:$0xf] }
 0x12c   :  { %v5305_v62 = vld [vmem:[#allocation4 + $0x5d0] sm:$0xf0] }
 0x12d   :  { %v810_v11 = vadd.f32 %v809_v1, %v761_v9  ;;  %1959 = vmatpush.bf16.msrb.mxu1 %v5316_v0  ;;  %v5308_v0 = vor.u32 %v6083_v60, %v5305_v62  ;;  %v5233_v62 = vld [vmem:[#allocation4 + $0x150] sm:$0xf0] }
 0x12e   :  { %v861_v13 = vpop.f32.mrf.mxu0  ;;  %v910_v14 = vpop.f32.mrf.mxu1 }
 0x12f   :  { %v862_v15 = vadd.f32 %v861_v13, %v6753_v48  ;;  %v6779_v16 = vmul.f32 %v953_v53, %v810_v11  ;;  %v6069_v53 = vld [vmem:[#allocation4 + $0x214] sm:$0xf] }
 0x130   :  { %1300 = vmatmul.bf16.gmra.mxu2 %v6588_v25  ;;  %1349 = vmatmul.bf16.gmra.mxu3 %v6590_v26  ;;  %v5252_v61 = vor.u32 %v6069_v53, %v5249_v57  ;;  %v6067_v53 = vld [vmem:[#allocation4 + $0x194] sm:$0xf] }
 0x131   :  { %v911_v5 = vadd.f32 %v910_v14, %v862_v15  ;;  %1398 = vmatmul.bf16.gmra.mxu0 %v6588_v25  ;;  %1447 = vmatmul.bf16.gmra.mxu1 %v6590_v26  ;;  %v5241_v57 = vld [vmem:[#allocation4 + $0x1d0] sm:$0xf0] }
 0x132   :  { %1910 = vmatpush.bf16.msrb.mxu0 %v5252_v61  ;;  %v5244_v61 = vor.u32 %v6067_v53, %v5241_v57  ;;  %1960 = vmatpush.bf16.msrb.mxu1 %v5308_v0  ;;  %v983_v57 = vpop.permute.xlu1 %982  ;;  %v5297_v0 = vld [vmem:[#allocation4 + $0x550] sm:$0xf0] }
 0x133   :  { %v6786_v27 = vmul.f32 %v958_v8, %v911_v5  ;;  %v763_v7 = vpop.f32.mrf.mxu2  ;;  %v812_v17 = vpop.f32.mrf.mxu3  ;;  %v6068_v5 = vld [vmem:[#allocation4 + $0x1cc] sm:$0xf0] }
 0x134   :  { %v764_v39 = vadd.f32 %v763_v7, %v6759_v23  ;;  %v5240_v4 = vor.u32 %v6068_v5, %v5239_v6  ;;  %v5231_v5 = vld [vmem:[#allocation4 + $0x110] sm:$0xf] }
 0x136   :  { %v813_v41 = vadd.f32 %v812_v17, %v764_v39  ;;  %v863_v42 = vpop.f32.mrf.mxu0  ;;  %v912_v35 = vpop.f32.mrf.mxu1  ;;  %v5303_v17 = vld [vmem:[#allocation4 + $0x590] sm:$0xf]  ;;  %1813 = vmatpush.bf16.msrb.mxu2 %v5240_v4  ;;  %1911 = vmatpush.bf16.msrb.mxu0 %v5244_v61  ;;  %v6065_v61 = vld [vmem:[#allocation4 + $0x114] sm:$0xf] }
 0x137   :  { %v864_v43 = vadd.f32 %v863_v42, %v6753_v48  ;;  %v5304_v39 = vor.u32 %v6084_v29, %v5303_v17  ;;  %v6066_v4 = vld [vmem:[#allocation4 + $0x14c] sm:$0xf0] }
 0x138   :  { %v6791_v45 = vmul.f32 %v958_v8, %v813_v41 }
 0x139   :  { %v913_v31 = vadd.f32 %v912_v35, %v864_v43  ;;  %1862 = vmatpush.bf16.msrb.mxu3 %v5304_v39  ;;  %v6082_v39 = vld [vmem:[#allocation4 + $0x54c] sm:$0xf0] }
 0x13b   :  { %v6794_v54 = vmul.f32 %v963_v46, %v913_v31  ;;  %v765_v24 = vpop.f32.mrf.mxu2  ;;  %v814_v63 = vpop.f32.mrf.mxu3 }
 0x13c   :  { %v766_v1 = vadd.f32 %v765_v24, %v6759_v23 }
 0x13e   :  { %v815_v9 = vadd.f32 %v814_v63, %v766_v1  ;;  %v866_v8 = vpop.f32.mrf.mxu0  ;;  %v915_v11 = vpop.f32.mrf.mxu1 }
 0x13f   :  { %v867_v13 = vadd.f32 %v866_v8, %v6753_v48 }
 0x140   :  { %v6799_v14 = vmul.f32 %v963_v46, %v815_v9  ;;  %1305 = vmatmul.bf16.gmra.mxu2 %v6615_v33  ;;  %1354 = vmatmul.bf16.gmra.mxu3 %v6617_v34  ;;  %v973_v46 = vpop.permute.xlu2 %972 }
 0x141   :  { %v916_v15 = vadd.f32 %v915_v11, %v867_v13  ;;  %1403 = vmatmul.bf16.gmra.mxu0 %v6615_v33  ;;  %1452 = vmatmul.bf16.gmra.mxu1 %v6617_v34 }
 0x143   :  { %v6805_v18 = vmul.f32 %v968_v3, %v916_v15  ;;  %v768_v22 = vpop.f32.mrf.mxu2  ;;  %v817_v7 = vpop.f32.mrf.mxu3 }
 0x144   :  { %v769_v32 = vadd.f32 %v768_v22, %v6759_v23  ;;  %v978_v15 = vpop.permute.xlu0 %977  ;;  %v5232_v22 = vor.u32 %v6066_v4, %v5231_v5 }
 0x146   :  { %v818_v40 = vadd.f32 %v817_v7, %v769_v32  ;;  %v868_v41 = vpop.f32.mrf.mxu0  ;;  %v917_v42 = vpop.f32.mrf.mxu1  ;;  %v5295_v32 = vld [vmem:[#allocation4 + $0x510] sm:$0xf]  ;;  %1814 = vmatpush.bf16.msrb.mxu2 %v5232_v22 }
 0x147   :  { %v869_v35 = vadd.f32 %v868_v41, %v6753_v48  ;;  %v5296_v41 = vor.u32 %v6082_v39, %v5295_v32  ;;  %v5223_v32 = vld [vmem:[#allocation4 + $0x90] sm:$0xf] }
 0x148   :  { %v6810_v43 = vmul.f32 %v968_v3, %v818_v40  ;;  %v6064_v39 = vld [vmem:[#allocation4 + $0xcc] sm:$0xf0] }
 0x149   :  { %v918_v31 = vadd.f32 %v917_v42, %v869_v35  ;;  %1863 = vmatpush.bf16.msrb.mxu3 %v5296_v41 }
 0x14b   :  { %v6812_v28 = vmul.f32 %v973_v46, %v918_v31  ;;  %v770_v24 = vpop.f32.mrf.mxu2  ;;  %v819_v63 = vpop.f32.mrf.mxu3 }
 0x14c   :  { %v771_v1 = vadd.f32 %v770_v24, %v6759_v23  ;;  %v6081_v24 = vld [vmem:[#allocation4 + $0x514] sm:$0xf] }
 0x14e   :  { %v820_v3 = vadd.f32 %v819_v63, %v771_v1  ;;  %v871_v9 = vpop.f32.mrf.mxu0  ;;  %v920_v8 = vpop.f32.mrf.mxu1  ;;  %v5236_v63 = vor.u32 %v6065_v61, %v5233_v62 }
 0x14f   :  { %v872_v11 = vadd.f32 %v871_v9, %v6753_v48 }
 0x150   :  { %v6817_v13 = vmul.f32 %v973_v46, %v820_v3  ;;  %1310 = vmatmul.bf16.gmra.mxu2 %v6655_v47  ;;  %1359 = vmatmul.bf16.gmra.mxu3 %v6657_v49 }
 0x151   :  { %v921_v6 = vadd.f32 %v920_v8, %v872_v11  ;;  %1408 = vmatmul.bf16.gmra.mxu0 %v6655_v47  ;;  %1457 = vmatmul.bf16.gmra.mxu1 %v6657_v49  ;;  %v5300_v8 = vor.u32 %v6081_v24, %v5297_v0 }
 0x152   :  { %1912 = vmatpush.bf16.msrb.mxu0 %v5236_v63 }
 0x153   :  { %v6823_v7 = vmul.f32 %v978_v15, %v921_v6  ;;  %v773_v17 = vpop.f32.mrf.mxu2  ;;  %v822_v29 = vpop.f32.mrf.mxu3  ;;  %1961 = vmatpush.bf16.msrb.mxu1 %v5300_v8  ;;  %v6063_v8 = vld [vmem:[#allocation4 + $0x94] sm:$0xf] }
 0x154   :  { %v774_v40 = vadd.f32 %v773_v17, %v6759_v23  ;;  %v988_v17 = vpop.permute.xlu2 %987 }
 0x156   :  { %v823_v42 = vadd.f32 %v822_v29, %v774_v40  ;;  %v873_v35 = vpop.f32.mrf.mxu0  ;;  %v922_v46 = vpop.f32.mrf.mxu1  ;;  %v5224_v40 = vor.u32 %v6064_v39, %v5223_v32 }
 0x157   :  { %v874_v31 = vadd.f32 %v873_v35, %v6753_v48 }
 0x158   :  { %v6827_v53 = vmul.f32 %v978_v15, %v823_v42  ;;  %1815 = vmatpush.bf16.msrb.mxu2 %v5224_v40 }
 0x159   :  { %v923_v60 = vadd.f32 %v922_v46, %v874_v31  ;;  %v5287_v46 = vld [vmem:[#allocation4 + $0x490] sm:$0xf] }
 0x15a   :  { %v6080_v31 = vld [vmem:[#allocation4 + $0x4cc] sm:$0xf0] }
 0x15b   :  { %v6829_v1 = vmul.f32 %v983_v57, %v923_v60  ;;  %v775_v3 = vpop.f32.mrf.mxu2  ;;  %v824_v9 = vpop.f32.mrf.mxu3  ;;  %v5288_v60 = vor.u32 %v6080_v31, %v5287_v46 }
 0x15c   :  { %v776_v11 = vadd.f32 %v775_v3, %v6759_v23  ;;  %v993_v3 = vpop.permute.xlu0 %992 }
 0x15d   :  { %1864 = vmatpush.bf16.msrb.mxu3 %v5288_v60 }
 0x15e   :  { %v825_v6 = vadd.f32 %v824_v9, %v776_v11  ;;  %v876_v5 = vpop.f32.mrf.mxu0  ;;  %v925_v15 = vpop.f32.mrf.mxu1  ;;  %v5225_v11 = vld [vmem:[#allocation4 + $0xd0] sm:$0xf0] }
 0x15f   :  { %v877_v4 = vadd.f32 %v876_v5, %v6753_v48  ;;  %v5228_v5 = vor.u32 %v6063_v8, %v5225_v11  ;;  %v5279_v11 = vld [vmem:[#allocation4 + $0x410] sm:$0xf] }
 0x160   :  { %v6833_v22 = vmul.f32 %v983_v57, %v825_v6  ;;  %1315 = vmatmul.bf16.gmra.mxu2 %v6679_v30  ;;  %1364 = vmatmul.bf16.gmra.mxu3 %v6681_v51  ;;  %v6079_v6 = vld [vmem:[#allocation4 + $0x494] sm:$0xf] }
 0x161   :  { %v926_v29 = vadd.f32 %v925_v15, %v877_v4  ;;  %1413 = vmatmul.bf16.gmra.mxu0 %v6679_v30  ;;  %1462 = vmatmul.bf16.gmra.mxu1 %v6681_v51  ;;  %v5289_v15 = vld [vmem:[#allocation4 + $0x4d0] sm:$0xf0] }
 0x162   :  { %v5292_v39 = vor.u32 %v6079_v6, %v5289_v15  ;;  %1913 = vmatpush.bf16.msrb.mxu0 %v5228_v5 }
 0x163   :  { %v6839_v41 = vmul.f32 %v988_v17, %v926_v29  ;;  %v778_v42 = vpop.f32.mrf.mxu2  ;;  %v827_v35 = vpop.f32.mrf.mxu3 }
 0x164   :  { %v779_v57 = vadd.f32 %v778_v42, %v6759_v23  ;;  %1962 = vmatpush.bf16.msrb.mxu1 %v5292_v39 }
 0x166   :  { %v828_v61 = vadd.f32 %v827_v35, %v779_v57  ;;  %v878_v62 = vpop.f32.mrf.mxu0  ;;  %v927_v24 = vpop.f32.mrf.mxu1 }
 0x167   :  { %v879_v63 = vadd.f32 %v878_v62, %v6753_v48  ;;  %v998_v57 = vpop.permute.xlu1 %997  ;;  %v6062_v62 = vld [vmem:[#allocation4 + $0x4c] sm:$0xf0] }
 0x168   :  { %v6843_v0 = vmul.f32 %v988_v17, %v828_v61  ;;  %v5215_v61 = vld [vmem:[#allocation4 + $0x10] sm:$0xf] }
 0x169   :  { %v928_v9 = vadd.f32 %v927_v24, %v879_v63  ;;  %v5216_v24 = vor.u32 %v6062_v62, %v5215_v61  ;;  %v5281_v62 = vld [vmem:[#allocation4 + $0x450] sm:$0xf0] }
 0x16b   :  { %v6845_v4 = vmul.f32 %v993_v3, %v928_v9  ;;  %v780_v29 = vpop.f32.mrf.mxu2  ;;  %v829_v32 = vpop.f32.mrf.mxu3  ;;  %1816 = vmatpush.bf16.msrb.mxu2 %v5216_v24 }
 0x16c   :  { %v781_v40 = vadd.f32 %v780_v29, %v6759_v23 }
 0x16e   :  { %v830_v42 = vadd.f32 %v829_v32, %v781_v40  ;;  %v881_v35 = vpop.f32.mrf.mxu0  ;;  %v930_v17 = vpop.f32.mrf.mxu1 }
 0x16f   :  { %v882_v46 = vadd.f32 %v881_v35, %v6753_v48 }
 0x170   :  { %v6849_v31 = vmul.f32 %v993_v3, %v830_v42  ;;  %1320 = vmatmul.bf16.gmra.mxu2 %v6699_v58  ;;  %1369 = vmatmul.bf16.gmra.mxu3 %v6701_v59  ;;  %v6078_v3 = vld [vmem:[#allocation4 + $0x44c] sm:$0xf0]  ;;  %v1003_v42 = vpop.permute.xlu2 %1002 }
 0x171   :  { %v931_v60 = vadd.f32 %v930_v17, %v882_v46  ;;  %1418 = vmatmul.bf16.gmra.mxu0 %v6699_v58  ;;  %1467 = vmatmul.bf16.gmra.mxu1 %v6701_v59  ;;  %v5280_v5 = vor.u32 %v6078_v3, %v5279_v11  ;;  %v6061_v17 = vld [vmem:[#allocation4 + $0x14] sm:$0xf] }
 0x172   :  { %v5217_v46 = vld [vmem:[#allocation4 + $0x50] sm:$0xf0] }
 0x173   :  { %v6855_v63 = vmul.f32 %v998_v57, %v931_v60  ;;  %v783_v9 = vpop.f32.mrf.mxu2  ;;  %v832_v8 = vpop.f32.mrf.mxu3  ;;  %1865 = vmatpush.bf16.msrb.mxu3 %v5280_v5  ;;  %v6077_v60 = vld [vmem:[#allocation4 + $0x414] sm:$0xf]  ;;  %v5220_v61 = vor.u32 %v6061_v17, %v5217_v46 }
 0x174   :  { %v784_v6 = vadd.f32 %v783_v9, %v6759_v23  ;;  %v5284_v11 = vor.u32 %v6077_v60, %v5281_v62  ;;  %v5463_v62 = vld [vmem:[#allocation4 + $0x798] sm:$0xf] }
 0x175   :  { %8359 = vst [vmem:[#allocation17_spill] sm:$0xff] %v6855_v63  ;;  %1914 = vmatpush.bf16.msrb.mxu0 %v5220_v61 }
 0x176   :  { %v833_v15 = vadd.f32 %v832_v8, %v784_v6  ;;  %v883_v29 = vpop.f32.mrf.mxu0  ;;  %v932_v32 = vpop.f32.mrf.mxu1  ;;  %1963 = vmatpush.bf16.msrb.mxu1 %v5284_v11 }
 0x177   :  { %v884_v39 = vadd.f32 %v883_v29, %v6753_v48  ;;  %v1008_v29 = vpop.permute.xlu0 %1007 }
 0x178   :  { %v6859_v40 = vmul.f32 %v998_v57, %v833_v15 }
 0x179   :  { %v933_v35 = vadd.f32 %v932_v32, %v884_v39  ;;  %v5399_v39 = vld [vmem:[#allocation4 + $0x398] sm:$0xf] }
 0x17b   :  { %v6861_v63 = vmul.f32 %v1003_v42, %v933_v35  ;;  %v785_v9 = vpop.f32.mrf.mxu2  ;;  %v834_v24 = vpop.f32.mrf.mxu3  ;;  %v6108_v35 = vld [vmem:[#allocation4 + $0x3d4] sm:$0xf0] }
 0x17c   :  { %v786_v8 = vadd.f32 %v785_v9, %v6759_v23  ;;  %v5400_v17 = vor.u32 %v6108_v35, %v5399_v39  ;;  %v6124_v9 = vld [vmem:[#allocation4 + $0x7d4] sm:$0xf0]  ;;  %v5401_v35 = vld [vmem:[#allocation4 + $0x3d8] sm:$0xf0] }
 0x17e   :  { %v835_v3 = vadd.f32 %v834_v24, %v786_v8  ;;  %v886_v6 = vpop.f32.mrf.mxu0  ;;  %v935_v57 = vpop.f32.mrf.mxu1  ;;  %2331 = vmatpush.bf16.msra.mxu2 %v5400_v17 }
 0x17f   :  { %v887_v5 = vadd.f32 %v886_v6, %v6753_v48 }
 0x180   :  { %v6865_v15 = vmul.f32 %v1003_v42, %v835_v3  ;;  %1325 = vmatmul.bf16.gmra.mxu2 %v6713_v19  ;;  %1374 = vmatmul.bf16.gmra.mxu3 %v6715_v20  ;;  %v5464_v3 = vor.u32 %v6124_v9, %v5463_v62 }
 0x181   :  { %v936_v32 = vadd.f32 %v935_v57, %v887_v5  ;;  %1423 = vmatmul.bf16.gmra.mxu0 %v6713_v19  ;;  %1472 = vmatmul.bf16.gmra.mxu1 %v6715_v20  ;;  %v1013_v5 = vpop.permute.xlu1 %1012  ;;  %v5465_v19 = vld [vmem:[#allocation4 + $0x7d8] sm:$0xf0] }
 0x182   :  { %8360 = vst [vmem:[#allocation18_spill] sm:$0xff] %v6865_v15  ;;  %2380 = vmatpush.bf16.msra.mxu3 %v5464_v3  ;;  %v1018_v3 = vpop.permute.xlu2 %1017 }
 0x183   :  { %v6871_v46 = vmul.f32 %v1008_v29, %v936_v32  ;;  %v788_v60 = vpop.f32.mrf.mxu2  ;;  %v837_v61 = vpop.f32.mrf.mxu3  ;;  %v6107_v32 = vld [vmem:[#allocation4 + $0x39c] sm:$0xf] }
 0x184   :  { %v789_v42 = vadd.f32 %v788_v60, %v6759_v23  ;;  %v5404_v20 = vor.u32 %v6107_v32, %v5401_v35 }
 0x185   :  { %8361 = vst [vmem:[#allocation19_spill] sm:$0xff] %v6871_v46  ;;  %v6123_v46 = vld [vmem:[#allocation4 + $0x79c] sm:$0xf] }
 0x186   :  { %v838_v24 = vadd.f32 %v837_v61, %v789_v42  ;;  %v888_v11 = vpop.f32.mrf.mxu0  ;;  %v937_v8 = vpop.f32.mrf.mxu1  ;;  %v5468_v42 = vor.u32 %v6123_v46, %v5465_v19  ;;  %2429 = vmatpush.bf16.msra.mxu0 %v5404_v20  ;;  %v6890_v19 = vld [vmem:[%s8296_s1] sm:$0xff]  ;;  %v5391_v20 = vld [vmem:[#allocation4 + $0x318] sm:$0xf] }
 0x187   :  { %v889_v6 = vadd.f32 %v888_v11, %v6753_v48  ;;  %v6398_v11 = vmov 2   ;;  %8362 = vst [vmem:[#allocation20_spill] sm:$0xff] %v6890_v19  ;;  %v6106_v46 = vld [vmem:[#allocation4 + $0x354] sm:$0xf0] }
 0x188   :  { %v6875_v57 = vmul.f32 %v1008_v29, %v838_v24  ;;  %2478 = vmatpush.bf16.msra.mxu1 %v5468_v42  ;;  %6275 = vset.pattern.permute.xlu0 %v6398_v11  ;;  %v5455_v42 = vld [vmem:[#allocation4 + $0x718] sm:$0xf] }
 0x189   :  { %v938_v39 = vadd.f32 %v937_v8, %v889_v6  ;;  %6276 = vset.pattern.permute.xlu1 %v6398_v11  ;;  %2006 = vperm.xlu0 %6275, %v6890_v19  }
 0x18a   :  { %6277 = vset.pattern.permute.xlu2 %v6398_v11  ;;  %v1023_v11 = vpop.permute.xlu0 %1022 }
 0x18b   :  { %v6877_v15 = vmul.f32 %v1013_v5, %v938_v39  ;;  %v790_v60 = vpop.f32.mrf.mxu2  ;;  %v839_v17 = vpop.f32.mrf.mxu3 }
 0x18c   :  { %v791_v61 = vadd.f32 %v790_v60, %v6759_v23  ;;  %v5392_v60 = vor.u32 %v6106_v46, %v5391_v20  ;;  %v1121_v46 = vld [vmem:[%s8300_s5 + $0x2] sm:$0x3] }
 0x18e   :  { %v840_v62 = vadd.f32 %v839_v17, %v791_v61  ;;  %v891_v9 = vpop.f32.mrf.mxu0  ;;  %v940_v29 = vpop.f32.mrf.mxu1  ;;  %v6905_v61 = vld [vmem:[%s8296_s1 + $0x10] sm:$0xff]  ;;  %2332 = vmatpush.bf16.msra.mxu2 %v5392_v60  ;;  %v6121_v60 = vld [vmem:[#allocation4 + $0x71c] sm:$0xf] }
 0x18f   :  { %v892_v24 = vadd.f32 %v891_v9, %v6753_v48  ;;  %8364 = vst [vmem:[#allocation22_spill] sm:$0xff] %v6905_v61  ;;  %2014 = vperm.xlu2 %6277, %v6905_v61   ;;  %v5393_v61 = vld [vmem:[#allocation4 + $0x358] sm:$0xf0] }
 0x190   :  { %v6881_v8 = vmul.f32 %v1013_v5, %v840_v62  ;;  %1330 = vmatmul.bf16.gmra.mxu2 %v6733_v55  ;;  %1379 = vmatmul.bf16.gmra.mxu3 %v6735_v56  ;;  %v6896_v5 = vld [vmem:[%s8296_s1 + $0x8] sm:$0xff]  ;;  %v6122_v62 = vld [vmem:[#allocation4 + $0x754] sm:$0xf0] }
 0x191   :  { %v941_v6 = vadd.f32 %v940_v29, %v892_v24  ;;  %1428 = vmatmul.bf16.gmra.mxu0 %v6733_v55  ;;  %1477 = vmatmul.bf16.gmra.mxu1 %v6735_v56  ;;  %8363 = vst [vmem:[#allocation21_spill] sm:$0xff] %v6896_v5 }
 0x192   :  { %2010 = vperm.xlu1 %6276, %v6896_v5   ;;  %v6105_v5 = vld [vmem:[#allocation4 + $0x31c] sm:$0xf] }
 0x193   :  { %v6899_v39 = vmul.f32 %v1018_v3, %v941_v6  ;;  %v793_v32 = vpop.f32.mrf.mxu2  ;;  %v842_v35 = vpop.f32.mrf.mxu3  ;;  %v5456_v6 = vor.u32 %v6122_v62, %v5455_v42  ;;  %v6928_v42 = vperm.slane %v1121_v46, 1  ;;  %v5396_v62 = vor.u32 %v6105_v5, %v5393_v61 }
 0x194   :  { %v794_v17 = vadd.f32 %v793_v32, %v6759_v23  ;;  %v6942_v5 = vperm.slane %v1121_v46, 0 }
 0x195   :  { %2381 = vmatpush.bf16.msra.mxu3 %v5456_v6  ;;  %v6934_v6 = vld [vmem:[%s8296_s1 + $0x20] sm:$0xff]  ;;  %2430 = vmatpush.bf16.msra.mxu0 %v5396_v62 }
 0x196   :  { %v843_v9 = vadd.f32 %v842_v35, %v794_v17  ;;  %v893_v29 = vpop.f32.mrf.mxu0  ;;  %v942_v24 = vpop.f32.mrf.mxu1  ;;  %v6917_v35 = vld [vmem:[%s8296_s1 + $0x18] sm:$0xff]  ;;  %8369 = vst [vmem:[#allocation27_spill] sm:$0xff] %v6934_v6 }
 0x197   :  { %v894_v19 = vadd.f32 %v893_v29, %v6753_v48  ;;  %8366 = vst [vmem:[#allocation24_spill] sm:$0xff] %v6917_v35  ;;  %v6923_v48 = vld [vmem:[%s8296_s1 + $0x28] sm:$0xff]  ;;  %2022 = vperm.xlu2 %6277, %v6934_v6  }
 0x198   :  { %v6909_v20 = vmul.f32 %v1018_v3, %v843_v9  ;;  %8367 = vst [vmem:[#allocation25_spill] sm:$0xff] %v6923_v48  ;;  %2026 = vperm.xlu0 %6275, %v6923_v48   ;;  %v5457_v9 = vld [vmem:[#allocation4 + $0x758] sm:$0xf0] }
 0x199   :  { %v943_v32 = vadd.f32 %v942_v24, %v894_v19  ;;  %v5460_v24 = vor.u32 %v6121_v60, %v5457_v9  ;;  %v5383_v60 = vld [vmem:[#allocation4 + $0x298] sm:$0xf] }
 0x19a   :  { %8365 = vst [vmem:[#allocation23_spill] sm:$0xff] %v6909_v20  ;;  %2018 = vperm.xlu1 %6276, %v6917_v35  }
 0x19b   :  { %v6926_v3 = vmul.f32 %v1023_v11, %v943_v32  ;;  %v795_v19 = vpop.f32.mrf.mxu2  ;;  %v844_v17 = vpop.f32.mrf.mxu3  ;;  %2479 = vmatpush.bf16.msra.mxu1 %v5460_v24  ;;  %v6120_v24 = vld [vmem:[#allocation4 + $0x6d4] sm:$0xf0] }
 0x19c   :  { %v796_v29 = vadd.f32 %v795_v19, %v6759_v23  ;;  %v1485_v23 = vpop.permute.xlu1 %1484  ;;  %v6104_v19 = vld [vmem:[#allocation4 + $0x2d4] sm:$0xf0] }
 0x19d   :  { %8368 = vst [vmem:[#allocation26_spill] sm:$0xff] %v6926_v3  ;;  %v5384_v62 = vor.u32 %v6104_v19, %v5383_v60 }
 0x19e   :  { %v845_v48 = vadd.f32 %v844_v17, %v796_v29  ;;  %v1394_v32 = vpop.f32.mrf.mxu0  ;;  %v1443_v35 = vpop.f32.mrf.mxu1  ;;  %v6949_v17 = vld [vmem:[%s8296_s1 + $0x30] sm:$0xff]  ;;  %v5447_v29 = vld [vmem:[#allocation4 + $0x698] sm:$0xf] }
 0x19f   :  { %v1395_v3 = vadd.f32 %v1394_v32, %v6928_v42  ;;  %8371 = vst [vmem:[#allocation29_spill] sm:$0xff] %v6949_v17  ;;  %2333 = vmatpush.bf16.msra.mxu2 %v5384_v62 }
 0x1a0   :  { %v6938_v20 = vmul.f32 %v1023_v11, %v845_v48  ;;  %1817 = vmatmul.bf16.vlgmr.msrb.gmra.mxu2 %v6562_v36  ;;  %1866 = vmatmul.bf16.vlgmr.msrb.gmra.mxu3 %v6564_v37 }
 0x1a1   :  { %v1444_v61 = vadd.f32 %v1443_v35, %v1395_v3  ;;  %1915 = vmatmul.bf16.vlgmr.msrb.gmra.mxu0 %v6562_v36  ;;  %1964 = vmatmul.bf16.vlgmr.msrb.gmra.mxu1 %v6564_v37  ;;  %v6957_v3 = vld [vmem:[%s8296_s1 + $0x38] sm:$0xff] }
 0x1a2   :  { %8370 = vst [vmem:[#allocation28_spill] sm:$0xff] %v6938_v20  ;;  %2030 = vperm.xlu1 %6276, %v6949_v17   ;;  %2038 = vperm.xlu0 %6275, %v6690_v44   ;;  %v5448_v17 = vor.u32 %v6120_v24, %v5447_v29  ;;  %v5385_v37 = vld [vmem:[#allocation4 + $0x2d8] sm:$0xf0]  ;;  %v6978_v24 = vld [vmem:[%s8296_s1 + $0x50] sm:$0xff] }
 0x1a3   :  { %v1548_v11 = vmul.f32 %v1485_v23, %v1444_v61  ;;  %v1296_v48 = vpop.f32.mrf.mxu2  ;;  %v1345_v46 = vpop.f32.mrf.mxu3  ;;  %8372 = vst [vmem:[#allocation30_spill] sm:$0xff] %v6957_v3  ;;  %2034 = vperm.xlu2 %6277, %v6957_v3   ;;  %v6103_v3 = vld [vmem:[#allocation4 + $0x29c] sm:$0xf] }
 0x1a4   :  { %v1297_v35 = vadd.f32 %v1296_v48, %v6942_v5  ;;  %v1489_v48 = vpop.permute.xlu2 %1488  ;;  %2382 = vmatpush.bf16.msra.mxu3 %v5448_v17  ;;  %v5388_v17 = vor.u32 %v6103_v3, %v5385_v37 }
 0x1a5   :  { %v6961_v9 = vadd.f32 %v1548_v11, %v6764_v52  ;;  %v6119_v52 = vld [vmem:[#allocation4 + $0x69c] sm:$0xf]  ;;  %v6970_v11 = vld [vmem:[%s8296_s1 + $0x48] sm:$0xff] }
 0x1a6   :  { %v1346_v44 = vadd.f32 %v1345_v46, %v1297_v35  ;;  %v1396_v32 = vpop.f32.mrf.mxu0  ;;  %v1445_v61 = vpop.f32.mrf.mxu1  ;;  %v5449_v35 = vld [vmem:[#allocation4 + $0x6d8] sm:$0xf0]  ;;  %2431 = vmatpush.bf16.msra.mxu0 %v5388_v17 }
 0x1a7   :  { %v1397_v60 = vadd.f32 %v1396_v32, %v6928_v42  ;;  %v5452_v29 = vor.u32 %v6119_v52, %v5449_v35  ;;  %v6102_v52 = vld [vmem:[#allocation4 + $0x254] sm:$0xf0] }
 0x1a8   :  { %v1547_v19 = vmul.f32 %v1485_v23, %v1346_v44 }
 0x1a9   :  { %v1446_v6 = vadd.f32 %v1445_v61, %v1397_v60  ;;  %2480 = vmatpush.bf16.msra.mxu1 %v5452_v29  ;;  %v1493_v61 = vpop.permute.xlu0 %1492  ;;  %v6118_v29 = vld [vmem:[#allocation4 + $0x654] sm:$0xf0] }
 0x1aa   :  { %v6965_v20 = vadd.f32 %v1547_v19, %v6770_v50  ;;  %2042 = vperm.xlu1 %6276, %v6970_v11   ;;  %2050 = vperm.xlu0 %6275, %v6720_v21   ;;  %v5375_v19 = vld [vmem:[#allocation4 + $0x218] sm:$0xf] }
 0x1ab   :  { %v1550_v46 = vmul.f32 %v1489_v48, %v1446_v6  ;;  %v1298_v23 = vpop.f32.mrf.mxu2  ;;  %v1347_v62 = vpop.f32.mrf.mxu3  ;;  %2046 = vperm.xlu2 %6277, %v6978_v24   ;;  %v5376_v17 = vor.u32 %v6102_v52, %v5375_v19 }
 0x1ac   :  { %v1299_v50 = vadd.f32 %v1298_v23, %v6942_v5 }
 0x1ad   :  { %v6982_v44 = vadd.f32 %v1550_v46, %v6773_v12  ;;  %v6995_v46 = vld [vmem:[%s8296_s1 + $0x60] sm:$0xff]  ;;  %2334 = vmatpush.bf16.msra.mxu2 %v5376_v17 }
 0x1ae   :  { %v1348_v21 = vadd.f32 %v1347_v62, %v1299_v50  ;;  %v1399_v6 = vpop.f32.mrf.mxu0  ;;  %v1448_v32 = vpop.f32.mrf.mxu1  ;;  %v5439_v50 = vld [vmem:[#allocation4 + $0x618] sm:$0xf] }
 0x1af   :  { %v1400_v37 = vadd.f32 %v1399_v6, %v6928_v42 }
 0x1b0   :  { %v1549_v3 = vmul.f32 %v1489_v48, %v1348_v21  ;;  %1822 = vmatmul.bf16.gmra.mxu2 %v6588_v25  ;;  %1871 = vmatmul.bf16.gmra.mxu3 %v6590_v26 }
 0x1b1   :  { %v1449_v60 = vadd.f32 %v1448_v32, %v1400_v37  ;;  %1920 = vmatmul.bf16.gmra.mxu0 %v6588_v25  ;;  %1969 = vmatmul.bf16.gmra.mxu1 %v6590_v26  ;;  %v5440_v37 = vor.u32 %v6118_v29, %v5439_v50 }
 0x1b2   :  { %v6990_v12 = vadd.f32 %v1549_v3, %v6779_v16  ;;  %2054 = vperm.xlu1 %6276, %v6995_v46   ;;  %2062 = vperm.xlu0 %6275, %v6746_v2  }
 0x1b3   :  { %v1552_v48 = vmul.f32 %v1493_v61, %v1449_v60  ;;  %v1301_v23 = vpop.f32.mrf.mxu2  ;;  %v1350_v62 = vpop.f32.mrf.mxu3  ;;  %2058 = vperm.xlu2 %6277, %v6710_v10   ;;  %2383 = vmatpush.bf16.msra.mxu3 %v5440_v37  ;;  %v6101_v10 = vld [vmem:[#allocation4 + $0x21c] sm:$0xf] }
 0x1b4   :  { %v1302_v35 = vadd.f32 %v1301_v23, %v6942_v5  ;;  %v1497_v60 = vpop.permute.xlu1 %1496  ;;  %v5377_v23 = vld [vmem:[#allocation4 + $0x258] sm:$0xf0] }
 0x1b5   :  { %v7002_v16 = vadd.f32 %v1552_v48, %v6786_v27  ;;  %v6117_v27 = vld [vmem:[#allocation4 + $0x61c] sm:$0xf] }
 0x1b6   :  { %v1351_v21 = vadd.f32 %v1350_v62, %v1302_v35  ;;  %v1401_v6 = vpop.f32.mrf.mxu0  ;;  %v1450_v32 = vpop.f32.mrf.mxu1  ;;  %v5380_v35 = vor.u32 %v6101_v10, %v5377_v23 }
 0x1b7   :  { %8373 = vst [vmem:[#allocation31_spill] sm:$0xff] %v7002_v16  ;;  %v1402_v2 = vadd.f32 %v1401_v6, %v6928_v42  ;;  %v5441_v16 = vld [vmem:[#allocation4 + $0x658] sm:$0xf0] }
 0x1b8   :  { %v1551_v3 = vmul.f32 %v1493_v61, %v1351_v21  ;;  %v5444_v29 = vor.u32 %v6117_v27, %v5441_v16  ;;  %2432 = vmatpush.bf16.msra.mxu0 %v5380_v35  ;;  %v5367_v16 = vld [vmem:[#allocation4 + $0x198] sm:$0xf] }
 0x1b9   :  { %v1451_v19 = vadd.f32 %v1450_v32, %v1402_v2 }
 0x1ba   :  { %v7006_v52 = vadd.f32 %v1551_v3, %v6791_v45  ;;  %2066 = vperm.xlu1 %6276, %v6730_v38   ;;  %2481 = vmatpush.bf16.msra.mxu1 %v5444_v29  ;;  %v1501_v38 = vpop.permute.xlu2 %1500  ;;  %v6100_v3 = vld [vmem:[#allocation4 + $0x1d4] sm:$0xf0] }
 0x1bb   :  { %v1554_v48 = vmul.f32 %v1497_v60, %v1451_v19  ;;  %v1303_v17 = vpop.f32.mrf.mxu2  ;;  %v1352_v62 = vpop.f32.mrf.mxu3  ;;  %v5368_v27 = vor.u32 %v6100_v3, %v5367_v16  ;;  %v5369_v16 = vld [vmem:[#allocation4 + $0x1d8] sm:$0xf0] }
 0x1bc   :  { %v1304_v50 = vadd.f32 %v1303_v17, %v6942_v5  ;;  %v5431_v17 = vld [vmem:[#allocation4 + $0x598] sm:$0xf] }
 0x1bd   :  { %v7011_v61 = vadd.f32 %v1554_v48, %v6794_v54  ;;  %2335 = vmatpush.bf16.msra.mxu2 %v5368_v27 }
 0x1be   :  { %v1353_v21 = vadd.f32 %v1352_v62, %v1304_v50  ;;  %v1404_v45 = vpop.f32.mrf.mxu0  ;;  %v1453_v6 = vpop.f32.mrf.mxu1  ;;  %v6116_v62 = vld [vmem:[#allocation4 + $0x5d4] sm:$0xf0] }
 0x1bf   :  { %v1405_v32 = vadd.f32 %v1404_v45, %v6928_v42 }
 0x1c0   :  { %v1553_v37 = vmul.f32 %v1497_v60, %v1353_v21  ;;  %1827 = vmatmul.bf16.gmra.mxu2 %v6615_v33  ;;  %1876 = vmatmul.bf16.gmra.mxu3 %v6617_v34  ;;  %v5432_v21 = vor.u32 %v6116_v62, %v5431_v17 }
 0x1c1   :  { %v1454_v2 = vadd.f32 %v1453_v6, %v1405_v32  ;;  %1925 = vmatmul.bf16.gmra.mxu0 %v6615_v33  ;;  %1974 = vmatmul.bf16.gmra.mxu1 %v6617_v34  ;;  %v1505_v6 = vpop.permute.xlu1 %1504 }
 0x1c2   :  { %v7019_v54 = vadd.f32 %v1553_v37, %v6799_v14  ;;  %2384 = vmatpush.bf16.msra.mxu3 %v5432_v21  ;;  %v1509_v21 = vpop.permute.xlu2 %1508 }
 0x1c3   :  { %v1556_v19 = vmul.f32 %v1501_v38, %v1454_v2  ;;  %v1306_v10 = vpop.f32.mrf.mxu2  ;;  %v1355_v23 = vpop.f32.mrf.mxu3  ;;  %v6099_v2 = vld [vmem:[#allocation4 + $0x19c] sm:$0xf] }
 0x1c4   :  { %v1307_v60 = vadd.f32 %v1306_v10, %v6942_v5  ;;  %v5372_v27 = vor.u32 %v6099_v2, %v5369_v16 }
 0x1c5   :  { %v7023_v48 = vadd.f32 %v1556_v19, %v6805_v18  ;;  %v6115_v18 = vld [vmem:[#allocation4 + $0x59c] sm:$0xf] }
 0x1c6   :  { %v1356_v35 = vadd.f32 %v1355_v23, %v1307_v60  ;;  %v1406_v50 = vpop.f32.mrf.mxu0  ;;  %v1455_v29 = vpop.f32.mrf.mxu1  ;;  %v5433_v23 = vld [vmem:[#allocation4 + $0x5d8] sm:$0xf0]  ;;  %2433 = vmatpush.bf16.msra.mxu0 %v5372_v27  ;;  %v6114_v27 = vld [vmem:[#allocation4 + $0x554] sm:$0xf0] }
 0x1c7   :  { %v1407_v14 = vadd.f32 %v1406_v50, %v6928_v42  ;;  %v5436_v17 = vor.u32 %v6115_v18, %v5433_v23 }
 0x1c8   :  { %v1555_v45 = vmul.f32 %v1501_v38, %v1356_v35 }
 0x1c9   :  { %v1456_v32 = vadd.f32 %v1455_v29, %v1407_v14  ;;  %2482 = vmatpush.bf16.msra.mxu1 %v5436_v17 }
 0x1ca   :  { %v7027_v37 = vadd.f32 %v1555_v45, %v6810_v43  ;;  %v5359_v45 = vld [vmem:[#allocation4 + $0x118] sm:$0xf] }
 0x1cb   :  { %v1558_v3 = vmul.f32 %v1505_v6, %v1456_v32  ;;  %v1308_v19 = vpop.f32.mrf.mxu2  ;;  %v1357_v10 = vpop.f32.mrf.mxu3  ;;  %v6098_v32 = vld [vmem:[#allocation4 + $0x154] sm:$0xf0] }
 0x1cc   :  { %v1309_v60 = vadd.f32 %v1308_v19, %v6942_v5 }
 0x1cd   :  { %v7031_v62 = vadd.f32 %v1558_v3, %v6812_v28  ;;  %v5360_v3 = vor.u32 %v6098_v32, %v5359_v45  ;;  %v5361_v45 = vld [vmem:[#allocation4 + $0x158] sm:$0xf0] }
 0x1ce   :  { %v1358_v38 = vadd.f32 %v1357_v10, %v1309_v60  ;;  %v1409_v35 = vpop.f32.mrf.mxu0  ;;  %v1458_v50 = vpop.f32.mrf.mxu1  ;;  %v5423_v10 = vld [vmem:[#allocation4 + $0x518] sm:$0xf] }
 0x1cf   :  { %v1410_v43 = vadd.f32 %v1409_v35, %v6928_v42  ;;  %2336 = vmatpush.bf16.msra.mxu2 %v5360_v3 }
 0x1d0   :  { %v1557_v29 = vmul.f32 %v1505_v6, %v1358_v38  ;;  %1832 = vmatmul.bf16.gmra.mxu2 %v6655_v47  ;;  %1881 = vmatmul.bf16.gmra.mxu3 %v6657_v49  ;;  %v5424_v38 = vor.u32 %v6114_v27, %v5423_v10 }
 0x1d1   :  { %v1459_v14 = vadd.f32 %v1458_v50, %v1410_v43  ;;  %1930 = vmatmul.bf16.gmra.mxu0 %v6655_v47  ;;  %1979 = vmatmul.bf16.gmra.mxu1 %v6657_v49  ;;  %v1513_v50 = vpop.permute.xlu0 %1512 }
 0x1d2   :  { %v7039_v28 = vadd.f32 %v1557_v29, %v6817_v13  ;;  %2385 = vmatpush.bf16.msra.mxu3 %v5424_v38  ;;  %v1517_v38 = vpop.permute.xlu1 %1516 }
 0x1d3   :  { %v1560_v2 = vmul.f32 %v1509_v21, %v1459_v14  ;;  %v1311_v16 = vpop.f32.mrf.mxu2  ;;  %v1360_v18 = vpop.f32.mrf.mxu3  ;;  %v6097_v14 = vld [vmem:[#allocation4 + $0x11c] sm:$0xf] }
 0x1d4   :  { %v1312_v6 = vadd.f32 %v1311_v16, %v6942_v5  ;;  %v5364_v3 = vor.u32 %v6097_v14, %v5361_v45 }
 0x1d5   :  { %v7043_v19 = vadd.f32 %v1560_v2, %v6823_v7  ;;  %v6113_v7 = vld [vmem:[#allocation4 + $0x51c] sm:$0xf] }
 0x1d6   :  { %v1361_v23 = vadd.f32 %v1360_v18, %v1312_v6  ;;  %v1411_v60 = vpop.f32.mrf.mxu0  ;;  %v1460_v17 = vpop.f32.mrf.mxu1  ;;  %v5425_v18 = vld [vmem:[#allocation4 + $0x558] sm:$0xf0]  ;;  %2434 = vmatpush.bf16.msra.mxu0 %v5364_v3  ;;  %v6112_v3 = vld [vmem:[#allocation4 + $0x4d4] sm:$0xf0] }
 0x1d7   :  { %v1412_v13 = vadd.f32 %v1411_v60, %v6928_v42  ;;  %v5428_v10 = vor.u32 %v6113_v7, %v5425_v18 }
 0x1d8   :  { %v1559_v35 = vmul.f32 %v1509_v21, %v1361_v23 }
 0x1d9   :  { %v1461_v43 = vadd.f32 %v1460_v17, %v1412_v13  ;;  %2483 = vmatpush.bf16.msra.mxu1 %v5428_v10 }
 0x1da   :  { %v7047_v29 = vadd.f32 %v1559_v35, %v6827_v53  ;;  %v5351_v35 = vld [vmem:[#allocation4 + $0x98] sm:$0xf] }
 0x1db   :  { %v1562_v32 = vmul.f32 %v1513_v50, %v1461_v43  ;;  %v1313_v2 = vpop.f32.mrf.mxu2  ;;  %v1362_v16 = vpop.f32.mrf.mxu3  ;;  %v6096_v43 = vld [vmem:[#allocation4 + $0xd4] sm:$0xf0] }
 0x1dc   :  { %v1314_v6 = vadd.f32 %v1313_v2, %v6942_v5 }
 0x1dd   :  { %v7051_v27 = vadd.f32 %v1562_v32, %v6829_v1  ;;  %v5352_v32 = vor.u32 %v6096_v43, %v5351_v35  ;;  %v5353_v35 = vld [vmem:[#allocation4 + $0xd8] sm:$0xf0] }
 0x1de   :  { %v1363_v21 = vadd.f32 %v1362_v16, %v1314_v6  ;;  %v1414_v23 = vpop.f32.mrf.mxu0  ;;  %v1463_v60 = vpop.f32.mrf.mxu1  ;;  %v5415_v16 = vld [vmem:[#allocation4 + $0x498] sm:$0xf] }
 0x1df   :  { %v1415_v53 = vadd.f32 %v1414_v23, %v6928_v42  ;;  %2337 = vmatpush.bf16.msra.mxu2 %v5352_v32 }
 0x1e0   :  { %v1561_v17 = vmul.f32 %v1513_v50, %v1363_v21  ;;  %1837 = vmatmul.bf16.gmra.mxu2 %v6679_v30  ;;  %1886 = vmatmul.bf16.gmra.mxu3 %v6681_v51  ;;  %v5416_v21 = vor.u32 %v6112_v3, %v5415_v16 }
 0x1e1   :  { %v1464_v13 = vadd.f32 %v1463_v60, %v1415_v53  ;;  %1935 = vmatmul.bf16.gmra.mxu0 %v6679_v30  ;;  %1984 = vmatmul.bf16.gmra.mxu1 %v6681_v51  ;;  %v1521_v60 = vpop.permute.xlu2 %1520 }
 0x1e2   :  { %v7059_v1 = vadd.f32 %v1561_v17, %v6833_v22  ;;  %2386 = vmatpush.bf16.msra.mxu3 %v5416_v21  ;;  %v1525_v21 = vpop.permute.xlu0 %1524 }
 0x1e3   :  { %v1564_v14 = vmul.f32 %v1517_v38, %v1464_v13  ;;  %v1316_v45 = vpop.f32.mrf.mxu2  ;;  %v1365_v7 = vpop.f32.mrf.mxu3  ;;  %v6095_v13 = vld [vmem:[#allocation4 + $0x9c] sm:$0xf] }
 0x1e4   :  { %v1317_v50 = vadd.f32 %v1316_v45, %v6942_v5  ;;  %v5356_v32 = vor.u32 %v6095_v13, %v5353_v35 }
 0x1e5   :  { %v7063_v2 = vadd.f32 %v1564_v14, %v6839_v41  ;;  %v6111_v41 = vld [vmem:[#allocation4 + $0x49c] sm:$0xf] }
 0x1e6   :  { %v1366_v18 = vadd.f32 %v1365_v7, %v1317_v50  ;;  %v1416_v6 = vpop.f32.mrf.mxu0  ;;  %v1465_v10 = vpop.f32.mrf.mxu1  ;;  %v5417_v7 = vld [vmem:[#allocation4 + $0x4d8] sm:$0xf0]  ;;  %2435 = vmatpush.bf16.msra.mxu0 %v5356_v32  ;;  %v5407_v32 = vld [vmem:[#allocation4 + $0x418] sm:$0xf] }
 0x1e7   :  { %v1417_v22 = vadd.f32 %v1416_v6, %v6928_v42  ;;  %v5420_v16 = vor.u32 %v6111_v41, %v5417_v7  ;;  %v6110_v7 = vld [vmem:[#allocation4 + $0x454] sm:$0xf0] }
 0x1e8   :  { %v1563_v23 = vmul.f32 %v1517_v38, %v1366_v18 }
 0x1e9   :  { %v1466_v53 = vadd.f32 %v1465_v10, %v1417_v22  ;;  %2484 = vmatpush.bf16.msra.mxu1 %v5420_v16 }
 0x1ea   :  { %v7067_v17 = vadd.f32 %v1563_v23, %v6843_v0  ;;  %v5343_v23 = vld [vmem:[#allocation4 + $0x18] sm:$0xf] }
 0x1eb   :  { %v1566_v43 = vmul.f32 %v1521_v60, %v1466_v53  ;;  %v1318_v14 = vpop.f32.mrf.mxu2  ;;  %v1367_v45 = vpop.f32.mrf.mxu3  ;;  %v6094_v53 = vld [vmem:[#allocation4 + $0x54] sm:$0xf0] }
 0x1ec   :  { %v1319_v50 = vadd.f32 %v1318_v14, %v6942_v5  ;;  %v8374_v14 = vld [vmem:[#allocation17_spill] sm:$0xff] }
 0x1ed   :  { %v7071_v3 = vadd.f32 %v1566_v43, %v6845_v4  ;;  %v5344_v43 = vor.u32 %v6094_v53, %v5343_v23  ;;  %v6093_v23 = vld [vmem:[#allocation4 + $0x1c] sm:$0xf] }
 0x1ee   :  { %v1368_v38 = vadd.f32 %v1367_v45, %v1319_v50  ;;  %v1419_v18 = vpop.f32.mrf.mxu0  ;;  %v1468_v6 = vpop.f32.mrf.mxu1  ;;  %v5345_v53 = vld [vmem:[#allocation4 + $0x58] sm:$0xf0] }
 0x1ef   :  { %v1420_v0 = vadd.f32 %v1419_v18, %v6928_v42  ;;  %2338 = vmatpush.bf16.msra.mxu2 %v5344_v43  ;;  %v5408_v18 = vor.u32 %v6110_v7, %v5407_v32 }
 0x1f0   :  { %v1565_v10 = vmul.f32 %v1521_v60, %v1368_v38  ;;  %1842 = vmatmul.bf16.gmra.mxu2 %v6699_v58  ;;  %1891 = vmatmul.bf16.gmra.mxu3 %v6701_v59 }
 0x1f1   :  { %v1469_v22 = vadd.f32 %v1468_v6, %v1420_v0  ;;  %1940 = vmatmul.bf16.gmra.mxu0 %v6699_v58  ;;  %1989 = vmatmul.bf16.gmra.mxu1 %v6701_v59  ;;  %v1529_v0 = vpop.permute.xlu1 %1528 }
 0x1f2   :  { %v7079_v4 = vadd.f32 %v1565_v10, %v6849_v31  ;;  %2387 = vmatpush.bf16.msra.mxu3 %v5408_v18  ;;  %v8376_v18 = vld [vmem:[#allocation15_spill] sm:$0xff] }
 0x1f3   :  { %v1568_v13 = vmul.f32 %v1525_v21, %v1469_v22  ;;  %v1321_v35 = vpop.f32.mrf.mxu2  ;;  %v1370_v41 = vpop.f32.mrf.mxu3 }
 0x1f4   :  { %v1322_v60 = vadd.f32 %v1321_v35, %v6942_v5 }
 0x1f5   :  { %v7083_v45 = vadd.f32 %v1568_v13, %v8374_v14  ;;  %v6109_v13 = vld [vmem:[#allocation4 + $0x41c] sm:$0xf] }
 0x1f6   :  { %v1371_v50 = vadd.f32 %v1370_v41, %v1322_v60  ;;  %v1421_v16 = vpop.f32.mrf.mxu0  ;;  %v1470_v38 = vpop.f32.mrf.mxu1  ;;  %v5409_v41 = vld [vmem:[#allocation4 + $0x458] sm:$0xf0] }
 0x1f7   :  { %8375 = vst [vmem:[#allocation17_spill] sm:$0xff] %v7083_v45  ;;  %v1422_v31 = vadd.f32 %v1421_v16, %v6928_v42  ;;  %v5348_v45 = vor.u32 %v6093_v23, %v5345_v53  ;;  %v5412_v32 = vor.u32 %v6109_v13, %v5409_v41  ;;  %v6140_v53 = vld [vmem:[#allocation4 + $0x3dc] sm:$0xf0]  ;;  %v8380_v41 = vld [vmem:[#allocation19_spill] sm:$0xff] }
 0x1f8   :  { %v1567_v6 = vmul.f32 %v1525_v21, %v1371_v50 }
 0x1f9   :  { %v1471_v10 = vadd.f32 %v1470_v38, %v1422_v31  ;;  %2436 = vmatpush.bf16.msra.mxu0 %v5348_v45  ;;  %2485 = vmatpush.bf16.msra.mxu1 %v5412_v32  ;;  %v8377_v31 = vld [vmem:[#allocation16_spill] sm:$0xff]  ;;  %v5527_v45 = vld [vmem:[#allocation4 + $0x3a0] sm:$0xf] }
 0x1fa   :  { %v7087_v22 = vadd.f32 %v1567_v6, %v6859_v40  ;;  %v1533_v6 = vpop.permute.xlu2 %1532  ;;  %v5591_v32 = vld [vmem:[#allocation4 + $0x7a0] sm:$0xf] }
 0x1fb   :  { %v1570_v35 = vmul.f32 %v1529_v0, %v1471_v10  ;;  %v1323_v43 = vpop.f32.mrf.mxu2  ;;  %v1372_v14 = vpop.f32.mrf.mxu3 }
 0x1fc   :  { %v1324_v60 = vadd.f32 %v1323_v43, %v6942_v5 }
 0x1fd   :  { %v7091_v7 = vadd.f32 %v1570_v35, %v6861_v63  ;;  %v8378_v63 = vld [vmem:[#allocation18_spill] sm:$0xff] }
 0x1fe   :  { %v1373_v21 = vadd.f32 %v1372_v14, %v1324_v60  ;;  %v1424_v50 = vpop.f32.mrf.mxu0  ;;  %v1473_v16 = vpop.f32.mrf.mxu1  ;;  %v5528_v14 = vor.u32 %v6140_v53, %v5527_v45  ;;  %v6139_v53 = vld [vmem:[#allocation4 + $0x3a4] sm:$0xf] }
 0x1ff   :  { %v1425_v40 = vadd.f32 %v1424_v50, %v6928_v42 }
 0x200   :  { %v1569_v38 = vmul.f32 %v1529_v0, %v1373_v21  ;;  %1847 = vmatmul.bf16.gmra.mxu2 %v8376_v18  ;;  %1896 = vmatmul.bf16.gmra.mxu3 %v8377_v31  ;;  %v6156_v21 = vld [vmem:[#allocation4 + $0x7dc] sm:$0xf0] }
 0x201   :  { %v1474_v10 = vadd.f32 %v1473_v16, %v1425_v40  ;;  %1945 = vmatmul.bf16.gmra.mxu0 %v8376_v18  ;;  %1994 = vmatmul.bf16.gmra.mxu1 %v8377_v31  ;;  %v5592_v31 = vor.u32 %v6156_v21, %v5591_v32 }
 0x202   :  { %v7099_v23 = vadd.f32 %v1569_v38, %v8378_v63  ;;  %2853 = vmatpush.bf16.msrb.mxu2 %v5528_v14 }
 0x203   :  { %v1572_v13 = vmul.f32 %v1533_v6, %v1474_v10  ;;  %v1326_v35 = vpop.f32.mrf.mxu2  ;;  %v1375_v43 = vpop.f32.mrf.mxu3  ;;  %2902 = vmatpush.bf16.msrb.mxu3 %v5592_v31 }
 0x204   :  { %8379 = vst [vmem:[#allocation18_spill] sm:$0xff] %v7099_v23  ;;  %v1327_v0 = vadd.f32 %v1326_v35, %v6942_v5  ;;  %v1537_v23 = vpop.permute.xlu0 %1536  ;;  %v5529_v35 = vld [vmem:[#allocation4 + $0x3e0] sm:$0xf0] }
 0x205   :  { %v7103_v60 = vadd.f32 %v1572_v13, %v8380_v41  ;;  %v6155_v13 = vld [vmem:[#allocation4 + $0x7a4] sm:$0xf]  ;;  %v5532_v18 = vor.u32 %v6139_v53, %v5529_v35 }
 0x206   :  { %v1376_v50 = vadd.f32 %v1375_v43, %v1327_v0  ;;  %v1426_v16 = vpop.f32.mrf.mxu0  ;;  %v1475_v40 = vpop.f32.mrf.mxu1  ;;  %v5593_v43 = vld [vmem:[#allocation4 + $0x7e0] sm:$0xf0] }
 0x207   :  { %8381 = vst [vmem:[#allocation19_spill] sm:$0xff] %v7103_v60  ;;  %v1427_v38 = vadd.f32 %v1426_v16, %v6928_v42  ;;  %v5596_v32 = vor.u32 %v6155_v13, %v5593_v43  ;;  %2951 = vmatpush.bf16.msrb.mxu0 %v5532_v18  ;;  %v5519_v18 = vld [vmem:[#allocation4 + $0x320] sm:$0xf] }
 0x208   :  { %v1571_v63 = vmul.f32 %v1533_v6, %v1376_v50 }
 0x209   :  { %v1476_v10 = vadd.f32 %v1475_v40, %v1427_v38  ;;  %3000 = vmatpush.bf16.msrb.mxu1 %v5596_v32  ;;  %v1541_v40 = vpop.permute.xlu1 %1540 }
 0x20a   :  { %v7107_v45 = vadd.f32 %v1571_v63, %v6875_v57 }
 0x20b   :  { %v1574_v41 = vmul.f32 %v1537_v23, %v1476_v10  ;;  %v1328_v14 = vpop.f32.mrf.mxu2  ;;  %v1377_v60 = vpop.f32.mrf.mxu3 }
 0x20c   :  { %v1329_v0 = vadd.f32 %v1328_v14, %v6942_v5  ;;  %v6154_v14 = vld [vmem:[#allocation4 + $0x75c] sm:$0xf0] }
 0x20d   :  { %v7111_v21 = vadd.f32 %v1574_v41, %v6877_v15  ;;  %v5583_v41 = vld [vmem:[#allocation4 + $0x720] sm:$0xf] }
 0x20e   :  { %v1378_v31 = vadd.f32 %v1377_v60, %v1329_v0  ;;  %v1429_v6 = vpop.f32.mrf.mxu0  ;;  %v1478_v50 = vpop.f32.mrf.mxu1  ;;  %v6138_v60 = vld [vmem:[#allocation4 + $0x35c] sm:$0xf0] }
 0x20f   :  { %v1430_v57 = vadd.f32 %v1429_v6, %v6928_v42  ;;  %v5520_v35 = vor.u32 %v6138_v60, %v5519_v18  ;;  %v6399_v6 = vmov 3   ;;  %v8383_v18 = vld [vmem:[#allocation22_spill] sm:$0xff]  ;;  %v8384_v60 = vld [vmem:[#allocation23_spill] sm:$0xff] }
 0x210   :  { %v1573_v16 = vmul.f32 %v1537_v23, %v1378_v31  ;;  %1852 = vmatmul.bf16.gmra.mxu2 %v6733_v55  ;;  %1901 = vmatmul.bf16.gmra.mxu3 %v6735_v56  ;;  %v5584_v31 = vor.u32 %v6154_v14, %v5583_v41 }
 0x211   :  { %v1479_v38 = vadd.f32 %v1478_v50, %v1430_v57  ;;  %1950 = vmatmul.bf16.gmra.mxu0 %v6733_v55  ;;  %1999 = vmatmul.bf16.gmra.mxu1 %v6735_v56  ;;  %v1545_v57 = vpop.permute.xlu2 %1544 }
 0x212   :  { %v7119_v15 = vadd.f32 %v1573_v16, %v6881_v8  ;;  %2854 = vmatpush.bf16.msrb.mxu2 %v5520_v35  ;;  %6279 = vset.pattern.permute.xlu0 %v6399_v6  ;;  %v1643_v16 = vld [vmem:[%s8300_s5 + $0x4] sm:$0x3]  ;;  %v8385_v35 = vld [vmem:[#allocation20_spill] sm:$0xff] }
 0x213   :  { %v1576_v63 = vmul.f32 %v1541_v40, %v1479_v38  ;;  %v1331_v10 = vpop.f32.mrf.mxu2  ;;  %v1380_v53 = vpop.f32.mrf.mxu3  ;;  %6280 = vset.pattern.permute.xlu1 %v6399_v6  ;;  %2903 = vmatpush.bf16.msrb.mxu3 %v5584_v31  ;;  %v7135_v14 = vperm.slane %v1643_v16, 1 }
 0x214   :  { %v1332_v23 = vadd.f32 %v1331_v10, %v6942_v5  ;;  %2536 = vperm.xlu1 %6280, %v8383_v18   ;;  %6278 = vset.pattern.permute.xlu2 %v6399_v6  ;;  %v5521_v10 = vld [vmem:[#allocation4 + $0x360] sm:$0xf0] }
 0x215   :  { %v7123_v13 = vadd.f32 %v1576_v63, %v6899_v39  ;;  %v8382_v39 = vld [vmem:[#allocation21_spill] sm:$0xff]  ;;  %2528 = vperm.xlu2 %6278, %v8385_v35   ;;  %v8387_v35 = vld [vmem:[#allocation11_spill] sm:$0xff] }
 0x216   :  { %v1381_v43 = vadd.f32 %v1380_v53, %v1332_v23  ;;  %v1431_v0 = vpop.f32.mrf.mxu0  ;;  %v1480_v32 = vpop.f32.mrf.mxu1  ;;  %2532 = vperm.xlu0 %6279, %v8382_v39   ;;  %v6153_v53 = vld [vmem:[#allocation4 + $0x724] sm:$0xf] }
 0x217   :  { %v1432_v8 = vadd.f32 %v1431_v0, %v6928_v42  ;;  %v6137_v42 = vld [vmem:[#allocation4 + $0x324] sm:$0xf] }
 0x218   :  { %v1575_v50 = vmul.f32 %v1541_v40, %v1381_v43  ;;  %v5524_v43 = vor.u32 %v6137_v42, %v5521_v10  ;;  %v5585_v0 = vld [vmem:[#allocation4 + $0x760] sm:$0xf0]  ;;  %v2007_v42 = vpop.permute.xlu0 %2006  ;;  %v7144_v10 = vperm.slane %v1643_v16, 0  ;;  %v8392_v16 = vld [vmem:[#allocation29_spill] sm:$0xff] }
 0x219   :  { %v1481_v38 = vadd.f32 %v1480_v32, %v1432_v8  ;;  %v5588_v31 = vor.u32 %v6153_v53, %v5585_v0  ;;  %v8386_v8 = vld [vmem:[#allocation26_spill] sm:$0xff]  ;;  %v8388_v53 = vld [vmem:[#allocation28_spill] sm:$0xff] }
 0x21a   :  { %v7132_v63 = vadd.f32 %v1575_v50, %v8384_v60  ;;  %2952 = vmatpush.bf16.msrb.mxu0 %v5524_v43  ;;  %v8390_v43 = vld [vmem:[#allocation27_spill] sm:$0xff] }
 0x21b   :  { %v1578_v40 = vmul.f32 %v1545_v57, %v1481_v38  ;;  %v1333_v23 = vpop.f32.mrf.mxu2  ;;  %v1382_v41 = vpop.f32.mrf.mxu3  ;;  %3001 = vmatpush.bf16.msrb.mxu1 %v5588_v31 }
 0x21c   :  { %v1334_v32 = vadd.f32 %v1333_v23, %v6942_v5  ;;  %v5511_v23 = vld [vmem:[#allocation4 + $0x2a0] sm:$0xf]  ;;  %2544 = vperm.xlu1 %6280, %v8390_v43  }
 0x21d   :  { %v7139_v6 = vadd.f32 %v1578_v40, %v8386_v8 }
 0x21e   :  { %v1383_v50 = vadd.f32 %v1382_v41, %v1334_v32  ;;  %v1916_v39 = vpop.f32.mrf.mxu0  ;;  %v1965_v18 = vpop.f32.mrf.mxu1  ;;  %v6136_v41 = vld [vmem:[#allocation4 + $0x2dc] sm:$0xf0]  ;;  %2552 = vperm.xlu0 %6279, %v8392_v16   ;;  %v5513_v16 = vld [vmem:[#allocation4 + $0x2e0] sm:$0xf0] }
 0x21f   :  { %v1917_v60 = vadd.f32 %v1916_v39, %v7135_v14  ;;  %v5512_v8 = vor.u32 %v6136_v41, %v5511_v23 }
 0x220   :  { %v1577_v38 = vmul.f32 %v1545_v57, %v1383_v50  ;;  %2339 = vmatmul.bf16.vlgmr.msra.gmra.mxu2 %v6562_v36  ;;  %2388 = vmatmul.bf16.vlgmr.msra.gmra.mxu3 %v8387_v35  ;;  %v8391_v57 = vld [vmem:[#allocation24_spill] sm:$0xff] }
 0x221   :  { %v1966_v5 = vadd.f32 %v1965_v18, %v1917_v60  ;;  %2437 = vmatmul.bf16.vlgmr.msra.gmra.mxu0 %v6562_v36  ;;  %2486 = vmatmul.bf16.vlgmr.msra.gmra.mxu1 %v8387_v35  ;;  %v5575_v18 = vld [vmem:[#allocation4 + $0x6a0] sm:$0xf]  ;;  %v2011_v35 = vpop.permute.xlu1 %2010 }
 0x222   :  { %v7149_v40 = vadd.f32 %v1577_v38, %v8388_v53  ;;  %2540 = vperm.xlu2 %6278, %v8391_v57   ;;  %2855 = vmatpush.bf16.msrb.mxu2 %v5512_v8  ;;  %v6152_v60 = vld [vmem:[#allocation4 + $0x6dc] sm:$0xf0]  ;;  %v8395_v8 = vld [vmem:[#allocation25_spill] sm:$0xff] }
 0x223   :  { %v2070_v0 = vmul.f32 %v2007_v42, %v1966_v5  ;;  %v1818_v32 = vpop.f32.mrf.mxu2  ;;  %v1867_v31 = vpop.f32.mrf.mxu3  ;;  %v5576_v43 = vor.u32 %v6152_v60, %v5575_v18  ;;  %v5577_v60 = vld [vmem:[#allocation4 + $0x6e0] sm:$0xf0] }
 0x224   :  { %8389 = vst [vmem:[#allocation21_spill] sm:$0xff] %v7149_v40  ;;  %v1819_v50 = vadd.f32 %v1818_v32, %v7144_v10  ;;  %v6135_v32 = vld [vmem:[#allocation4 + $0x2a4] sm:$0xf] }
 0x225   :  { %v7156_v39 = vadd.f32 %v2070_v0, %v6961_v9  ;;  %2904 = vmatpush.bf16.msrb.mxu3 %v5576_v43  ;;  %v6151_v9 = vld [vmem:[#allocation4 + $0x6a4] sm:$0xf]  ;;  %v5516_v18 = vor.u32 %v6135_v32, %v5513_v16  ;;  %v6134_v32 = vld [vmem:[#allocation4 + $0x25c] sm:$0xf0] }
 0x226   :  { %v1868_v38 = vadd.f32 %v1867_v31, %v1819_v50  ;;  %v1918_v53 = vpop.f32.mrf.mxu0  ;;  %v1967_v40 = vpop.f32.mrf.mxu1  ;;  %v8394_v0 = vld [vmem:[#allocation30_spill] sm:$0xff]  ;;  %2564 = vperm.xlu0 %6279, %v6970_v11  }
 0x227   :  { %8393 = vst [vmem:[#allocation22_spill] sm:$0xff] %v7156_v39  ;;  %v1919_v57 = vadd.f32 %v1918_v53, %v7135_v14  ;;  %2556 = vperm.xlu1 %6280, %v8394_v0   ;;  %2953 = vmatpush.bf16.msrb.mxu0 %v5516_v18  ;;  %v6150_v18 = vld [vmem:[#allocation4 + $0x65c] sm:$0xf0] }
 0x228   :  { %v2069_v5 = vmul.f32 %v2007_v42, %v1868_v38 }
 0x229   :  { %v1968_v23 = vadd.f32 %v1967_v40, %v1919_v57  ;;  %v5580_v40 = vor.u32 %v6151_v9, %v5577_v60 }
 0x22a   :  { %v7160_v41 = vadd.f32 %v2069_v5, %v6965_v20  ;;  %2548 = vperm.xlu2 %6278, %v8395_v8  }
 0x22b   :  { %v2072_v31 = vmul.f32 %v2011_v35, %v1968_v23  ;;  %v1820_v50 = vpop.f32.mrf.mxu2  ;;  %v1869_v39 = vpop.f32.mrf.mxu3  ;;  %3002 = vmatpush.bf16.msrb.mxu1 %v5580_v40 }
 0x22c   :  { %v1821_v42 = vadd.f32 %v1820_v50, %v7144_v10  ;;  %v2015_v23 = vpop.permute.xlu2 %2014 }
 0x22d   :  { %v7167_v20 = vadd.f32 %v2072_v31, %v6982_v44  ;;  %v8396_v31 = vld [vmem:[#allocation31_spill] sm:$0xff] }
 0x22e   :  { %v1870_v38 = vadd.f32 %v1869_v39, %v1821_v42  ;;  %v1921_v53 = vpop.f32.mrf.mxu0  ;;  %v1970_v43 = vpop.f32.mrf.mxu1  ;;  %v5503_v39 = vld [vmem:[#allocation4 + $0x220] sm:$0xf]  ;;  %2576 = vperm.xlu0 %6279, %v6995_v46  }
 0x22f   :  { %v1922_v57 = vadd.f32 %v1921_v53, %v7135_v14  ;;  %2568 = vperm.xlu1 %6280, %v6978_v24   ;;  %v5504_v8 = vor.u32 %v6134_v32, %v5503_v39  ;;  %v5567_v24 = vld [vmem:[#allocation4 + $0x620] sm:$0xf]  ;;  %v5505_v39 = vld [vmem:[#allocation4 + $0x260] sm:$0xf0] }
 0x230   :  { %v2071_v5 = vmul.f32 %v2011_v35, %v1870_v38  ;;  %2344 = vmatmul.bf16.gmra.mxu2 %v6588_v25  ;;  %2393 = vmatmul.bf16.gmra.mxu3 %v6590_v26  ;;  %v7181_v35 = vld [vmem:[%s8296_s1 + $0x40] sm:$0xff]  ;;  %v5568_v38 = vor.u32 %v6150_v18, %v5567_v24 }
 0x231   :  { %v1971_v11 = vadd.f32 %v1970_v43, %v1922_v57  ;;  %2442 = vmatmul.bf16.gmra.mxu0 %v6588_v25  ;;  %2491 = vmatmul.bf16.gmra.mxu1 %v6590_v26  ;;  %v2019_v57 = vpop.permute.xlu1 %2018  ;;  %v6149_v32 = vld [vmem:[#allocation4 + $0x624] sm:$0xf] }
 0x232   :  { %v7175_v44 = vadd.f32 %v2071_v5, %v6990_v12  ;;  %2560 = vperm.xlu2 %6278, %v7181_v35   ;;  %2856 = vmatpush.bf16.msrb.mxu2 %v5504_v8 }
 0x233   :  { %v2074_v16 = vmul.f32 %v2015_v23, %v1971_v11  ;;  %v1823_v9 = vpop.f32.mrf.mxu2  ;;  %v1872_v0 = vpop.f32.mrf.mxu3  ;;  %2905 = vmatpush.bf16.msrb.mxu3 %v5568_v38  ;;  %v6133_v11 = vld [vmem:[#allocation4 + $0x224] sm:$0xf] }
 0x234   :  { %v1824_v12 = vadd.f32 %v1823_v9, %v7144_v10  ;;  %v5508_v8 = vor.u32 %v6133_v11, %v5505_v39  ;;  %v5495_v39 = vld [vmem:[#allocation4 + $0x1a0] sm:$0xf] }
 0x235   :  { %v7187_v50 = vadd.f32 %v2074_v16, %v8396_v31  ;;  %v7196_v16 = vld [vmem:[%s8296_s1 + $0x68] sm:$0xff]  ;;  %v7208_v31 = vld [vmem:[%s8296_s1 + $0x78] sm:$0xff] }
 0x236   :  { %v1873_v60 = vadd.f32 %v1872_v0, %v1824_v12  ;;  %v1923_v42 = vpop.f32.mrf.mxu0  ;;  %v1972_v40 = vpop.f32.mrf.mxu1  ;;  %v5569_v12 = vld [vmem:[#allocation4 + $0x660] sm:$0xf0]  ;;  %2588 = vperm.xlu0 %6279, %v7208_v31   ;;  %2954 = vmatpush.bf16.msrb.mxu0 %v5508_v8 }
 0x237   :  { %v1924_v53 = vadd.f32 %v1923_v42, %v7135_v14  ;;  %2580 = vperm.xlu1 %6280, %v7196_v16   ;;  %v5572_v18 = vor.u32 %v6149_v32, %v5569_v12  ;;  %v6132_v32 = vld [vmem:[#allocation4 + $0x1dc] sm:$0xf0] }
 0x238   :  { %v2073_v43 = vmul.f32 %v2015_v23, %v1873_v60  ;;  %v7202_v23 = vld [vmem:[%s8296_s1 + $0x58] sm:$0xff]  ;;  %v5496_v8 = vor.u32 %v6132_v32, %v5495_v39  ;;  %v6131_v32 = vld [vmem:[#allocation4 + $0x1a4] sm:$0xf] }
 0x239   :  { %v1973_v5 = vadd.f32 %v1972_v40, %v1924_v53  ;;  %3003 = vmatpush.bf16.msrb.mxu1 %v5572_v18  ;;  %v6148_v18 = vld [vmem:[#allocation4 + $0x5dc] sm:$0xf0] }
 0x23a   :  { %v7191_v46 = vadd.f32 %v2073_v43, %v7006_v52  ;;  %2572 = vperm.xlu2 %6278, %v7202_v23   ;;  %2857 = vmatpush.bf16.msrb.mxu2 %v5496_v8 }
 0x23b   :  { %v2076_v9 = vmul.f32 %v2019_v57, %v1973_v5  ;;  %v1825_v52 = vpop.f32.mrf.mxu2  ;;  %v1874_v0 = vpop.f32.mrf.mxu3 }
 0x23c   :  { %v1826_v24 = vadd.f32 %v1825_v52, %v7144_v10  ;;  %v2023_v5 = vpop.permute.xlu2 %2022 }
 0x23d   :  { %v7213_v60 = vadd.f32 %v2076_v9, %v7011_v61  ;;  %v7226_v9 = vld [vmem:[%s8296_s1 + $0x70] sm:$0xff] }
 0x23e   :  { %v1875_v42 = vadd.f32 %v1874_v0, %v1826_v24  ;;  %v1926_v40 = vpop.f32.mrf.mxu0  ;;  %v1975_v38 = vpop.f32.mrf.mxu1 }
 0x23f   :  { %v1927_v53 = vadd.f32 %v1926_v40, %v7135_v14 }
 0x240   :  { %v2075_v43 = vmul.f32 %v2019_v57, %v1875_v42  ;;  %2349 = vmatmul.bf16.gmra.mxu2 %v6615_v33  ;;  %2398 = vmatmul.bf16.gmra.mxu3 %v6617_v34 }
 0x241   :  { %v1976_v11 = vadd.f32 %v1975_v38, %v1927_v53  ;;  %2447 = vmatmul.bf16.gmra.mxu0 %v6615_v33  ;;  %2496 = vmatmul.bf16.gmra.mxu1 %v6617_v34  ;;  %v2027_v34 = vpop.permute.xlu0 %2026 }
 0x242   :  { %v7221_v61 = vadd.f32 %v2075_v43, %v7019_v54  ;;  %2584 = vperm.xlu2 %6278, %v7226_v9   ;;  %v5559_v54 = vld [vmem:[#allocation4 + $0x5a0] sm:$0xf] }
 0x243   :  { %v2078_v57 = vmul.f32 %v2023_v5, %v1976_v11  ;;  %v1828_v52 = vpop.f32.mrf.mxu2  ;;  %v1877_v0 = vpop.f32.mrf.mxu3  ;;  %v5560_v53 = vor.u32 %v6148_v18, %v5559_v54 }
 0x244   :  { %8397 = vst [vmem:[#allocation23_spill] sm:$0xff] %v7221_v61  ;;  %v1829_v12 = vadd.f32 %v1828_v52, %v7144_v10  ;;  %v5497_v52 = vld [vmem:[#allocation4 + $0x1e0] sm:$0xf0] }
 0x245   :  { %v7231_v24 = vadd.f32 %v2078_v57, %v7023_v48  ;;  %2906 = vmatpush.bf16.msrb.mxu3 %v5560_v53  ;;  %v6147_v48 = vld [vmem:[#allocation4 + $0x5a4] sm:$0xf]  ;;  %v5500_v33 = vor.u32 %v6131_v32, %v5497_v52 }
 0x246   :  { %v1878_v42 = vadd.f32 %v1877_v0, %v1829_v12  ;;  %v1928_v40 = vpop.f32.mrf.mxu0  ;;  %v1977_v38 = vpop.f32.mrf.mxu1  ;;  %v5561_v0 = vld [vmem:[#allocation4 + $0x5e0] sm:$0xf0] }
 0x247   :  { %8398 = vst [vmem:[#allocation20_spill] sm:$0xff] %v7231_v24  ;;  %v1929_v43 = vadd.f32 %v1928_v40, %v7135_v14  ;;  %v5564_v54 = vor.u32 %v6147_v48, %v5561_v0  ;;  %2955 = vmatpush.bf16.msrb.mxu0 %v5500_v33  ;;  %v5487_v33 = vld [vmem:[#allocation4 + $0x120] sm:$0xf] }
 0x248   :  { %v2077_v61 = vmul.f32 %v2023_v5, %v1878_v42 }
 0x249   :  { %v1978_v11 = vadd.f32 %v1977_v38, %v1929_v43  ;;  %3004 = vmatpush.bf16.msrb.mxu1 %v5564_v54  ;;  %v2031_v38 = vpop.permute.xlu1 %2030 }
 0x24a   :  { %v7235_v39 = vadd.f32 %v2077_v61, %v7027_v37 }
 0x24b   :  { %v2080_v57 = vmul.f32 %v2027_v34, %v1978_v11  ;;  %v1830_v8 = vpop.f32.mrf.mxu2  ;;  %v1879_v24 = vpop.f32.mrf.mxu3 }
 0x24c   :  { %v1831_v12 = vadd.f32 %v1830_v8, %v7144_v10  ;;  %v6146_v8 = vld [vmem:[#allocation4 + $0x55c] sm:$0xf0] }
 0x24d   :  { %v7239_v18 = vadd.f32 %v2080_v57, %v7031_v62  ;;  %v5551_v57 = vld [vmem:[#allocation4 + $0x520] sm:$0xf] }
 0x24e   :  { %v1880_v5 = vadd.f32 %v1879_v24, %v1831_v12  ;;  %v1931_v42 = vpop.f32.mrf.mxu0  ;;  %v1980_v40 = vpop.f32.mrf.mxu1  ;;  %v6130_v24 = vld [vmem:[#allocation4 + $0x15c] sm:$0xf0] }
 0x24f   :  { %v1932_v37 = vadd.f32 %v1931_v42, %v7135_v14  ;;  %v5488_v52 = vor.u32 %v6130_v24, %v5487_v33  ;;  %v5489_v33 = vld [vmem:[#allocation4 + $0x160] sm:$0xf0] }
 0x250   :  { %v2079_v61 = vmul.f32 %v2027_v34, %v1880_v5  ;;  %2354 = vmatmul.bf16.gmra.mxu2 %v6655_v47  ;;  %2403 = vmatmul.bf16.gmra.mxu3 %v6657_v49  ;;  %v5552_v5 = vor.u32 %v6146_v8, %v5551_v57 }
 0x251   :  { %v1981_v53 = vadd.f32 %v1980_v40, %v1932_v37  ;;  %2452 = vmatmul.bf16.gmra.mxu0 %v6655_v47  ;;  %2501 = vmatmul.bf16.gmra.mxu1 %v6657_v49  ;;  %v2035_v40 = vpop.permute.xlu2 %2034 }
 0x252   :  { %v7247_v62 = vadd.f32 %v2079_v61, %v7039_v28  ;;  %2858 = vmatpush.bf16.msrb.mxu2 %v5488_v52  ;;  %2907 = vmatpush.bf16.msrb.mxu3 %v5552_v5  ;;  %v2039_v5 = vpop.permute.xlu0 %2038 }
 0x253   :  { %v2082_v43 = vmul.f32 %v2031_v38, %v1981_v53  ;;  %v1833_v11 = vpop.f32.mrf.mxu2  ;;  %v1882_v32 = vpop.f32.mrf.mxu3  ;;  %v6129_v53 = vld [vmem:[#allocation4 + $0x124] sm:$0xf] }
 0x254   :  { %v1834_v34 = vadd.f32 %v1833_v11, %v7144_v10  ;;  %v5492_v52 = vor.u32 %v6129_v53, %v5489_v33 }
 0x255   :  { %v7251_v48 = vadd.f32 %v2082_v43, %v7043_v19  ;;  %v6145_v19 = vld [vmem:[#allocation4 + $0x524] sm:$0xf] }
 0x256   :  { %v1883_v0 = vadd.f32 %v1882_v32, %v1834_v34  ;;  %v1933_v12 = vpop.f32.mrf.mxu0  ;;  %v1982_v54 = vpop.f32.mrf.mxu1  ;;  %v5553_v32 = vld [vmem:[#allocation4 + $0x560] sm:$0xf0]  ;;  %2956 = vmatpush.bf16.msrb.mxu0 %v5492_v52  ;;  %v6144_v52 = vld [vmem:[#allocation4 + $0x4dc] sm:$0xf0] }
 0x257   :  { %v1934_v28 = vadd.f32 %v1933_v12, %v7135_v14  ;;  %v5556_v57 = vor.u32 %v6145_v19, %v5553_v32 }
 0x258   :  { %v2081_v42 = vmul.f32 %v2031_v38, %v1883_v0 }
 0x259   :  { %v1983_v37 = vadd.f32 %v1982_v54, %v1934_v28  ;;  %3005 = vmatpush.bf16.msrb.mxu1 %v5556_v57 }
 0x25a   :  { %v7255_v61 = vadd.f32 %v2081_v42, %v7047_v29  ;;  %v5479_v42 = vld [vmem:[#allocation4 + $0xa0] sm:$0xf] }
 0x25b   :  { %v2084_v24 = vmul.f32 %v2035_v40, %v1983_v37  ;;  %v1835_v43 = vpop.f32.mrf.mxu2  ;;  %v1884_v11 = vpop.f32.mrf.mxu3  ;;  %v6128_v37 = vld [vmem:[#allocation4 + $0xdc] sm:$0xf0] }
 0x25c   :  { %v1836_v34 = vadd.f32 %v1835_v43, %v7144_v10 }
 0x25d   :  { %v7259_v8 = vadd.f32 %v2084_v24, %v7051_v27  ;;  %v5480_v24 = vor.u32 %v6128_v37, %v5479_v42  ;;  %v5481_v42 = vld [vmem:[#allocation4 + $0xe0] sm:$0xf0] }
 0x25e   :  { %v1885_v38 = vadd.f32 %v1884_v11, %v1836_v34  ;;  %v1936_v0 = vpop.f32.mrf.mxu0  ;;  %v1985_v12 = vpop.f32.mrf.mxu1  ;;  %v5543_v11 = vld [vmem:[#allocation4 + $0x4a0] sm:$0xf] }
 0x25f   :  { %v1937_v29 = vadd.f32 %v1936_v0, %v7135_v14  ;;  %2859 = vmatpush.bf16.msrb.mxu2 %v5480_v24 }
 0x260   :  { %v2083_v54 = vmul.f32 %v2035_v40, %v1885_v38  ;;  %2359 = vmatmul.bf16.gmra.mxu2 %v6679_v30  ;;  %2408 = vmatmul.bf16.gmra.mxu3 %v6681_v51  ;;  %v5544_v38 = vor.u32 %v6144_v52, %v5543_v11 }
 0x261   :  { %v1986_v28 = vadd.f32 %v1985_v12, %v1937_v29  ;;  %2457 = vmatmul.bf16.gmra.mxu0 %v6679_v30  ;;  %2506 = vmatmul.bf16.gmra.mxu1 %v6681_v51  ;;  %v2043_v12 = vpop.permute.xlu1 %2042 }
 0x262   :  { %v7267_v27 = vadd.f32 %v2083_v54, %v7059_v1  ;;  %2908 = vmatpush.bf16.msrb.mxu3 %v5544_v38  ;;  %v2047_v38 = vpop.permute.xlu2 %2046 }
 0x263   :  { %v2086_v53 = vmul.f32 %v2039_v5, %v1986_v28  ;;  %v1838_v33 = vpop.f32.mrf.mxu2  ;;  %v1887_v19 = vpop.f32.mrf.mxu3  ;;  %v6127_v28 = vld [vmem:[#allocation4 + $0xa4] sm:$0xf] }
 0x264   :  { %v1839_v40 = vadd.f32 %v1838_v33, %v7144_v10  ;;  %v5484_v24 = vor.u32 %v6127_v28, %v5481_v42 }
 0x265   :  { %v7271_v43 = vadd.f32 %v2086_v53, %v7063_v2  ;;  %v6143_v2 = vld [vmem:[#allocation4 + $0x4a4] sm:$0xf] }
 0x266   :  { %v1888_v32 = vadd.f32 %v1887_v19, %v1839_v40  ;;  %v1938_v34 = vpop.f32.mrf.mxu0  ;;  %v1987_v57 = vpop.f32.mrf.mxu1  ;;  %v5545_v19 = vld [vmem:[#allocation4 + $0x4e0] sm:$0xf0]  ;;  %2957 = vmatpush.bf16.msrb.mxu0 %v5484_v24  ;;  %v5535_v24 = vld [vmem:[#allocation4 + $0x420] sm:$0xf] }
 0x267   :  { %v1939_v1 = vadd.f32 %v1938_v34, %v7135_v14  ;;  %v5548_v11 = vor.u32 %v6143_v2, %v5545_v19  ;;  %v6142_v19 = vld [vmem:[#allocation4 + $0x45c] sm:$0xf0] }
 0x268   :  { %v2085_v0 = vmul.f32 %v2039_v5, %v1888_v32 }
 0x269   :  { %v1988_v29 = vadd.f32 %v1987_v57, %v1939_v1  ;;  %3006 = vmatpush.bf16.msrb.mxu1 %v5548_v11 }
 0x26a   :  { %v7275_v54 = vadd.f32 %v2085_v0, %v7067_v17  ;;  %v5471_v0 = vld [vmem:[#allocation4 + $0x20] sm:$0xf] }
 0x26b   :  { %v2088_v37 = vmul.f32 %v2043_v12, %v1988_v29  ;;  %v1840_v53 = vpop.f32.mrf.mxu2  ;;  %v1889_v33 = vpop.f32.mrf.mxu3  ;;  %v6126_v29 = vld [vmem:[#allocation4 + $0x5c] sm:$0xf0] }
 0x26c   :  { %v1841_v40 = vadd.f32 %v1840_v53, %v7144_v10  ;;  %v8399_v53 = vld [vmem:[#allocation17_spill] sm:$0xff] }
 0x26d   :  { %v7279_v52 = vadd.f32 %v2088_v37, %v7071_v3  ;;  %v5472_v37 = vor.u32 %v6126_v29, %v5471_v0  ;;  %v6125_v0 = vld [vmem:[#allocation4 + $0x24] sm:$0xf] }
 0x26e   :  { %v1890_v5 = vadd.f32 %v1889_v33, %v1841_v40  ;;  %v1941_v32 = vpop.f32.mrf.mxu0  ;;  %v1990_v34 = vpop.f32.mrf.mxu1  ;;  %v5473_v29 = vld [vmem:[#allocation4 + $0x60] sm:$0xf0] }
 0x26f   :  { %v1942_v17 = vadd.f32 %v1941_v32, %v7135_v14  ;;  %2860 = vmatpush.bf16.msrb.mxu2 %v5472_v37  ;;  %v5536_v32 = vor.u32 %v6142_v19, %v5535_v24 }
 0x270   :  { %v2087_v57 = vmul.f32 %v2043_v12, %v1890_v5  ;;  %2364 = vmatmul.bf16.gmra.mxu2 %v6699_v58  ;;  %2413 = vmatmul.bf16.gmra.mxu3 %v6701_v59 }
 0x271   :  { %v1991_v1 = vadd.f32 %v1990_v34, %v1942_v17  ;;  %2462 = vmatmul.bf16.gmra.mxu0 %v6699_v58  ;;  %2511 = vmatmul.bf16.gmra.mxu1 %v6701_v59  ;;  %v2051_v17 = vpop.permute.xlu0 %2050 }
 0x272   :  { %v7287_v3 = vadd.f32 %v2087_v57, %v7079_v4  ;;  %2909 = vmatpush.bf16.msrb.mxu3 %v5536_v32  ;;  %v8401_v32 = vld [vmem:[#allocation15_spill] sm:$0xff] }
 0x273   :  { %v2090_v28 = vmul.f32 %v2047_v38, %v1991_v1  ;;  %v1843_v42 = vpop.f32.mrf.mxu2  ;;  %v1892_v2 = vpop.f32.mrf.mxu3 }
 0x274   :  { %v1844_v12 = vadd.f32 %v1843_v42, %v7144_v10 }
 0x275   :  { %v7291_v33 = vadd.f32 %v2090_v28, %v8399_v53  ;;  %v6141_v28 = vld [vmem:[#allocation4 + $0x424] sm:$0xf] }
 0x276   :  { %v1893_v40 = vadd.f32 %v1892_v2, %v1844_v12  ;;  %v1943_v11 = vpop.f32.mrf.mxu0  ;;  %v1992_v5 = vpop.f32.mrf.mxu1  ;;  %v5537_v2 = vld [vmem:[#allocation4 + $0x460] sm:$0xf0] }
 0x277   :  { %8400 = vst [vmem:[#allocation26_spill] sm:$0xff] %v7291_v33  ;;  %v1944_v4 = vadd.f32 %v1943_v11, %v7135_v14  ;;  %v5476_v33 = vor.u32 %v6125_v0, %v5473_v29  ;;  %v5540_v24 = vor.u32 %v6141_v28, %v5537_v2  ;;  %v6172_v29 = vld [vmem:[#allocation4 + $0x3e4] sm:$0xf0] }
 0x278   :  { %v2089_v34 = vmul.f32 %v2047_v38, %v1893_v40  ;;  %v8405_v2 = vld [vmem:[#allocation19_spill] sm:$0xff] }
 0x279   :  { %v1993_v57 = vadd.f32 %v1992_v5, %v1944_v4  ;;  %2958 = vmatpush.bf16.msrb.mxu0 %v5476_v33  ;;  %3007 = vmatpush.bf16.msrb.mxu1 %v5540_v24  ;;  %v8402_v4 = vld [vmem:[#allocation16_spill] sm:$0xff]  ;;  %v5655_v33 = vld [vmem:[#allocation4 + $0x3a8] sm:$0xf] }
 0x27a   :  { %v7295_v1 = vadd.f32 %v2089_v34, %v7087_v22  ;;  %v2055_v34 = vpop.permute.xlu1 %2054  ;;  %v5719_v24 = vld [vmem:[#allocation4 + $0x7a8] sm:$0xf] }
 0x27b   :  { %v2092_v42 = vmul.f32 %v2051_v17, %v1993_v57  ;;  %v1845_v37 = vpop.f32.mrf.mxu2  ;;  %v1894_v53 = vpop.f32.mrf.mxu3 }
 0x27c   :  { %v1846_v12 = vadd.f32 %v1845_v37, %v7144_v10 }
 0x27d   :  { %v7299_v19 = vadd.f32 %v2092_v42, %v7091_v7  ;;  %v8403_v7 = vld [vmem:[#allocation18_spill] sm:$0xff] }
 0x27e   :  { %v1895_v38 = vadd.f32 %v1894_v53, %v1846_v12  ;;  %v1946_v40 = vpop.f32.mrf.mxu0  ;;  %v1995_v11 = vpop.f32.mrf.mxu1  ;;  %v5656_v53 = vor.u32 %v6172_v29, %v5655_v33  ;;  %v6171_v29 = vld [vmem:[#allocation4 + $0x3ac] sm:$0xf] }
 0x27f   :  { %v1947_v22 = vadd.f32 %v1946_v40, %v7135_v14 }
 0x280   :  { %v2091_v5 = vmul.f32 %v2051_v17, %v1895_v38  ;;  %2369 = vmatmul.bf16.gmra.mxu2 %v8401_v32  ;;  %2418 = vmatmul.bf16.gmra.mxu3 %v8402_v4  ;;  %v6188_v38 = vld [vmem:[#allocation4 + $0x7e4] sm:$0xf0] }
 0x281   :  { %v1996_v57 = vadd.f32 %v1995_v11, %v1947_v22  ;;  %2467 = vmatmul.bf16.gmra.mxu0 %v8401_v32  ;;  %2516 = vmatmul.bf16.gmra.mxu1 %v8402_v4  ;;  %v5720_v4 = vor.u32 %v6188_v38, %v5719_v24 }
 0x282   :  { %v7307_v0 = vadd.f32 %v2091_v5, %v8403_v7  ;;  %3375 = vmatpush.bf16.msra.mxu2 %v5656_v53 }
 0x283   :  { %v2094_v28 = vmul.f32 %v2055_v34, %v1996_v57  ;;  %v1848_v42 = vpop.f32.mrf.mxu2  ;;  %v1897_v37 = vpop.f32.mrf.mxu3  ;;  %3424 = vmatpush.bf16.msra.mxu3 %v5720_v4 }
 0x284   :  { %8404 = vst [vmem:[#allocation28_spill] sm:$0xff] %v7307_v0  ;;  %v1849_v17 = vadd.f32 %v1848_v42, %v7144_v10  ;;  %v2059_v0 = vpop.permute.xlu2 %2058  ;;  %v5657_v42 = vld [vmem:[#allocation4 + $0x3e8] sm:$0xf0] }
 0x285   :  { %v7311_v12 = vadd.f32 %v2094_v28, %v8405_v2  ;;  %v6187_v28 = vld [vmem:[#allocation4 + $0x7ac] sm:$0xf]  ;;  %v5660_v32 = vor.u32 %v6171_v29, %v5657_v42 }
 0x286   :  { %v1898_v40 = vadd.f32 %v1897_v37, %v1849_v17  ;;  %v1948_v11 = vpop.f32.mrf.mxu0  ;;  %v1997_v22 = vpop.f32.mrf.mxu1  ;;  %v5721_v37 = vld [vmem:[#allocation4 + $0x7e8] sm:$0xf0] }
 0x287   :  { %8406 = vst [vmem:[#allocation27_spill] sm:$0xff] %v7311_v12  ;;  %v1949_v5 = vadd.f32 %v1948_v11, %v7135_v14  ;;  %v5724_v24 = vor.u32 %v6187_v28, %v5721_v37  ;;  %3473 = vmatpush.bf16.msra.mxu0 %v5660_v32  ;;  %v6400_v11 = vmov 4   ;;  %v7332_v32 = vld [vmem:[%s8296_s1] sm:$0xff] }
 0x288   :  { %v2093_v7 = vmul.f32 %v2055_v34, %v1898_v40  ;;  %6281 = vset.pattern.permute.xlu1 %v6400_v11  ;;  %6283 = vset.pattern.permute.xlu0 %v6400_v11 }
 0x289   :  { %v1998_v57 = vadd.f32 %v1997_v22, %v1949_v5  ;;  %3522 = vmatpush.bf16.msra.mxu1 %v5724_v24  ;;  %v2063_v5 = vpop.permute.xlu0 %2062  ;;  %3050 = vperm.xlu1 %6281, %v7332_v32   ;;  %v6186_v24 = vld [vmem:[#allocation4 + $0x764] sm:$0xf0] }
 0x28a   :  { %v7315_v33 = vadd.f32 %v2093_v7, %v7107_v45  ;;  %6282 = vset.pattern.permute.xlu2 %v6400_v11 }
 0x28b   :  { %v2096_v2 = vmul.f32 %v2059_v0, %v1998_v57  ;;  %v1850_v53 = vpop.f32.mrf.mxu2  ;;  %v1899_v12 = vpop.f32.mrf.mxu3  ;;  %v7338_v57 = vld [vmem:[%s8296_s1 + $0x10] sm:$0xff] }
 0x28c   :  { %v1851_v17 = vadd.f32 %v1850_v53, %v7144_v10  ;;  %3058 = vperm.xlu0 %6283, %v7338_v57   ;;  %v7345_v53 = vld [vmem:[%s8296_s1 + $0x8] sm:$0xff] }
 0x28d   :  { %v7319_v38 = vadd.f32 %v2096_v2, %v7111_v21  ;;  %3054 = vperm.xlu2 %6282, %v7345_v53  }
 0x28e   :  { %v1900_v4 = vadd.f32 %v1899_v12, %v1851_v17  ;;  %v1951_v34 = vpop.f32.mrf.mxu0  ;;  %v2000_v40 = vpop.f32.mrf.mxu1  ;;  %v6170_v12 = vld [vmem:[#allocation4 + $0x364] sm:$0xf0] }
 0x28f   :  { %v1952_v45 = vadd.f32 %v1951_v34, %v7135_v14  ;;  %v5711_v17 = vld [vmem:[#allocation4 + $0x728] sm:$0xf] }
 0x290   :  { %v2095_v22 = vmul.f32 %v2059_v0, %v1900_v4  ;;  %2374 = vmatmul.bf16.gmra.mxu2 %v6733_v55  ;;  %2423 = vmatmul.bf16.gmra.mxu3 %v6735_v56  ;;  %v5647_v0 = vld [vmem:[#allocation4 + $0x328] sm:$0xf] }
 0x291   :  { %v2001_v7 = vadd.f32 %v2000_v40, %v1952_v45  ;;  %2472 = vmatmul.bf16.gmra.mxu0 %v6733_v55  ;;  %2521 = vmatmul.bf16.gmra.mxu1 %v6735_v56  ;;  %v5648_v28 = vor.u32 %v6170_v12, %v5647_v0  ;;  %v5712_v45 = vor.u32 %v6186_v24, %v5711_v17  ;;  %v2165_v0 = vld [vmem:[%s8300_s5 + $0x6] sm:$0x3] }
 0x292   :  { %v7327_v21 = vadd.f32 %v2095_v22, %v7119_v15  ;;  %v7370_v17 = vperm.slane %v2165_v0, 1 }
 0x293   :  { %v2098_v29 = vmul.f32 %v2063_v5, %v2001_v7  ;;  %v1853_v42 = vpop.f32.mrf.mxu2  ;;  %v1902_v15 = vpop.f32.mrf.mxu3  ;;  %3376 = vmatpush.bf16.msra.mxu2 %v5648_v28  ;;  %3425 = vmatpush.bf16.msra.mxu3 %v5712_v45  ;;  %v6185_v28 = vld [vmem:[#allocation4 + $0x72c] sm:$0xf]  ;;  %v7376_v45 = vld [vmem:[%s8296_s1 + $0x20] sm:$0xff] }
 0x294   :  { %v1854_v2 = vadd.f32 %v1853_v42, %v7144_v10  ;;  %v2067_v7 = vpop.permute.xlu1 %2066  ;;  %v5649_v42 = vld [vmem:[#allocation4 + $0x368] sm:$0xf0]  ;;  %8409 = vst [vmem:[#allocation30_spill] sm:$0xff] %v7376_v45 }
 0x295   :  { %v7349_v37 = vadd.f32 %v2098_v29, %v7123_v13  ;;  %v6169_v29 = vld [vmem:[#allocation4 + $0x32c] sm:$0xf]  ;;  %3066 = vperm.xlu2 %6282, %v7376_v45  }
 0x296   :  { %v1903_v4 = vadd.f32 %v1902_v15, %v1854_v2  ;;  %v1953_v34 = vpop.f32.mrf.mxu0  ;;  %v2002_v40 = vpop.f32.mrf.mxu1  ;;  %v7361_v15 = vld [vmem:[%s8296_s1 + $0x18] sm:$0xff]  ;;  %v5652_v24 = vor.u32 %v6169_v29, %v5649_v42 }
 0x297   :  { %v1954_v11 = vadd.f32 %v1953_v34, %v7135_v14  ;;  %8407 = vst [vmem:[#allocation24_spill] sm:$0xff] %v7361_v15  ;;  %3062 = vperm.xlu1 %6281, %v7361_v15   ;;  %v7367_v14 = vld [vmem:[%s8296_s1 + $0x38] sm:$0xff]  ;;  %v5641_v15 = vld [vmem:[#allocation4 + $0x2e8] sm:$0xf0] }
 0x298   :  { %v2097_v22 = vmul.f32 %v2063_v5, %v1903_v4  ;;  %8408 = vst [vmem:[#allocation29_spill] sm:$0xff] %v7367_v14  ;;  %3078 = vperm.xlu0 %6283, %v7367_v14   ;;  %v5713_v4 = vld [vmem:[#allocation4 + $0x768] sm:$0xf0]  ;;  %3474 = vmatpush.bf16.msra.mxu0 %v5652_v24  ;;  %v6168_v24 = vld [vmem:[#allocation4 + $0x2e4] sm:$0xf0] }
 0x299   :  { %v2003_v12 = vadd.f32 %v2002_v40, %v1954_v11  ;;  %v5716_v40 = vor.u32 %v6185_v28, %v5713_v4  ;;  %v2529_v28 = vpop.permute.xlu2 %2528 }
 0x29a   :  { %v7356_v13 = vadd.f32 %v2097_v22, %v7132_v63 }
 0x29b   :  { %v2100_v5 = vmul.f32 %v2067_v7, %v2003_v12  ;;  %v1855_v63 = vpop.f32.mrf.mxu2  ;;  %v1904_v2 = vpop.f32.mrf.mxu3  ;;  %3523 = vmatpush.bf16.msra.mxu1 %v5716_v40 }
 0x29c   :  { %v1856_v34 = vadd.f32 %v1855_v63, %v7144_v10  ;;  %v8411_v10 = vld [vmem:[#allocation11_spill] sm:$0xff]  ;;  %v7385_v63 = vperm.slane %v2165_v0, 0  ;;  %v7401_v0 = vld [vmem:[%s8296_s1 + $0x50] sm:$0xff] }
 0x29d   :  { %v7380_v11 = vadd.f32 %v2100_v5, %v7139_v6  ;;  %v8412_v6 = vld [vmem:[#allocation21_spill] sm:$0xff]  ;;  %8415 = vst [vmem:[#allocation18_spill] sm:$0xff] %v7401_v0 }
 0x29e   :  { %v1905_v22 = vadd.f32 %v1904_v2, %v1856_v34  ;;  %v2438_v12 = vpop.f32.mrf.mxu0  ;;  %v2487_v14 = vpop.f32.mrf.mxu1  ;;  %v5639_v2 = vld [vmem:[#allocation4 + $0x2a8] sm:$0xf] }
 0x29f   :  { %8410 = vst [vmem:[#allocation25_spill] sm:$0xff] %v7380_v11  ;;  %v2439_v29 = vadd.f32 %v2438_v12, %v7370_v17 }
 0x2a0   :  { %v2099_v42 = vmul.f32 %v2067_v7, %v1905_v22  ;;  %2861 = vmatmul.bf16.vlgmr.msrb.gmra.mxu2 %v6562_v36  ;;  %2910 = vmatmul.bf16.vlgmr.msrb.gmra.mxu3 %v8411_v10  ;;  %v7395_v7 = vld [vmem:[%s8296_s1 + $0x28] sm:$0xff]  ;;  %v5640_v22 = vor.u32 %v6168_v24, %v5639_v2 }
 0x2a1   :  { %v2488_v4 = vadd.f32 %v2487_v14, %v2439_v29  ;;  %2959 = vmatmul.bf16.vlgmr.msrb.gmra.mxu0 %v6562_v36  ;;  %3008 = vmatmul.bf16.vlgmr.msrb.gmra.mxu1 %v8411_v10  ;;  %8414 = vst [vmem:[#allocation17_spill] sm:$0xff] %v7395_v7  ;;  %v7408_v29 = vld [vmem:[%s8296_s1 + $0x30] sm:$0xff]  ;;  %v6184_v10 = vld [vmem:[#allocation4 + $0x6e4] sm:$0xf0] }
 0x2a2   :  { %v7390_v5 = vadd.f32 %v2099_v42, %v8412_v6  ;;  %3070 = vperm.xlu1 %6281, %v7395_v7   ;;  %3090 = vperm.xlu0 %6283, %v7401_v0   ;;  %8416 = vst [vmem:[#allocation19_spill] sm:$0xff] %v7408_v29  ;;  %v8417_v42 = vld [vmem:[#allocation22_spill] sm:$0xff] }
 0x2a3   :  { %v2592_v14 = vmul.f32 %v2529_v28, %v2488_v4  ;;  %v2340_v34 = vpop.f32.mrf.mxu2  ;;  %v2389_v40 = vpop.f32.mrf.mxu3  ;;  %3074 = vperm.xlu2 %6282, %v7408_v29   ;;  %3377 = vmatpush.bf16.msra.mxu2 %v5640_v22  ;;  %v6167_v29 = vld [vmem:[#allocation4 + $0x2ac] sm:$0xf] }
 0x2a4   :  { %8413 = vst [vmem:[#allocation31_spill] sm:$0xff] %v7390_v5  ;;  %v2341_v12 = vadd.f32 %v2340_v34, %v7385_v63  ;;  %v5703_v5 = vld [vmem:[#allocation4 + $0x6a8] sm:$0xf]  ;;  %v2533_v34 = vpop.permute.xlu0 %2532 }
 0x2a5   :  { %v7412_v6 = vadd.f32 %v2592_v14, %v8417_v42  ;;  %v5704_v11 = vor.u32 %v6184_v10, %v5703_v5  ;;  %v6183_v14 = vld [vmem:[#allocation4 + $0x6ac] sm:$0xf]  ;;  %v5644_v10 = vor.u32 %v6167_v29, %v5641_v15  ;;  %v2537_v29 = vpop.permute.xlu1 %2536 }
 0x2a6   :  { %v2390_v0 = vadd.f32 %v2389_v40, %v2341_v12  ;;  %v2440_v4 = vpop.f32.mrf.mxu0  ;;  %v2489_v36 = vpop.f32.mrf.mxu1  ;;  %v5705_v5 = vld [vmem:[#allocation4 + $0x6e8] sm:$0xf0] }
 0x2a7   :  { %v2441_v2 = vadd.f32 %v2440_v4, %v7370_v17  ;;  %3426 = vmatpush.bf16.msra.mxu3 %v5704_v11  ;;  %3475 = vmatpush.bf16.msra.mxu0 %v5644_v10  ;;  %v5631_v4 = vld [vmem:[#allocation4 + $0x228] sm:$0xf] }
 0x2a8   :  { %v2591_v24 = vmul.f32 %v2529_v28, %v2390_v0  ;;  %v5708_v0 = vor.u32 %v6183_v14, %v5705_v5  ;;  %v5695_v10 = vld [vmem:[#allocation4 + $0x628] sm:$0xf] }
 0x2a9   :  { %v2490_v45 = vadd.f32 %v2489_v36, %v2441_v2  ;;  %v7424_v36 = vld [vmem:[%s8296_s1 + $0x48] sm:$0xff] }
 0x2aa   :  { %v7416_v7 = vadd.f32 %v2591_v24, %v7160_v41  ;;  %3082 = vperm.xlu1 %6281, %v7181_v35   ;;  %3102 = vperm.xlu0 %6283, %v7196_v16   ;;  %v6166_v2 = vld [vmem:[#allocation4 + $0x264] sm:$0xf0] }
 0x2ab   :  { %v2594_v40 = vmul.f32 %v2533_v34, %v2490_v45  ;;  %v2342_v22 = vpop.f32.mrf.mxu2  ;;  %v2391_v12 = vpop.f32.mrf.mxu3  ;;  %3086 = vperm.xlu2 %6282, %v7424_v36   ;;  %3524 = vmatpush.bf16.msra.mxu1 %v5708_v0  ;;  %v6182_v5 = vld [vmem:[#allocation4 + $0x664] sm:$0xf0] }
 0x2ac   :  { %v2343_v28 = vadd.f32 %v2342_v22, %v7385_v63 }
 0x2ad   :  { %v7428_v41 = vadd.f32 %v2594_v40, %v7167_v20  ;;  %v5632_v40 = vor.u32 %v6166_v2, %v5631_v4  ;;  %v6165_v4 = vld [vmem:[#allocation4 + $0x22c] sm:$0xf] }
 0x2ae   :  { %v2392_v35 = vadd.f32 %v2391_v12, %v2343_v28  ;;  %v2443_v16 = vpop.f32.mrf.mxu0  ;;  %v2492_v45 = vpop.f32.mrf.mxu1  ;;  %v7443_v12 = vld [vmem:[%s8296_s1 + $0x60] sm:$0xff]  ;;  %v5633_v2 = vld [vmem:[#allocation4 + $0x268] sm:$0xf0] }
 0x2af   :  { %v2444_v15 = vadd.f32 %v2443_v16, %v7370_v17  ;;  %3378 = vmatpush.bf16.msra.mxu2 %v5632_v40  ;;  %v5636_v40 = vor.u32 %v6165_v4, %v5633_v2  ;;  %v5623_v4 = vld [vmem:[#allocation4 + $0x1a8] sm:$0xf] }
 0x2b0   :  { %v2593_v11 = vmul.f32 %v2533_v34, %v2392_v35  ;;  %2866 = vmatmul.bf16.gmra.mxu2 %v6588_v25  ;;  %2915 = vmatmul.bf16.gmra.mxu3 %v6590_v26  ;;  %v5696_v35 = vor.u32 %v6182_v5, %v5695_v10  ;;  %v6164_v2 = vld [vmem:[#allocation4 + $0x1e4] sm:$0xf0] }
 0x2b1   :  { %v2493_v42 = vadd.f32 %v2492_v45, %v2444_v15  ;;  %2964 = vmatmul.bf16.gmra.mxu0 %v6588_v25  ;;  %3013 = vmatmul.bf16.gmra.mxu1 %v6590_v26  ;;  %v2541_v15 = vpop.permute.xlu2 %2540 }
 0x2b2   :  { %v7436_v20 = vadd.f32 %v2593_v11, %v7175_v44  ;;  %3094 = vperm.xlu1 %6281, %v7202_v23   ;;  %3427 = vmatpush.bf16.msra.mxu3 %v5696_v35  ;;  %v8418_v35 = vld [vmem:[#allocation13_spill] sm:$0xff] }
 0x2b3   :  { %v2596_v24 = vmul.f32 %v2537_v29, %v2493_v42  ;;  %v2345_v14 = vpop.f32.mrf.mxu2  ;;  %v2394_v34 = vpop.f32.mrf.mxu3  ;;  %3098 = vperm.xlu2 %6282, %v7443_v12   ;;  %3476 = vmatpush.bf16.msra.mxu0 %v5636_v40  ;;  %v8422_v40 = vld [vmem:[#allocation20_spill] sm:$0xff] }
 0x2b4   :  { %v2346_v22 = vadd.f32 %v2345_v14, %v7385_v63 }
 0x2b5   :  { %v7447_v44 = vadd.f32 %v2596_v24, %v7187_v50  ;;  %v6181_v50 = vld [vmem:[#allocation4 + $0x62c] sm:$0xf] }
 0x2b6   :  { %v2395_v23 = vadd.f32 %v2394_v34, %v2346_v22  ;;  %v2445_v28 = vpop.f32.mrf.mxu0  ;;  %v2494_v0 = vpop.f32.mrf.mxu1  ;;  %v5697_v22 = vld [vmem:[#allocation4 + $0x668] sm:$0xf0] }
 0x2b7   :  { %v2446_v16 = vadd.f32 %v2445_v28, %v7370_v17  ;;  %v5700_v5 = vor.u32 %v6181_v50, %v5697_v22 }
 0x2b8   :  { %v2595_v45 = vmul.f32 %v2537_v29, %v2395_v23 }
 0x2b9   :  { %v2495_v11 = vadd.f32 %v2494_v0, %v2446_v16  ;;  %3525 = vmatpush.bf16.msra.mxu1 %v5700_v5  ;;  %v8419_v16 = vld [vmem:[#allocation14_spill] sm:$0xff]  ;;  %v6180_v5 = vld [vmem:[#allocation4 + $0x5e4] sm:$0xf0] }
 0x2ba   :  { %v7451_v42 = vadd.f32 %v2595_v45, %v7191_v46  ;;  %3106 = vperm.xlu1 %6281, %v7226_v9   ;;  %v2545_v45 = vpop.permute.xlu1 %2544 }
 0x2bb   :  { %v2598_v24 = vmul.f32 %v2541_v15, %v2495_v11  ;;  %v2347_v14 = vpop.f32.mrf.mxu2  ;;  %v2396_v34 = vpop.f32.mrf.mxu3  ;;  %3110 = vperm.xlu2 %6282, %v7208_v31   ;;  %v8420_v31 = vld [vmem:[#allocation23_spill] sm:$0xff] }
 0x2bc   :  { %v2348_v10 = vadd.f32 %v2347_v14, %v7385_v63 }
 0x2bd   :  { %v7457_v29 = vadd.f32 %v2598_v24, %v7213_v60 }
 0x2be   :  { %v2397_v46 = vadd.f32 %v2396_v34, %v2348_v10  ;;  %v2448_v23 = vpop.f32.mrf.mxu0  ;;  %v2497_v28 = vpop.f32.mrf.mxu1  ;;  %v5624_v34 = vor.u32 %v6164_v2, %v5623_v4  ;;  %v5687_v10 = vld [vmem:[#allocation4 + $0x5a8] sm:$0xf]  ;;  %v6163_v2 = vld [vmem:[#allocation4 + $0x1ac] sm:$0xf] }
 0x2bf   :  { %v2449_v9 = vadd.f32 %v2448_v23, %v7370_v17 }
 0x2c0   :  { %v2597_v0 = vmul.f32 %v2541_v15, %v2397_v46  ;;  %2871 = vmatmul.bf16.gmra.mxu2 %v8418_v35  ;;  %2920 = vmatmul.bf16.gmra.mxu3 %v8419_v16 }
 0x2c1   :  { %v2498_v11 = vadd.f32 %v2497_v28, %v2449_v9  ;;  %2969 = vmatmul.bf16.gmra.mxu0 %v8418_v35  ;;  %3018 = vmatmul.bf16.gmra.mxu1 %v8419_v16  ;;  %v5688_v9 = vor.u32 %v6180_v5, %v5687_v10 }
 0x2c2   :  { %v7465_v60 = vadd.f32 %v2597_v0, %v8420_v31  ;;  %3379 = vmatpush.bf16.msra.mxu2 %v5624_v34 }
 0x2c3   :  { %v2600_v50 = vmul.f32 %v2545_v45, %v2498_v11  ;;  %v2350_v24 = vpop.f32.mrf.mxu2  ;;  %v2399_v14 = vpop.f32.mrf.mxu3  ;;  %3428 = vmatpush.bf16.msra.mxu3 %v5688_v9 }
 0x2c4   :  { %8421 = vst [vmem:[#allocation21_spill] sm:$0xff] %v7465_v60  ;;  %v2351_v15 = vadd.f32 %v2350_v24, %v7385_v63  ;;  %v2549_v60 = vpop.permute.xlu2 %2548  ;;  %v5625_v24 = vld [vmem:[#allocation4 + $0x1e8] sm:$0xf0]  ;;  %v2553_v9 = vpop.permute.xlu0 %2552 }
 0x2c5   :  { %v7469_v22 = vadd.f32 %v2600_v50, %v8422_v40  ;;  %v6179_v50 = vld [vmem:[#allocation4 + $0x5ac] sm:$0xf]  ;;  %v5628_v16 = vor.u32 %v6163_v2, %v5625_v24 }
 0x2c6   :  { %v2400_v46 = vadd.f32 %v2399_v14, %v2351_v15  ;;  %v2450_v23 = vpop.f32.mrf.mxu0  ;;  %v2499_v28 = vpop.f32.mrf.mxu1  ;;  %v5689_v14 = vld [vmem:[#allocation4 + $0x5e8] sm:$0xf0] }
 0x2c7   :  { %8423 = vst [vmem:[#allocation22_spill] sm:$0xff] %v7469_v22  ;;  %v2451_v0 = vadd.f32 %v2450_v23, %v7370_v17  ;;  %v5692_v10 = vor.u32 %v6179_v50, %v5689_v14  ;;  %3477 = vmatpush.bf16.msra.mxu0 %v5628_v16  ;;  %v5615_v16 = vld [vmem:[#allocation4 + $0x128] sm:$0xf] }
 0x2c8   :  { %v2599_v31 = vmul.f32 %v2545_v45, %v2400_v46 }
 0x2c9   :  { %v2500_v11 = vadd.f32 %v2499_v28, %v2451_v0  ;;  %3526 = vmatpush.bf16.msra.mxu1 %v5692_v10 }
 0x2ca   :  { %v7473_v4 = vadd.f32 %v2599_v31, %v7235_v39 }
 0x2cb   :  { %v2602_v40 = vmul.f32 %v2549_v60, %v2500_v11  ;;  %v2352_v34 = vpop.f32.mrf.mxu2  ;;  %v2401_v22 = vpop.f32.mrf.mxu3 }
 0x2cc   :  { %v2353_v15 = vadd.f32 %v2352_v34, %v7385_v63  ;;  %v6178_v34 = vld [vmem:[#allocation4 + $0x564] sm:$0xf0] }
 0x2cd   :  { %v7477_v5 = vadd.f32 %v2602_v40, %v7239_v18  ;;  %v5679_v40 = vld [vmem:[#allocation4 + $0x528] sm:$0xf] }
 0x2ce   :  { %v2402_v45 = vadd.f32 %v2401_v22, %v2353_v15  ;;  %v2453_v46 = vpop.f32.mrf.mxu0  ;;  %v2502_v23 = vpop.f32.mrf.mxu1  ;;  %v6162_v22 = vld [vmem:[#allocation4 + $0x164] sm:$0xf0] }
 0x2cf   :  { %v2454_v39 = vadd.f32 %v2453_v46, %v7370_v17  ;;  %v5616_v24 = vor.u32 %v6162_v22, %v5615_v16  ;;  %v5617_v16 = vld [vmem:[#allocation4 + $0x168] sm:$0xf0] }
 0x2d0   :  { %v2601_v28 = vmul.f32 %v2549_v60, %v2402_v45  ;;  %2876 = vmatmul.bf16.gmra.mxu2 %v6655_v47  ;;  %2925 = vmatmul.bf16.gmra.mxu3 %v6657_v49  ;;  %v5680_v45 = vor.u32 %v6178_v34, %v5679_v40 }
 0x2d1   :  { %v2503_v0 = vadd.f32 %v2502_v23, %v2454_v39  ;;  %2974 = vmatmul.bf16.gmra.mxu0 %v6655_v47  ;;  %3023 = vmatmul.bf16.gmra.mxu1 %v6657_v49  ;;  %v2557_v23 = vpop.permute.xlu1 %2556 }
 0x2d2   :  { %v7485_v18 = vadd.f32 %v2601_v28, %v7247_v62  ;;  %3380 = vmatpush.bf16.msra.mxu2 %v5616_v24  ;;  %3429 = vmatpush.bf16.msra.mxu3 %v5680_v45  ;;  %v2561_v45 = vpop.permute.xlu2 %2560 }
 0x2d3   :  { %v2604_v31 = vmul.f32 %v2553_v9, %v2503_v0  ;;  %v2355_v11 = vpop.f32.mrf.mxu2  ;;  %v2404_v2 = vpop.f32.mrf.mxu3  ;;  %v6161_v0 = vld [vmem:[#allocation4 + $0x12c] sm:$0xf] }
 0x2d4   :  { %v2356_v60 = vadd.f32 %v2355_v11, %v7385_v63  ;;  %v5620_v24 = vor.u32 %v6161_v0, %v5617_v16 }
 0x2d5   :  { %v7489_v50 = vadd.f32 %v2604_v31, %v7251_v48  ;;  %v6177_v48 = vld [vmem:[#allocation4 + $0x52c] sm:$0xf] }
 0x2d6   :  { %v2405_v14 = vadd.f32 %v2404_v2, %v2356_v60  ;;  %v2455_v15 = vpop.f32.mrf.mxu0  ;;  %v2504_v10 = vpop.f32.mrf.mxu1  ;;  %v5681_v2 = vld [vmem:[#allocation4 + $0x568] sm:$0xf0]  ;;  %3478 = vmatpush.bf16.msra.mxu0 %v5620_v24  ;;  %v6176_v24 = vld [vmem:[#allocation4 + $0x4e4] sm:$0xf0] }
 0x2d7   :  { %v2456_v62 = vadd.f32 %v2455_v15, %v7370_v17  ;;  %v5684_v40 = vor.u32 %v6177_v48, %v5681_v2 }
 0x2d8   :  { %v2603_v46 = vmul.f32 %v2553_v9, %v2405_v14 }
 0x2d9   :  { %v2505_v39 = vadd.f32 %v2504_v10, %v2456_v62  ;;  %3527 = vmatpush.bf16.msra.mxu1 %v5684_v40 }
 0x2da   :  { %v7493_v28 = vadd.f32 %v2603_v46, %v7255_v61  ;;  %v5607_v46 = vld [vmem:[#allocation4 + $0xa8] sm:$0xf] }
 0x2db   :  { %v2606_v22 = vmul.f32 %v2557_v23, %v2505_v39  ;;  %v2357_v31 = vpop.f32.mrf.mxu2  ;;  %v2406_v11 = vpop.f32.mrf.mxu3  ;;  %v6160_v39 = vld [vmem:[#allocation4 + $0xe4] sm:$0xf0] }
 0x2dc   :  { %v2358_v60 = vadd.f32 %v2357_v31, %v7385_v63 }
 0x2dd   :  { %v7497_v34 = vadd.f32 %v2606_v22, %v7259_v8  ;;  %v5608_v22 = vor.u32 %v6160_v39, %v5607_v46  ;;  %v5609_v46 = vld [vmem:[#allocation4 + $0xe8] sm:$0xf0] }
 0x2de   :  { %v2407_v9 = vadd.f32 %v2406_v11, %v2358_v60  ;;  %v2458_v14 = vpop.f32.mrf.mxu0  ;;  %v2507_v15 = vpop.f32.mrf.mxu1  ;;  %v5671_v11 = vld [vmem:[#allocation4 + $0x4a8] sm:$0xf] }
 0x2df   :  { %v2459_v61 = vadd.f32 %v2458_v14, %v7370_v17  ;;  %3381 = vmatpush.bf16.msra.mxu2 %v5608_v22 }
 0x2e0   :  { %v2605_v10 = vmul.f32 %v2557_v23, %v2407_v9  ;;  %2881 = vmatmul.bf16.gmra.mxu2 %v6679_v30  ;;  %2930 = vmatmul.bf16.gmra.mxu3 %v6681_v51  ;;  %v5672_v9 = vor.u32 %v6176_v24, %v5671_v11 }
 0x2e1   :  { %v2508_v62 = vadd.f32 %v2507_v15, %v2459_v61  ;;  %2979 = vmatmul.bf16.gmra.mxu0 %v6679_v30  ;;  %3028 = vmatmul.bf16.gmra.mxu1 %v6681_v51  ;;  %v2565_v15 = vpop.permute.xlu0 %2564 }
 0x2e2   :  { %v7505_v8 = vadd.f32 %v2605_v10, %v7267_v27  ;;  %3430 = vmatpush.bf16.msra.mxu3 %v5672_v9  ;;  %v2569_v9 = vpop.permute.xlu1 %2568 }
 0x2e3   :  { %v2608_v0 = vmul.f32 %v2561_v45, %v2508_v62  ;;  %v2360_v16 = vpop.f32.mrf.mxu2  ;;  %v2409_v48 = vpop.f32.mrf.mxu3  ;;  %v6159_v62 = vld [vmem:[#allocation4 + $0xac] sm:$0xf] }
 0x2e4   :  { %v2361_v23 = vadd.f32 %v2360_v16, %v7385_v63  ;;  %v5612_v22 = vor.u32 %v6159_v62, %v5609_v46 }
 0x2e5   :  { %v7509_v31 = vadd.f32 %v2608_v0, %v7271_v43  ;;  %v6175_v43 = vld [vmem:[#allocation4 + $0x4ac] sm:$0xf] }
 0x2e6   :  { %v2410_v2 = vadd.f32 %v2409_v48, %v2361_v23  ;;  %v2460_v60 = vpop.f32.mrf.mxu0  ;;  %v2509_v40 = vpop.f32.mrf.mxu1  ;;  %v5673_v48 = vld [vmem:[#allocation4 + $0x4e8] sm:$0xf0]  ;;  %3479 = vmatpush.bf16.msra.mxu0 %v5612_v22  ;;  %v5663_v22 = vld [vmem:[#allocation4 + $0x428] sm:$0xf] }
 0x2e7   :  { %v2461_v27 = vadd.f32 %v2460_v60, %v7370_v17  ;;  %v5676_v11 = vor.u32 %v6175_v43, %v5673_v48  ;;  %v6174_v48 = vld [vmem:[#allocation4 + $0x464] sm:$0xf0] }
 0x2e8   :  { %v2607_v14 = vmul.f32 %v2561_v45, %v2410_v2 }
 0x2e9   :  { %v2510_v61 = vadd.f32 %v2509_v40, %v2461_v27  ;;  %3528 = vmatpush.bf16.msra.mxu1 %v5676_v11 }
 0x2ea   :  { %v7513_v10 = vadd.f32 %v2607_v14, %v7275_v54  ;;  %v5599_v14 = vld [vmem:[#allocation4 + $0x28] sm:$0xf] }
 0x2eb   :  { %v2610_v39 = vmul.f32 %v2565_v15, %v2510_v61  ;;  %v2362_v0 = vpop.f32.mrf.mxu2  ;;  %v2411_v16 = vpop.f32.mrf.mxu3  ;;  %v6158_v61 = vld [vmem:[#allocation4 + $0x64] sm:$0xf0] }
 0x2ec   :  { %v2363_v23 = vadd.f32 %v2362_v0, %v7385_v63  ;;  %v8424_v0 = vld [vmem:[#allocation26_spill] sm:$0xff] }
 0x2ed   :  { %v7517_v24 = vadd.f32 %v2610_v39, %v7279_v52  ;;  %v5600_v39 = vor.u32 %v6158_v61, %v5599_v14  ;;  %v6157_v14 = vld [vmem:[#allocation4 + $0x2c] sm:$0xf] }
 0x2ee   :  { %v2412_v45 = vadd.f32 %v2411_v16, %v2363_v23  ;;  %v2463_v2 = vpop.f32.mrf.mxu0  ;;  %v2512_v60 = vpop.f32.mrf.mxu1  ;;  %v5601_v61 = vld [vmem:[#allocation4 + $0x68] sm:$0xf0] }
 0x2ef   :  { %v2464_v54 = vadd.f32 %v2463_v2, %v7370_v17  ;;  %3382 = vmatpush.bf16.msra.mxu2 %v5600_v39  ;;  %v5664_v2 = vor.u32 %v6174_v48, %v5663_v22 }
 0x2f0   :  { %v2609_v40 = vmul.f32 %v2565_v15, %v2412_v45  ;;  %2886 = vmatmul.bf16.gmra.mxu2 %v6699_v58  ;;  %2935 = vmatmul.bf16.gmra.mxu3 %v6701_v59 }
 0x2f1   :  { %v2513_v27 = vadd.f32 %v2512_v60, %v2464_v54  ;;  %2984 = vmatmul.bf16.gmra.mxu0 %v6699_v58  ;;  %3033 = vmatmul.bf16.gmra.mxu1 %v6701_v59  ;;  %v2573_v54 = vpop.permute.xlu2 %2572 }
 0x2f2   :  { %v7525_v52 = vadd.f32 %v2609_v40, %v7287_v3  ;;  %3431 = vmatpush.bf16.msra.mxu3 %v5664_v2  ;;  %v8426_v2 = vld [vmem:[#allocation15_spill] sm:$0xff] }
 0x2f3   :  { %v2612_v62 = vmul.f32 %v2569_v9, %v2513_v27  ;;  %v2365_v46 = vpop.f32.mrf.mxu2  ;;  %v2414_v43 = vpop.f32.mrf.mxu3 }
 0x2f4   :  { %v2366_v15 = vadd.f32 %v2365_v46, %v7385_v63 }
 0x2f5   :  { %v7529_v16 = vadd.f32 %v2612_v62, %v8424_v0  ;;  %v6173_v62 = vld [vmem:[#allocation4 + $0x42c] sm:$0xf] }
 0x2f6   :  { %v2415_v23 = vadd.f32 %v2414_v43, %v2366_v15  ;;  %v2465_v11 = vpop.f32.mrf.mxu0  ;;  %v2514_v45 = vpop.f32.mrf.mxu1  ;;  %v5665_v43 = vld [vmem:[#allocation4 + $0x468] sm:$0xf0] }
 0x2f7   :  { %8425 = vst [vmem:[#allocation23_spill] sm:$0xff] %v7529_v16  ;;  %v2466_v3 = vadd.f32 %v2465_v11, %v7370_v17  ;;  %v5604_v16 = vor.u32 %v6157_v14, %v5601_v61  ;;  %v5668_v22 = vor.u32 %v6173_v62, %v5665_v43  ;;  %v6204_v61 = vld [vmem:[#allocation4 + $0x3ec] sm:$0xf0]  ;;  %v8430_v43 = vld [vmem:[#allocation27_spill] sm:$0xff] }
 0x2f8   :  { %v2611_v60 = vmul.f32 %v2569_v9, %v2415_v23 }
 0x2f9   :  { %v2515_v40 = vadd.f32 %v2514_v45, %v2466_v3  ;;  %3480 = vmatpush.bf16.msra.mxu0 %v5604_v16  ;;  %3529 = vmatpush.bf16.msra.mxu1 %v5668_v22  ;;  %v8427_v3 = vld [vmem:[#allocation16_spill] sm:$0xff] }
 0x2fa   :  { %v7533_v27 = vadd.f32 %v2611_v60, %v7295_v1  ;;  %v2577_v60 = vpop.permute.xlu0 %2576  ;;  %v5783_v16 = vld [vmem:[#allocation4 + $0x3b0] sm:$0xf] }
 0x2fb   :  { %v2614_v46 = vmul.f32 %v2573_v54, %v2515_v40  ;;  %v2367_v39 = vpop.f32.mrf.mxu2  ;;  %v2416_v0 = vpop.f32.mrf.mxu3  ;;  %v5847_v22 = vld [vmem:[#allocation4 + $0x7b0] sm:$0xf] }
 0x2fc   :  { %v2368_v15 = vadd.f32 %v2367_v39, %v7385_v63 }
 0x2fd   :  { %v7537_v48 = vadd.f32 %v2614_v46, %v7299_v19  ;;  %v8428_v19 = vld [vmem:[#allocation28_spill] sm:$0xff] }
 0x2fe   :  { %v2417_v9 = vadd.f32 %v2416_v0, %v2368_v15  ;;  %v2468_v23 = vpop.f32.mrf.mxu0  ;;  %v2517_v11 = vpop.f32.mrf.mxu1  ;;  %v5784_v0 = vor.u32 %v6204_v61, %v5783_v16  ;;  %v6203_v61 = vld [vmem:[#allocation4 + $0x3b4] sm:$0xf] }
 0x2ff   :  { %v2469_v1 = vadd.f32 %v2468_v23, %v7370_v17 }
 0x300   :  { %v2613_v45 = vmul.f32 %v2573_v54, %v2417_v9  ;;  %2891 = vmatmul.bf16.gmra.mxu2 %v8426_v2  ;;  %2940 = vmatmul.bf16.gmra.mxu3 %v8427_v3  ;;  %v6220_v9 = vld [vmem:[#allocation4 + $0x7ec] sm:$0xf0] }
 0x301   :  { %v2518_v40 = vadd.f32 %v2517_v11, %v2469_v1  ;;  %2989 = vmatmul.bf16.gmra.mxu0 %v8426_v2  ;;  %3038 = vmatmul.bf16.gmra.mxu1 %v8427_v3  ;;  %v5848_v3 = vor.u32 %v6220_v9, %v5847_v22 }
 0x302   :  { %v7545_v14 = vadd.f32 %v2613_v45, %v8428_v19  ;;  %3897 = vmatpush.bf16.msrb.mxu2 %v5784_v0 }
 0x303   :  { %v2616_v62 = vmul.f32 %v2577_v60, %v2518_v40  ;;  %v2370_v46 = vpop.f32.mrf.mxu2  ;;  %v2419_v39 = vpop.f32.mrf.mxu3  ;;  %3946 = vmatpush.bf16.msrb.mxu3 %v5848_v3 }
 0x304   :  { %8429 = vst [vmem:[#allocation20_spill] sm:$0xff] %v7545_v14  ;;  %v2371_v54 = vadd.f32 %v2370_v46, %v7385_v63  ;;  %v2581_v14 = vpop.permute.xlu1 %2580  ;;  %v5785_v46 = vld [vmem:[#allocation4 + $0x3f0] sm:$0xf0] }
 0x305   :  { %v7549_v15 = vadd.f32 %v2616_v62, %v8430_v43  ;;  %v6219_v62 = vld [vmem:[#allocation4 + $0x7b4] sm:$0xf]  ;;  %v5788_v2 = vor.u32 %v6203_v61, %v5785_v46 }
 0x306   :  { %v2420_v23 = vadd.f32 %v2419_v39, %v2371_v54  ;;  %v2470_v11 = vpop.f32.mrf.mxu0  ;;  %v2519_v1 = vpop.f32.mrf.mxu1  ;;  %v5849_v39 = vld [vmem:[#allocation4 + $0x7f0] sm:$0xf0] }
 0x307   :  { %8431 = vst [vmem:[#allocation26_spill] sm:$0xff] %v7549_v15  ;;  %v2471_v45 = vadd.f32 %v2470_v11, %v7370_v17  ;;  %v5852_v22 = vor.u32 %v6219_v62, %v5849_v39  ;;  %3995 = vmatpush.bf16.msrb.mxu0 %v5788_v2  ;;  %v6401_v11 = vmov 5   ;;  %v5775_v2 = vld [vmem:[#allocation4 + $0x330] sm:$0xf] }
 0x308   :  { %v2615_v19 = vmul.f32 %v2577_v60, %v2420_v23  ;;  %6284 = vset.pattern.permute.xlu0 %v6401_v11  ;;  %6285 = vset.pattern.permute.xlu1 %v6401_v11 }
 0x309   :  { %v2520_v40 = vadd.f32 %v2519_v1, %v2471_v45  ;;  %4044 = vmatpush.bf16.msrb.mxu1 %v5852_v22  ;;  %v2585_v45 = vpop.permute.xlu2 %2584  ;;  %3572 = vperm.xlu0 %6284, %v7332_v32  }
 0x30a   :  { %v7553_v16 = vadd.f32 %v2615_v19, %v7315_v33  ;;  %3576 = vperm.xlu1 %6285, %v7345_v53   ;;  %6286 = vset.pattern.permute.xlu2 %v6401_v11  ;;  %v5777_v11 = vld [vmem:[#allocation4 + $0x370] sm:$0xf0] }
 0x30b   :  { %v2618_v43 = vmul.f32 %v2581_v14, %v2520_v40  ;;  %v2372_v0 = vpop.f32.mrf.mxu2  ;;  %v2421_v15 = vpop.f32.mrf.mxu3  ;;  %3580 = vperm.xlu2 %6286, %v7338_v57  }
 0x30c   :  { %v2373_v54 = vadd.f32 %v2372_v0, %v7385_v63  ;;  %v6218_v0 = vld [vmem:[#allocation4 + $0x76c] sm:$0xf0] }
 0x30d   :  { %v7557_v9 = vadd.f32 %v2618_v43, %v7319_v38 }
 0x30e   :  { %v2422_v3 = vadd.f32 %v2421_v15, %v2373_v54  ;;  %v2473_v60 = vpop.f32.mrf.mxu0  ;;  %v2522_v23 = vpop.f32.mrf.mxu1  ;;  %v6202_v15 = vld [vmem:[#allocation4 + $0x36c] sm:$0xf0] }
 0x30f   :  { %v2474_v33 = vadd.f32 %v2473_v60, %v7370_v17  ;;  %v5776_v46 = vor.u32 %v6202_v15, %v5775_v2  ;;  %v2589_v60 = vpop.permute.xlu0 %2588  ;;  %v8433_v2 = vld [vmem:[#allocation17_spill] sm:$0xff] }
 0x310   :  { %v2617_v1 = vmul.f32 %v2581_v14, %v2422_v3  ;;  %2896 = vmatmul.bf16.gmra.mxu2 %v6733_v55  ;;  %2945 = vmatmul.bf16.gmra.mxu3 %v6735_v56 }
 0x311   :  { %v2523_v19 = vadd.f32 %v2522_v23, %v2474_v33  ;;  %2994 = vmatmul.bf16.gmra.mxu0 %v6733_v55  ;;  %3043 = vmatmul.bf16.gmra.mxu1 %v6735_v56  ;;  %v2687_v23 = vld [vmem:[%s8300_s5 + $0x8] sm:$0x3]  ;;  %v6201_v33 = vld [vmem:[#allocation4 + $0x334] sm:$0xf] }
 0x312   :  { %v7565_v38 = vadd.f32 %v2617_v1, %v7327_v21  ;;  %3898 = vmatpush.bf16.msrb.mxu2 %v5776_v46  ;;  %v5839_v21 = vld [vmem:[#allocation4 + $0x730] sm:$0xf]  ;;  %v6217_v1 = vld [vmem:[#allocation4 + $0x734] sm:$0xf]  ;;  %3592 = vperm.xlu0 %6284, %v8433_v2  }
 0x313   :  { %v2620_v14 = vmul.f32 %v2585_v45, %v2523_v19  ;;  %v2375_v40 = vpop.f32.mrf.mxu2  ;;  %v2424_v61 = vpop.f32.mrf.mxu3  ;;  %v5840_v22 = vor.u32 %v6218_v0, %v5839_v21  ;;  %v8432_v19 = vld [vmem:[#allocation24_spill] sm:$0xff]  ;;  %v8434_v21 = vld [vmem:[#allocation30_spill] sm:$0xff] }
 0x314   :  { %v2376_v62 = vadd.f32 %v2375_v40, %v7385_v63  ;;  %3584 = vperm.xlu1 %6285, %v8432_v19   ;;  %v5780_v40 = vor.u32 %v6201_v33, %v5777_v11  ;;  %3588 = vperm.xlu2 %6286, %v8434_v21   ;;  %v3051_v33 = vpop.permute.xlu1 %3050  ;;  %v5767_v2 = vld [vmem:[#allocation4 + $0x2b0] sm:$0xf] }
 0x315   :  { %v7572_v43 = vadd.f32 %v2620_v14, %v7349_v37  ;;  %3947 = vmatpush.bf16.msrb.mxu3 %v5840_v22  ;;  %v7583_v14 = vperm.slane %v2687_v23, 1 }
 0x316   :  { %v2425_v32 = vadd.f32 %v2424_v61, %v2376_v62  ;;  %v2475_v39 = vpop.f32.mrf.mxu0  ;;  %v2524_v54 = vpop.f32.mrf.mxu1  ;;  %v5841_v61 = vld [vmem:[#allocation4 + $0x770] sm:$0xf0]  ;;  %3996 = vmatpush.bf16.msrb.mxu0 %v5780_v40 }
 0x317   :  { %v2476_v53 = vadd.f32 %v2475_v39, %v7370_v17  ;;  %v5844_v62 = vor.u32 %v6217_v1, %v5841_v61  ;;  %v8438_v1 = vld [vmem:[#allocation31_spill] sm:$0xff] }
 0x318   :  { %v2619_v3 = vmul.f32 %v2585_v45, %v2425_v32 }
 0x319   :  { %v2525_v57 = vadd.f32 %v2524_v54, %v2476_v53  ;;  %4045 = vmatpush.bf16.msrb.mxu1 %v5844_v62  ;;  %v8440_v62 = vld [vmem:[#allocation29_spill] sm:$0xff] }
 0x31a   :  { %v7579_v37 = vadd.f32 %v2619_v3, %v7356_v13  ;;  %v8435_v13 = vld [vmem:[#allocation25_spill] sm:$0xff]  ;;  %v8436_v3 = vld [vmem:[#allocation10_spill] sm:$0xff] }
 0x31b   :  { %v2622_v15 = vmul.f32 %v2589_v60, %v2525_v57  ;;  %v2377_v17 = vpop.f32.mrf.mxu2  ;;  %v2426_v45 = vpop.f32.mrf.mxu3  ;;  %v8437_v57 = vld [vmem:[#allocation11_spill] sm:$0xff] }
 0x31c   :  { %v2378_v46 = vadd.f32 %v2377_v17, %v7385_v63  ;;  %v7593_v63 = vperm.slane %v2687_v23, 0  ;;  %v8439_v17 = vld [vmem:[#allocation19_spill] sm:$0xff]  ;;  %3600 = vperm.xlu2 %6286, %v8440_v62   ;;  %v5769_v62 = vld [vmem:[#allocation4 + $0x2f0] sm:$0xf0] }
 0x31d   :  { %v7588_v0 = vadd.f32 %v2622_v15, %v8435_v13  ;;  %v6200_v15 = vld [vmem:[#allocation4 + $0x2ec] sm:$0xf0]  ;;  %3596 = vperm.xlu1 %6285, %v8439_v17   ;;  %v3055_v17 = vpop.permute.xlu2 %3054 }
 0x31e   :  { %v2427_v32 = vadd.f32 %v2426_v45, %v2378_v46  ;;  %v2960_v39 = vpop.f32.mrf.mxu0  ;;  %v3009_v54 = vpop.f32.mrf.mxu1  ;;  %v5768_v61 = vor.u32 %v6200_v15, %v5767_v2  ;;  %v5831_v13 = vld [vmem:[#allocation4 + $0x6b0] sm:$0xf] }
 0x31f   :  { %v2961_v22 = vadd.f32 %v2960_v39, %v7583_v14 }
 0x320   :  { %v2621_v53 = vmul.f32 %v2589_v60, %v2427_v32  ;;  %3383 = vmatmul.bf16.vlgmr.msra.gmra.mxu2 %v8436_v3  ;;  %3432 = vmatmul.bf16.vlgmr.msra.gmra.mxu3 %v8437_v57  ;;  %v7604_v60 = vld [vmem:[%s8296_s1 + $0x40] sm:$0xff]  ;;  %v6216_v32 = vld [vmem:[#allocation4 + $0x6ec] sm:$0xf0] }
 0x321   :  { %v3010_v11 = vadd.f32 %v3009_v54, %v2961_v22  ;;  %3481 = vmatmul.bf16.vlgmr.msra.gmra.mxu0 %v8436_v3  ;;  %3530 = vmatmul.bf16.vlgmr.msra.gmra.mxu1 %v8437_v57 }
 0x322   :  { %v7598_v19 = vadd.f32 %v2621_v53, %v8438_v1  ;;  %3604 = vperm.xlu0 %6284, %v7604_v60   ;;  %3899 = vmatpush.bf16.msrb.mxu2 %v5768_v61  ;;  %v5832_v53 = vor.u32 %v6216_v32, %v5831_v13  ;;  %v5833_v13 = vld [vmem:[#allocation4 + $0x6f0] sm:$0xf0] }
 0x323   :  { %v3114_v23 = vmul.f32 %v3051_v33, %v3010_v11  ;;  %v2862_v45 = vpop.f32.mrf.mxu2  ;;  %v2911_v40 = vpop.f32.mrf.mxu3 }
 0x324   :  { %v2863_v46 = vadd.f32 %v2862_v45, %v7593_v63  ;;  %3948 = vmatpush.bf16.msrb.mxu3 %v5832_v53  ;;  %v6199_v45 = vld [vmem:[#allocation4 + $0x2b4] sm:$0xf] }
 0x325   :  { %v7610_v21 = vadd.f32 %v3114_v23, %v7412_v6  ;;  %v6215_v6 = vld [vmem:[#allocation4 + $0x6b4] sm:$0xf]  ;;  %3608 = vperm.xlu1 %6285, %v7424_v36   ;;  %v7620_v23 = vld [vmem:[%s8296_s1 + $0x58] sm:$0xff] }
 0x326   :  { %v2912_v39 = vadd.f32 %v2911_v40, %v2863_v46  ;;  %v2962_v54 = vpop.f32.mrf.mxu0  ;;  %v3011_v22 = vpop.f32.mrf.mxu1  ;;  %v5772_v46 = vor.u32 %v6199_v45, %v5769_v62  ;;  %v5836_v32 = vor.u32 %v6215_v6, %v5833_v13  ;;  %v5759_v62 = vld [vmem:[#allocation4 + $0x230] sm:$0xf] }
 0x327   :  { %v2963_v1 = vadd.f32 %v2962_v54, %v7583_v14  ;;  %v6198_v6 = vld [vmem:[#allocation4 + $0x26c] sm:$0xf0] }
 0x328   :  { %v3113_v11 = vmul.f32 %v3051_v33, %v2912_v39  ;;  %v8441_v39 = vld [vmem:[#allocation18_spill] sm:$0xff]  ;;  %3997 = vmatpush.bf16.msrb.mxu0 %v5772_v46  ;;  %4046 = vmatpush.bf16.msrb.mxu1 %v5836_v32  ;;  %v5760_v46 = vor.u32 %v6198_v6, %v5759_v62  ;;  %v6214_v32 = vld [vmem:[#allocation4 + $0x66c] sm:$0xf0] }
 0x329   :  { %v3012_v2 = vadd.f32 %v3011_v22, %v2963_v1  ;;  %3612 = vperm.xlu2 %6286, %v8441_v39  }
 0x32a   :  { %v7614_v15 = vadd.f32 %v3113_v11, %v7416_v7  ;;  %3616 = vperm.xlu0 %6284, %v7620_v23   ;;  %3900 = vmatpush.bf16.msrb.mxu2 %v5760_v46 }
 0x32b   :  { %v3116_v40 = vmul.f32 %v3055_v17, %v3012_v2  ;;  %v2864_v33 = vpop.f32.mrf.mxu2  ;;  %v2913_v61 = vpop.f32.mrf.mxu3 }
 0x32c   :  { %v2865_v7 = vadd.f32 %v2864_v33, %v7593_v63  ;;  %v3059_v2 = vpop.permute.xlu0 %3058 }
 0x32d   :  { %v7626_v54 = vadd.f32 %v3116_v40, %v7428_v41  ;;  %3620 = vperm.xlu1 %6285, %v7443_v12  }
 0x32e   :  { %v2914_v36 = vadd.f32 %v2913_v61, %v2865_v7  ;;  %v2965_v22 = vpop.f32.mrf.mxu0  ;;  %v3014_v53 = vpop.f32.mrf.mxu1  ;;  %v5823_v7 = vld [vmem:[#allocation4 + $0x630] sm:$0xf] }
 0x32f   :  { %v2966_v1 = vadd.f32 %v2965_v22, %v7583_v14 }
 0x330   :  { %v3115_v11 = vmul.f32 %v3055_v17, %v2914_v36  ;;  %3388 = vmatmul.bf16.gmra.mxu2 %v6588_v25  ;;  %3437 = vmatmul.bf16.gmra.mxu3 %v6590_v26  ;;  %v7640_v17 = vld [vmem:[%s8296_s1 + $0x70] sm:$0xff] }
 0x331   :  { %v3015_v45 = vadd.f32 %v3014_v53, %v2966_v1  ;;  %3486 = vmatmul.bf16.gmra.mxu0 %v6588_v25  ;;  %3535 = vmatmul.bf16.gmra.mxu1 %v6590_v26  ;;  %8442 = vst [vmem:[#allocation28_spill] sm:$0xff] %v7640_v17  ;;  %v5824_v53 = vor.u32 %v6214_v32, %v5823_v7  ;;  %v5825_v7 = vld [vmem:[#allocation4 + $0x670] sm:$0xf0] }
 0x332   :  { %v7634_v41 = vadd.f32 %v3115_v11, %v7436_v20  ;;  %3628 = vperm.xlu0 %6284, %v7640_v17   ;;  %v7647_v20 = vld [vmem:[%s8296_s1 + $0x68] sm:$0xff]  ;;  %v5761_v17 = vld [vmem:[#allocation4 + $0x270] sm:$0xf0] }
 0x333   :  { %v3118_v40 = vmul.f32 %v3059_v2, %v3015_v45  ;;  %v2867_v33 = vpop.f32.mrf.mxu2  ;;  %v2916_v61 = vpop.f32.mrf.mxu3  ;;  %3624 = vperm.xlu2 %6286, %v7647_v20   ;;  %3949 = vmatpush.bf16.msrb.mxu3 %v5824_v53 }
 0x334   :  { %v2868_v13 = vadd.f32 %v2867_v33, %v7593_v63  ;;  %v3063_v45 = vpop.permute.xlu1 %3062  ;;  %v6197_v33 = vld [vmem:[#allocation4 + $0x234] sm:$0xf] }
 0x335   :  { %v7651_v12 = vadd.f32 %v3118_v40, %v7447_v44  ;;  %v6213_v44 = vld [vmem:[#allocation4 + $0x634] sm:$0xf]  ;;  %v7660_v40 = vld [vmem:[%s8296_s1 + $0x78] sm:$0xff] }
 0x336   :  { %v2917_v39 = vadd.f32 %v2916_v61, %v2868_v13  ;;  %v2967_v36 = vpop.f32.mrf.mxu0  ;;  %v3016_v22 = vpop.f32.mrf.mxu1  ;;  %8443 = vst [vmem:[#allocation27_spill] sm:$0xff] %v7660_v40  ;;  %3632 = vperm.xlu1 %6285, %v7660_v40  }
 0x337   :  { %v2968_v1 = vadd.f32 %v2967_v36, %v7583_v14 }
 0x338   :  { %v3117_v11 = vmul.f32 %v3059_v2, %v2917_v39  ;;  %v5764_v2 = vor.u32 %v6197_v33, %v5761_v17  ;;  %v5828_v39 = vor.u32 %v6213_v44, %v5825_v7  ;;  %v3067_v17 = vpop.permute.xlu2 %3066 }
 0x339   :  { %v3017_v62 = vadd.f32 %v3016_v22, %v2968_v1 }
 0x33a   :  { %v7655_v6 = vadd.f32 %v3117_v11, %v7451_v42  ;;  %3998 = vmatpush.bf16.msrb.mxu0 %v5764_v2  ;;  %4047 = vmatpush.bf16.msrb.mxu1 %v5828_v39  ;;  %v8448_v39 = vld [vmem:[#allocation22_spill] sm:$0xff] }
 0x33b   :  { %v3120_v61 = vmul.f32 %v3063_v45, %v3017_v62  ;;  %v2869_v46 = vpop.f32.mrf.mxu2  ;;  %v2918_v13 = vpop.f32.mrf.mxu3  ;;  %v8445_v62 = vld [vmem:[#allocation14_spill] sm:$0xff] }
 0x33c   :  { %v2870_v32 = vadd.f32 %v2869_v46, %v7593_v63  ;;  %v6196_v46 = vld [vmem:[#allocation4 + $0x1ec] sm:$0xf0] }
 0x33d   :  { %v7665_v42 = vadd.f32 %v3120_v61, %v7457_v29  ;;  %v8446_v29 = vld [vmem:[#allocation21_spill] sm:$0xff]  ;;  %v5751_v61 = vld [vmem:[#allocation4 + $0x1b0] sm:$0xf] }
 0x33e   :  { %v2919_v36 = vadd.f32 %v2918_v13, %v2870_v32  ;;  %v2970_v22 = vpop.f32.mrf.mxu0  ;;  %v3019_v53 = vpop.f32.mrf.mxu1  ;;  %v5752_v32 = vor.u32 %v6196_v46, %v5751_v61  ;;  %v6195_v46 = vld [vmem:[#allocation4 + $0x1b4] sm:$0xf] }
 0x33f   :  { %8444 = vst [vmem:[#allocation24_spill] sm:$0xff] %v7665_v42  ;;  %v2971_v1 = vadd.f32 %v2970_v22, %v7583_v14  ;;  %v5815_v22 = vld [vmem:[#allocation4 + $0x5b0] sm:$0xf] }
 0x340   :  { %v3119_v11 = vmul.f32 %v3063_v45, %v2919_v36  ;;  %3393 = vmatmul.bf16.gmra.mxu2 %v8418_v35  ;;  %3442 = vmatmul.bf16.gmra.mxu3 %v8445_v62 }
 0x341   :  { %v3020_v33 = vadd.f32 %v3019_v53, %v2971_v1  ;;  %3491 = vmatmul.bf16.gmra.mxu0 %v8418_v35  ;;  %3540 = vmatmul.bf16.gmra.mxu1 %v8445_v62  ;;  %v6212_v53 = vld [vmem:[#allocation4 + $0x5ec] sm:$0xf0] }
 0x342   :  { %v7673_v44 = vadd.f32 %v3119_v11, %v8446_v29  ;;  %3901 = vmatpush.bf16.msrb.mxu2 %v5752_v32  ;;  %v5816_v42 = vor.u32 %v6212_v53, %v5815_v22 }
 0x343   :  { %v3122_v13 = vmul.f32 %v3067_v17, %v3020_v33  ;;  %v2872_v2 = vpop.f32.mrf.mxu2  ;;  %v2921_v7 = vpop.f32.mrf.mxu3 }
 0x344   :  { %8447 = vst [vmem:[#allocation17_spill] sm:$0xff] %v7673_v44  ;;  %v2873_v45 = vadd.f32 %v2872_v2, %v7593_v63  ;;  %v3071_v44 = vpop.permute.xlu1 %3070  ;;  %3950 = vmatpush.bf16.msrb.mxu3 %v5816_v42  ;;  %v5753_v2 = vld [vmem:[#allocation4 + $0x1f0] sm:$0xf0] }
 0x345   :  { %v7677_v36 = vadd.f32 %v3122_v13, %v8448_v39  ;;  %v6211_v13 = vld [vmem:[#allocation4 + $0x5b4] sm:$0xf]  ;;  %v5756_v40 = vor.u32 %v6195_v46, %v5753_v2 }
 0x346   :  { %v2922_v1 = vadd.f32 %v2921_v7, %v2873_v45  ;;  %v2972_v35 = vpop.f32.mrf.mxu0  ;;  %v3021_v62 = vpop.f32.mrf.mxu1  ;;  %v5817_v7 = vld [vmem:[#allocation4 + $0x5f0] sm:$0xf0] }
 0x347   :  { %8449 = vst [vmem:[#allocation30_spill] sm:$0xff] %v7677_v36  ;;  %v2973_v11 = vadd.f32 %v2972_v35, %v7583_v14  ;;  %v5820_v22 = vor.u32 %v6211_v13, %v5817_v7  ;;  %3999 = vmatpush.bf16.msrb.mxu0 %v5756_v40  ;;  %v5743_v40 = vld [vmem:[#allocation4 + $0x130] sm:$0xf] }
 0x348   :  { %v3121_v29 = vmul.f32 %v3067_v17, %v2922_v1  ;;  %v3075_v1 = vpop.permute.xlu2 %3074 }
 0x349   :  { %v3022_v33 = vadd.f32 %v3021_v62, %v2973_v11  ;;  %4048 = vmatpush.bf16.msrb.mxu1 %v5820_v22 }
 0x34a   :  { %v7681_v61 = vadd.f32 %v3121_v29, %v7473_v4 }
 0x34b   :  { %v3124_v39 = vmul.f32 %v3071_v44, %v3022_v33  ;;  %v2874_v32 = vpop.f32.mrf.mxu2  ;;  %v2923_v36 = vpop.f32.mrf.mxu3 }
 0x34c   :  { %v2875_v45 = vadd.f32 %v2874_v32, %v7593_v63  ;;  %v6210_v32 = vld [vmem:[#allocation4 + $0x56c] sm:$0xf0] }
 0x34d   :  { %v7685_v35 = vadd.f32 %v3124_v39, %v7477_v5  ;;  %v5807_v39 = vld [vmem:[#allocation4 + $0x530] sm:$0xf] }
 0x34e   :  { %v2924_v42 = vadd.f32 %v2923_v36, %v2875_v45  ;;  %v2975_v62 = vpop.f32.mrf.mxu0  ;;  %v3024_v17 = vpop.f32.mrf.mxu1  ;;  %v6194_v36 = vld [vmem:[#allocation4 + $0x16c] sm:$0xf0] }
 0x34f   :  { %v2976_v4 = vadd.f32 %v2975_v62, %v7583_v14  ;;  %v5744_v2 = vor.u32 %v6194_v36, %v5743_v40  ;;  %v5745_v40 = vld [vmem:[#allocation4 + $0x170] sm:$0xf0] }
 0x350   :  { %v3123_v53 = vmul.f32 %v3071_v44, %v2924_v42  ;;  %3398 = vmatmul.bf16.gmra.mxu2 %v6655_v47  ;;  %3447 = vmatmul.bf16.gmra.mxu3 %v6657_v49  ;;  %v5808_v42 = vor.u32 %v6210_v32, %v5807_v39 }
 0x351   :  { %v3025_v11 = vadd.f32 %v3024_v17, %v2976_v4  ;;  %3496 = vmatmul.bf16.gmra.mxu0 %v6655_v47  ;;  %3545 = vmatmul.bf16.gmra.mxu1 %v6657_v49  ;;  %v3079_v17 = vpop.permute.xlu0 %3078 }
 0x352   :  { %v7693_v5 = vadd.f32 %v3123_v53, %v7485_v18  ;;  %3902 = vmatpush.bf16.msrb.mxu2 %v5744_v2  ;;  %3951 = vmatpush.bf16.msrb.mxu3 %v5808_v42  ;;  %v3083_v42 = vpop.permute.xlu1 %3082 }
 0x353   :  { %v3126_v29 = vmul.f32 %v3075_v1, %v3025_v11  ;;  %v2877_v33 = vpop.f32.mrf.mxu2  ;;  %v2926_v46 = vpop.f32.mrf.mxu3  ;;  %v6193_v11 = vld [vmem:[#allocation4 + $0x134] sm:$0xf] }
 0x354   :  { %v2878_v44 = vadd.f32 %v2877_v33, %v7593_v63  ;;  %v5748_v2 = vor.u32 %v6193_v11, %v5745_v40 }
 0x355   :  { %v7697_v13 = vadd.f32 %v3126_v29, %v7489_v50  ;;  %v6209_v50 = vld [vmem:[#allocation4 + $0x534] sm:$0xf] }
 0x356   :  { %v2927_v7 = vadd.f32 %v2926_v46, %v2878_v44  ;;  %v2977_v45 = vpop.f32.mrf.mxu0  ;;  %v3026_v22 = vpop.f32.mrf.mxu1  ;;  %v5809_v46 = vld [vmem:[#allocation4 + $0x570] sm:$0xf0]  ;;  %4000 = vmatpush.bf16.msrb.mxu0 %v5748_v2  ;;  %v6208_v2 = vld [vmem:[#allocation4 + $0x4ec] sm:$0xf0] }
 0x357   :  { %v2978_v18 = vadd.f32 %v2977_v45, %v7583_v14  ;;  %v5812_v39 = vor.u32 %v6209_v50, %v5809_v46 }
 0x358   :  { %v3125_v62 = vmul.f32 %v3075_v1, %v2927_v7 }
 0x359   :  { %v3027_v4 = vadd.f32 %v3026_v22, %v2978_v18  ;;  %4049 = vmatpush.bf16.msrb.mxu1 %v5812_v39 }
 0x35a   :  { %v7701_v53 = vadd.f32 %v3125_v62, %v7493_v28  ;;  %v5735_v62 = vld [vmem:[#allocation4 + $0xb0] sm:$0xf] }
 0x35b   :  { %v3128_v36 = vmul.f32 %v3079_v17, %v3027_v4  ;;  %v2879_v29 = vpop.f32.mrf.mxu2  ;;  %v2928_v33 = vpop.f32.mrf.mxu3  ;;  %v6192_v4 = vld [vmem:[#allocation4 + $0xec] sm:$0xf0] }
 0x35c   :  { %v2880_v44 = vadd.f32 %v2879_v29, %v7593_v63 }
 0x35d   :  { %v7705_v32 = vadd.f32 %v3128_v36, %v7497_v34  ;;  %v5736_v36 = vor.u32 %v6192_v4, %v5735_v62  ;;  %v5737_v62 = vld [vmem:[#allocation4 + $0xf0] sm:$0xf0] }
 0x35e   :  { %v2929_v1 = vadd.f32 %v2928_v33, %v2880_v44  ;;  %v2980_v7 = vpop.f32.mrf.mxu0  ;;  %v3029_v45 = vpop.f32.mrf.mxu1  ;;  %v5799_v33 = vld [vmem:[#allocation4 + $0x4b0] sm:$0xf] }
 0x35f   :  { %v2981_v28 = vadd.f32 %v2980_v7, %v7583_v14  ;;  %3903 = vmatpush.bf16.msrb.mxu2 %v5736_v36 }
 0x360   :  { %v3127_v22 = vmul.f32 %v3079_v17, %v2929_v1  ;;  %3403 = vmatmul.bf16.gmra.mxu2 %v6679_v30  ;;  %3452 = vmatmul.bf16.gmra.mxu3 %v6681_v51  ;;  %v5800_v1 = vor.u32 %v6208_v2, %v5799_v33 }
 0x361   :  { %v3030_v18 = vadd.f32 %v3029_v45, %v2981_v28  ;;  %3501 = vmatmul.bf16.gmra.mxu0 %v6679_v30  ;;  %3550 = vmatmul.bf16.gmra.mxu1 %v6681_v51  ;;  %v3087_v45 = vpop.permute.xlu2 %3086 }
 0x362   :  { %v7713_v34 = vadd.f32 %v3127_v22, %v7505_v8  ;;  %3952 = vmatpush.bf16.msrb.mxu3 %v5800_v1  ;;  %v3091_v1 = vpop.permute.xlu0 %3090 }
 0x363   :  { %v3130_v11 = vmul.f32 %v3083_v42, %v3030_v18  ;;  %v2882_v40 = vpop.f32.mrf.mxu2  ;;  %v2931_v50 = vpop.f32.mrf.mxu3  ;;  %v6191_v18 = vld [vmem:[#allocation4 + $0xb4] sm:$0xf] }
 0x364   :  { %v2883_v17 = vadd.f32 %v2882_v40, %v7593_v63  ;;  %v5740_v36 = vor.u32 %v6191_v18, %v5737_v62 }
 0x365   :  { %v7717_v29 = vadd.f32 %v3130_v11, %v7509_v31  ;;  %v6207_v31 = vld [vmem:[#allocation4 + $0x4b4] sm:$0xf] }
 0x366   :  { %v2932_v46 = vadd.f32 %v2931_v50, %v2883_v17  ;;  %v2982_v44 = vpop.f32.mrf.mxu0  ;;  %v3031_v39 = vpop.f32.mrf.mxu1  ;;  %v5801_v50 = vld [vmem:[#allocation4 + $0x4f0] sm:$0xf0]  ;;  %4001 = vmatpush.bf16.msrb.mxu0 %v5740_v36  ;;  %v5791_v36 = vld [vmem:[#allocation4 + $0x430] sm:$0xf] }
 0x367   :  { %v2983_v8 = vadd.f32 %v2982_v44, %v7583_v14  ;;  %v5804_v33 = vor.u32 %v6207_v31, %v5801_v50  ;;  %v6206_v50 = vld [vmem:[#allocation4 + $0x46c] sm:$0xf0] }
 0x368   :  { %v3129_v7 = vmul.f32 %v3083_v42, %v2932_v46 }
 0x369   :  { %v3032_v28 = vadd.f32 %v3031_v39, %v2983_v8  ;;  %4050 = vmatpush.bf16.msrb.mxu1 %v5804_v33 }
 0x36a   :  { %v7721_v22 = vadd.f32 %v3129_v7, %v7513_v10  ;;  %v5727_v7 = vld [vmem:[#allocation4 + $0x30] sm:$0xf] }
 0x36b   :  { %v3132_v4 = vmul.f32 %v3087_v45, %v3032_v28  ;;  %v2884_v11 = vpop.f32.mrf.mxu2  ;;  %v2933_v40 = vpop.f32.mrf.mxu3  ;;  %v6190_v28 = vld [vmem:[#allocation4 + $0x6c] sm:$0xf0] }
 0x36c   :  { %v2885_v17 = vadd.f32 %v2884_v11, %v7593_v63  ;;  %v8450_v11 = vld [vmem:[#allocation23_spill] sm:$0xff] }
 0x36d   :  { %v7725_v2 = vadd.f32 %v3132_v4, %v7517_v24  ;;  %v5728_v4 = vor.u32 %v6190_v28, %v5727_v7  ;;  %v6189_v7 = vld [vmem:[#allocation4 + $0x34] sm:$0xf] }
 0x36e   :  { %v2934_v42 = vadd.f32 %v2933_v40, %v2885_v17  ;;  %v2985_v46 = vpop.f32.mrf.mxu0  ;;  %v3034_v44 = vpop.f32.mrf.mxu1  ;;  %v5729_v28 = vld [vmem:[#allocation4 + $0x70] sm:$0xf0] }
 0x36f   :  { %v2986_v10 = vadd.f32 %v2985_v46, %v7583_v14  ;;  %3904 = vmatpush.bf16.msrb.mxu2 %v5728_v4  ;;  %v5792_v46 = vor.u32 %v6206_v50, %v5791_v36 }
 0x370   :  { %v3131_v39 = vmul.f32 %v3087_v45, %v2934_v42  ;;  %3408 = vmatmul.bf16.gmra.mxu2 %v6699_v58  ;;  %3457 = vmatmul.bf16.gmra.mxu3 %v6701_v59 }
 0x371   :  { %v3035_v8 = vadd.f32 %v3034_v44, %v2986_v10  ;;  %3506 = vmatmul.bf16.gmra.mxu0 %v6699_v58  ;;  %3555 = vmatmul.bf16.gmra.mxu1 %v6701_v59  ;;  %v3095_v10 = vpop.permute.xlu1 %3094 }
 0x372   :  { %v7733_v24 = vadd.f32 %v3131_v39, %v7525_v52  ;;  %3953 = vmatpush.bf16.msrb.mxu3 %v5792_v46  ;;  %v8452_v46 = vld [vmem:[#allocation15_spill] sm:$0xff] }
 0x373   :  { %v3134_v18 = vmul.f32 %v3091_v1, %v3035_v8  ;;  %v2887_v62 = vpop.f32.mrf.mxu2  ;;  %v2936_v31 = vpop.f32.mrf.mxu3 }
 0x374   :  { %v2888_v45 = vadd.f32 %v2887_v62, %v7593_v63 }
 0x375   :  { %v7737_v40 = vadd.f32 %v3134_v18, %v8450_v11  ;;  %v6205_v18 = vld [vmem:[#allocation4 + $0x434] sm:$0xf] }
 0x376   :  { %v2937_v17 = vadd.f32 %v2936_v31, %v2888_v45  ;;  %v2987_v33 = vpop.f32.mrf.mxu0  ;;  %v3036_v42 = vpop.f32.mrf.mxu1  ;;  %v5793_v31 = vld [vmem:[#allocation4 + $0x470] sm:$0xf0] }
 0x377   :  { %8451 = vst [vmem:[#allocation25_spill] sm:$0xff] %v7737_v40  ;;  %v2988_v52 = vadd.f32 %v2987_v33, %v7583_v14  ;;  %v5732_v40 = vor.u32 %v6189_v7, %v5729_v28  ;;  %v5796_v36 = vor.u32 %v6205_v18, %v5793_v31  ;;  %v6236_v28 = vld [vmem:[#allocation4 + $0x3f4] sm:$0xf0]  ;;  %v8456_v31 = vld [vmem:[#allocation26_spill] sm:$0xff] }
 0x378   :  { %v3133_v44 = vmul.f32 %v3091_v1, %v2937_v17 }
 0x379   :  { %v3037_v39 = vadd.f32 %v3036_v42, %v2988_v52  ;;  %4002 = vmatpush.bf16.msrb.mxu0 %v5732_v40  ;;  %4051 = vmatpush.bf16.msrb.mxu1 %v5796_v36  ;;  %v8453_v52 = vld [vmem:[#allocation16_spill] sm:$0xff]  ;;  %v5911_v40 = vld [vmem:[#allocation4 + $0x3b8] sm:$0xf] }
 0x37a   :  { %v7741_v8 = vadd.f32 %v3133_v44, %v7533_v27  ;;  %v3099_v44 = vpop.permute.xlu2 %3098  ;;  %v5975_v36 = vld [vmem:[#allocation4 + $0x7b8] sm:$0xf] }
 0x37b   :  { %v3136_v62 = vmul.f32 %v3095_v10, %v3037_v39  ;;  %v2889_v4 = vpop.f32.mrf.mxu2  ;;  %v2938_v11 = vpop.f32.mrf.mxu3 }
 0x37c   :  { %v2890_v45 = vadd.f32 %v2889_v4, %v7593_v63 }
 0x37d   :  { %v7745_v50 = vadd.f32 %v3136_v62, %v7537_v48  ;;  %v8454_v48 = vld [vmem:[#allocation20_spill] sm:$0xff] }
 0x37e   :  { %v2939_v1 = vadd.f32 %v2938_v11, %v2890_v45  ;;  %v2990_v17 = vpop.f32.mrf.mxu0  ;;  %v3039_v33 = vpop.f32.mrf.mxu1  ;;  %v5912_v11 = vor.u32 %v6236_v28, %v5911_v40  ;;  %v6235_v28 = vld [vmem:[#allocation4 + $0x3bc] sm:$0xf] }
 0x37f   :  { %v2991_v27 = vadd.f32 %v2990_v17, %v7583_v14 }
 0x380   :  { %v3135_v42 = vmul.f32 %v3095_v10, %v2939_v1  ;;  %3413 = vmatmul.bf16.gmra.mxu2 %v8452_v46  ;;  %3462 = vmatmul.bf16.gmra.mxu3 %v8453_v52  ;;  %v6252_v1 = vld [vmem:[#allocation4 + $0x7f4] sm:$0xf0] }
 0x381   :  { %v3040_v39 = vadd.f32 %v3039_v33, %v2991_v27  ;;  %3511 = vmatmul.bf16.gmra.mxu0 %v8452_v46  ;;  %3560 = vmatmul.bf16.gmra.mxu1 %v8453_v52  ;;  %v5976_v52 = vor.u32 %v6252_v1, %v5975_v36 }
 0x382   :  { %v7753_v7 = vadd.f32 %v3135_v42, %v8454_v48  ;;  %4419 = vmatpush.bf16.msra.mxu2 %v5912_v11 }
 0x383   :  { %v3138_v18 = vmul.f32 %v3099_v44, %v3040_v39  ;;  %v2892_v62 = vpop.f32.mrf.mxu2  ;;  %v2941_v4 = vpop.f32.mrf.mxu3  ;;  %4468 = vmatpush.bf16.msra.mxu3 %v5976_v52 }
 0x384   :  { %8455 = vst [vmem:[#allocation31_spill] sm:$0xff] %v7753_v7  ;;  %v2893_v10 = vadd.f32 %v2892_v62, %v7593_v63  ;;  %v3103_v7 = vpop.permute.xlu0 %3102  ;;  %v5913_v62 = vld [vmem:[#allocation4 + $0x3f8] sm:$0xf0] }
 0x385   :  { %v7757_v45 = vadd.f32 %v3138_v18, %v8456_v31  ;;  %v6251_v18 = vld [vmem:[#allocation4 + $0x7bc] sm:$0xf]  ;;  %v5916_v46 = vor.u32 %v6235_v28, %v5913_v62 }
 0x386   :  { %v2942_v17 = vadd.f32 %v2941_v4, %v2893_v10  ;;  %v2992_v33 = vpop.f32.mrf.mxu0  ;;  %v3041_v27 = vpop.f32.mrf.mxu1  ;;  %v5977_v4 = vld [vmem:[#allocation4 + $0x7f8] sm:$0xf0] }
 0x387   :  { %8457 = vst [vmem:[#allocation19_spill] sm:$0xff] %v7757_v45  ;;  %v2993_v42 = vadd.f32 %v2992_v33, %v7583_v14  ;;  %v5980_v36 = vor.u32 %v6251_v18, %v5977_v4  ;;  %4517 = vmatpush.bf16.msra.mxu0 %v5916_v46  ;;  %v5903_v46 = vld [vmem:[#allocation4 + $0x338] sm:$0xf] }
 0x388   :  { %v3137_v48 = vmul.f32 %v3099_v44, %v2942_v17 }
 0x389   :  { %v3042_v39 = vadd.f32 %v3041_v27, %v2993_v42  ;;  %4566 = vmatpush.bf16.msra.mxu1 %v5980_v36  ;;  %v3107_v27 = vpop.permute.xlu1 %3106 }
 0x38a   :  { %v7761_v40 = vadd.f32 %v3137_v48, %v7553_v16 }
 0x38b   :  { %v3140_v31 = vmul.f32 %v3103_v7, %v3042_v39  ;;  %v2894_v11 = vpop.f32.mrf.mxu2  ;;  %v2943_v45 = vpop.f32.mrf.mxu3 }
 0x38c   :  { %v2895_v10 = vadd.f32 %v2894_v11, %v7593_v63  ;;  %v6250_v11 = vld [vmem:[#allocation4 + $0x774] sm:$0xf0] }
 0x38d   :  { %v7765_v1 = vadd.f32 %v3140_v31, %v7557_v9  ;;  %v5967_v31 = vld [vmem:[#allocation4 + $0x738] sm:$0xf] }
 0x38e   :  { %v2944_v52 = vadd.f32 %v2943_v45, %v2895_v10  ;;  %v2995_v44 = vpop.f32.mrf.mxu0  ;;  %v3044_v17 = vpop.f32.mrf.mxu1  ;;  %v6234_v45 = vld [vmem:[#allocation4 + $0x374] sm:$0xf0] }
 0x38f   :  { %v2996_v16 = vadd.f32 %v2995_v44, %v7583_v14  ;;  %v5904_v62 = vor.u32 %v6234_v45, %v5903_v46  ;;  %v6402_v44 = vmov 6   ;;  %v6233_v46 = vld [vmem:[#allocation4 + $0x33c] sm:$0xf] }
 0x390   :  { %v3139_v33 = vmul.f32 %v3103_v7, %v2944_v52  ;;  %3418 = vmatmul.bf16.gmra.mxu2 %v6733_v55  ;;  %3467 = vmatmul.bf16.gmra.mxu3 %v6735_v56  ;;  %v5968_v52 = vor.u32 %v6250_v11, %v5967_v31  ;;  %v5905_v45 = vld [vmem:[#allocation4 + $0x378] sm:$0xf0] }
 0x391   :  { %v3045_v42 = vadd.f32 %v3044_v17, %v2996_v16  ;;  %3516 = vmatmul.bf16.gmra.mxu0 %v6733_v55  ;;  %3565 = vmatmul.bf16.gmra.mxu1 %v6735_v56  ;;  %v3111_v16 = vpop.permute.xlu2 %3110  ;;  %v5908_v11 = vor.u32 %v6233_v46, %v5905_v45  ;;  %v3573_v46 = vpop.permute.xlu0 %3572 }
 0x392   :  { %v7773_v9 = vadd.f32 %v3139_v33, %v7565_v38  ;;  %4420 = vmatpush.bf16.msra.mxu2 %v5904_v62  ;;  %6288 = vset.pattern.permute.xlu0 %v6402_v44  ;;  %v3209_v33 = vld [vmem:[%s8300_s5 + $0xa] sm:$0x3] }
 0x393   :  { %v3142_v48 = vmul.f32 %v3107_v27, %v3045_v42  ;;  %v2897_v39 = vpop.f32.mrf.mxu2  ;;  %v2946_v28 = vpop.f32.mrf.mxu3  ;;  %6289 = vset.pattern.permute.xlu1 %v6402_v44  ;;  %4469 = vmatpush.bf16.msra.mxu3 %v5968_v52  ;;  %v7804_v31 = vperm.slane %v3209_v33, 1  ;;  %v7813_v45 = vperm.slane %v3209_v33, 0  ;;  %v7829_v33 = vld [vmem:[%s8296_s1 + $0x18] sm:$0xff] }
 0x394   :  { %v2898_v7 = vadd.f32 %v2897_v39, %v7593_v63  ;;  %6287 = vset.pattern.permute.xlu2 %v6402_v44  ;;  %v7801_v39 = vld [vmem:[%s8296_s1] sm:$0xff]  ;;  %4518 = vmatpush.bf16.msra.mxu0 %v5908_v11 }
 0x395   :  { %v7777_v18 = vadd.f32 %v3142_v48, %v7572_v43  ;;  %v7786_v43 = vld [vmem:[%s8296_s1 + $0x8] sm:$0xff]  ;;  %v6249_v48 = vld [vmem:[#allocation4 + $0x73c] sm:$0xf]  ;;  %4094 = vperm.xlu2 %6287, %v7801_v39  }
 0x396   :  { %v2947_v4 = vadd.f32 %v2946_v28, %v2898_v7  ;;  %v2997_v10 = vpop.f32.mrf.mxu0  ;;  %v3046_v36 = vpop.f32.mrf.mxu1  ;;  %4098 = vperm.xlu0 %6288, %v7786_v43  }
 0x397   :  { %v2998_v38 = vadd.f32 %v2997_v10, %v7583_v14  ;;  %v7792_v14 = vld [vmem:[%s8296_s1 + $0x10] sm:$0xff] }
 0x398   :  { %v3141_v17 = vmul.f32 %v3107_v27, %v2947_v4  ;;  %4102 = vperm.xlu1 %6289, %v7792_v14   ;;  %v5969_v4 = vld [vmem:[#allocation4 + $0x778] sm:$0xf0] }
 0x399   :  { %v3047_v42 = vadd.f32 %v3046_v36, %v2998_v38  ;;  %v5972_v10 = vor.u32 %v6249_v48, %v5969_v4  ;;  %v5895_v48 = vld [vmem:[#allocation4 + $0x2b8] sm:$0xf]  ;;  %v7835_v4 = vld [vmem:[%s8296_s1 + $0x30] sm:$0xff] }
 0x39a   :  { %v7796_v27 = vadd.f32 %v3141_v17, %v7579_v37  ;;  %8459 = vst [vmem:[#allocation18_spill] sm:$0xff] %v7835_v4 }
 0x39b   :  { %v3144_v28 = vmul.f32 %v3111_v16, %v3047_v42  ;;  %v2899_v62 = vpop.f32.mrf.mxu2  ;;  %v2948_v7 = vpop.f32.mrf.mxu3  ;;  %4567 = vmatpush.bf16.msra.mxu1 %v5972_v10 }
 0x39c   :  { %v2900_v37 = vadd.f32 %v2899_v62, %v7593_v63 }
 0x39d   :  { %v7808_v36 = vadd.f32 %v3144_v28, %v7588_v0  ;;  %v6232_v28 = vld [vmem:[#allocation4 + $0x2f4] sm:$0xf0]  ;;  %4106 = vperm.xlu2 %6287, %v7829_v33  }
 0x39e   :  { %v2949_v52 = vadd.f32 %v2948_v7, %v2900_v37  ;;  %v3482_v38 = vpop.f32.mrf.mxu0  ;;  %v3531_v44 = vpop.f32.mrf.mxu1  ;;  %v5896_v11 = vor.u32 %v6232_v28, %v5895_v48  ;;  %4118 = vperm.xlu0 %6288, %v7835_v4  }
 0x39f   :  { %v3483_v17 = vadd.f32 %v3482_v38, %v7804_v31  ;;  %v6248_v38 = vld [vmem:[#allocation4 + $0x6f4] sm:$0xf0] }
 0x3a0   :  { %v3143_v42 = vmul.f32 %v3111_v16, %v2949_v52  ;;  %3905 = vmatmul.bf16.vlgmr.msrb.gmra.mxu2 %v8436_v3  ;;  %3954 = vmatmul.bf16.vlgmr.msrb.gmra.mxu3 %v8437_v57  ;;  %v7823_v16 = vld [vmem:[%s8296_s1 + $0x20] sm:$0xff]  ;;  %v5959_v52 = vld [vmem:[#allocation4 + $0x6b8] sm:$0xf] }
 0x3a1   :  { %v3532_v63 = vadd.f32 %v3531_v44, %v3483_v17  ;;  %4003 = vmatmul.bf16.vlgmr.msrb.gmra.mxu0 %v8436_v3  ;;  %4052 = vmatmul.bf16.vlgmr.msrb.gmra.mxu1 %v8437_v57  ;;  %v5897_v3 = vld [vmem:[#allocation4 + $0x2f8] sm:$0xf0] }
 0x3a2   :  { %v7818_v0 = vadd.f32 %v3143_v42, %v7598_v19  ;;  %4110 = vperm.xlu1 %6289, %v7823_v16   ;;  %4421 = vmatpush.bf16.msra.mxu2 %v5896_v11 }
 0x3a3   :  { %v3636_v62 = vmul.f32 %v3573_v46, %v3532_v63  ;;  %v3384_v7 = vpop.f32.mrf.mxu2  ;;  %v3433_v19 = vpop.f32.mrf.mxu3  ;;  %v5960_v63 = vor.u32 %v6248_v38, %v5959_v52  ;;  %v5961_v52 = vld [vmem:[#allocation4 + $0x6f8] sm:$0xf0]  ;;  %v7861_v38 = vld [vmem:[%s8296_s1 + $0x48] sm:$0xff] }
 0x3a4   :  { %8458 = vst [vmem:[#allocation29_spill] sm:$0xff] %v7818_v0  ;;  %v3385_v37 = vadd.f32 %v3384_v7, %v7813_v45  ;;  %v3577_v0 = vpop.permute.xlu1 %3576  ;;  %v6231_v7 = vld [vmem:[#allocation4 + $0x2bc] sm:$0xf] }
 0x3a5   :  { %v7840_v10 = vadd.f32 %v3636_v62, %v7610_v21  ;;  %4470 = vmatpush.bf16.msra.mxu3 %v5960_v63  ;;  %v6247_v21 = vld [vmem:[#allocation4 + $0x6bc] sm:$0xf]  ;;  %8460 = vst [vmem:[#allocation21_spill] sm:$0xff] %v7861_v38 }
 0x3a6   :  { %v3434_v44 = vadd.f32 %v3433_v19, %v3385_v37  ;;  %v3484_v17 = vpop.f32.mrf.mxu0  ;;  %v3533_v42 = vpop.f32.mrf.mxu1  ;;  %v7849_v62 = vld [vmem:[%s8296_s1 + $0x38] sm:$0xff]  ;;  %v5900_v37 = vor.u32 %v6231_v7, %v5897_v3  ;;  %4130 = vperm.xlu0 %6288, %v7861_v38  }
 0x3a7   :  { %v3485_v48 = vadd.f32 %v3484_v17, %v7804_v31  ;;  %v5964_v17 = vor.u32 %v6247_v21, %v5961_v52  ;;  %v3581_v7 = vpop.permute.xlu2 %3580  ;;  %v5887_v21 = vld [vmem:[#allocation4 + $0x238] sm:$0xf] }
 0x3a8   :  { %v3635_v28 = vmul.f32 %v3573_v46, %v3434_v44  ;;  %v7855_v46 = vld [vmem:[%s8296_s1 + $0x28] sm:$0xff]  ;;  %4519 = vmatpush.bf16.msra.mxu0 %v5900_v37 }
 0x3a9   :  { %v3534_v57 = vadd.f32 %v3533_v42, %v3485_v48  ;;  %4114 = vperm.xlu2 %6287, %v7855_v46   ;;  %4568 = vmatpush.bf16.msra.mxu1 %v5964_v17 }
 0x3aa   :  { %v7844_v4 = vadd.f32 %v3635_v28, %v7614_v15  ;;  %4122 = vperm.xlu1 %6289, %v7849_v62  }
 0x3ab   :  { %v3638_v19 = vmul.f32 %v3577_v0, %v3534_v57  ;;  %v3386_v15 = vpop.f32.mrf.mxu2  ;;  %v3435_v11 = vpop.f32.mrf.mxu3 }
 0x3ac   :  { %v3387_v44 = vadd.f32 %v3386_v15, %v7813_v45  ;;  %v7879_v15 = vld [vmem:[%s8296_s1 + $0x50] sm:$0xff] }
 0x3ad   :  { %v7866_v42 = vadd.f32 %v3638_v19, %v7626_v54  ;;  %v6230_v19 = vld [vmem:[#allocation4 + $0x274] sm:$0xf0] }
 0x3ae   :  { %v3436_v63 = vadd.f32 %v3435_v11, %v3387_v44  ;;  %v3487_v57 = vpop.f32.mrf.mxu0  ;;  %v3536_v48 = vpop.f32.mrf.mxu1  ;;  %v5888_v52 = vor.u32 %v6230_v19, %v5887_v21 }
 0x3af   :  { %v3488_v3 = vadd.f32 %v3487_v57, %v7804_v31  ;;  %v6246_v57 = vld [vmem:[#allocation4 + $0x674] sm:$0xf0]  ;;  %v3585_v19 = vpop.permute.xlu1 %3584 }
 0x3b0   :  { %v3637_v28 = vmul.f32 %v3577_v0, %v3436_v63  ;;  %3910 = vmatmul.bf16.gmra.mxu2 %v6588_v25  ;;  %3959 = vmatmul.bf16.gmra.mxu3 %v6590_v26  ;;  %v5951_v63 = vld [vmem:[#allocation4 + $0x638] sm:$0xf] }
 0x3b1   :  { %v3537_v38 = vadd.f32 %v3536_v48, %v3488_v3  ;;  %4008 = vmatmul.bf16.gmra.mxu0 %v6588_v25  ;;  %4057 = vmatmul.bf16.gmra.mxu1 %v6590_v26  ;;  %v5952_v3 = vor.u32 %v6246_v57, %v5951_v63  ;;  %v5889_v26 = vld [vmem:[#allocation4 + $0x278] sm:$0xf0]  ;;  %v8463_v57 = vld [vmem:[#allocation27_spill] sm:$0xff] }
 0x3b2   :  { %v7874_v54 = vadd.f32 %v3637_v28, %v7634_v41  ;;  %4134 = vperm.xlu1 %6289, %v7879_v15   ;;  %4126 = vperm.xlu2 %6287, %v7604_v60   ;;  %v7886_v41 = vld [vmem:[%s8296_s1 + $0x60] sm:$0xff]  ;;  %v5953_v63 = vld [vmem:[#allocation4 + $0x678] sm:$0xf0] }
 0x3b3   :  { %v3640_v0 = vmul.f32 %v3581_v7, %v3537_v38  ;;  %v3389_v11 = vpop.f32.mrf.mxu2  ;;  %v3438_v37 = vpop.f32.mrf.mxu3  ;;  %8462 = vst [vmem:[#allocation23_spill] sm:$0xff] %v7886_v41  ;;  %4142 = vperm.xlu0 %6288, %v7886_v41   ;;  %4422 = vmatpush.bf16.msra.mxu2 %v5888_v52 }
 0x3b4   :  { %8461 = vst [vmem:[#allocation22_spill] sm:$0xff] %v7874_v54  ;;  %v3390_v44 = vadd.f32 %v3389_v11, %v7813_v45  ;;  %4471 = vmatpush.bf16.msra.mxu3 %v5952_v3  ;;  %v6229_v11 = vld [vmem:[#allocation4 + $0x23c] sm:$0xf] }
 0x3b5   :  { %v7891_v17 = vadd.f32 %v3640_v0, %v7651_v12  ;;  %v6245_v12 = vld [vmem:[#allocation4 + $0x63c] sm:$0xf] }
 0x3b6   :  { %v3439_v60 = vadd.f32 %v3438_v37, %v3390_v44  ;;  %v3489_v38 = vpop.f32.mrf.mxu0  ;;  %v3538_v48 = vpop.f32.mrf.mxu1  ;;  %v5892_v44 = vor.u32 %v6229_v11, %v5889_v26  ;;  %v8467_v26 = vld [vmem:[#allocation14_spill] sm:$0xff] }
 0x3b7   :  { %v3490_v28 = vadd.f32 %v3489_v38, %v7804_v31  ;;  %v8464_v38 = vld [vmem:[#allocation24_spill] sm:$0xff] }
 0x3b8   :  { %v3639_v21 = vmul.f32 %v3581_v7, %v3439_v60  ;;  %v5956_v60 = vor.u32 %v6245_v12, %v5953_v63  ;;  %4520 = vmatpush.bf16.msra.mxu0 %v5892_v44  ;;  %v8468_v12 = vld [vmem:[#allocation17_spill] sm:$0xff]  ;;  %v8470_v44 = vld [vmem:[#allocation28_spill] sm:$0xff] }
 0x3b9   :  { %v3539_v54 = vadd.f32 %v3538_v48, %v3490_v28 }
 0x3ba   :  { %v7895_v41 = vadd.f32 %v3639_v21, %v7655_v6  ;;  %4146 = vperm.xlu1 %6289, %v7647_v20   ;;  %4138 = vperm.xlu2 %6287, %v7620_v23   ;;  %v3589_v21 = vpop.permute.xlu2 %3588 }
 0x3bb   :  { %v3642_v0 = vmul.f32 %v3585_v19, %v3539_v54  ;;  %v3391_v37 = vpop.f32.mrf.mxu2  ;;  %v3440_v52 = vpop.f32.mrf.mxu3  ;;  %4154 = vperm.xlu0 %6288, %v8463_v57   ;;  %4569 = vmatpush.bf16.msra.mxu1 %v5956_v60  ;;  %v8466_v54 = vld [vmem:[#allocation13_spill] sm:$0xff] }
 0x3bc   :  { %v3392_v7 = vadd.f32 %v3391_v37, %v7813_v45  ;;  %v5879_v37 = vld [vmem:[#allocation4 + $0x1b8] sm:$0xf] }
 0x3bd   :  { %v7902_v6 = vadd.f32 %v3642_v0, %v8464_v38  ;;  %v8471_v38 = vld [vmem:[#allocation30_spill] sm:$0xff] }
 0x3be   :  { %v3441_v48 = vadd.f32 %v3440_v52, %v3392_v7  ;;  %v3492_v3 = vpop.f32.mrf.mxu0  ;;  %v3541_v28 = vpop.f32.mrf.mxu1  ;;  %v6228_v52 = vld [vmem:[#allocation4 + $0x1f4] sm:$0xf0] }
 0x3bf   :  { %8465 = vst [vmem:[#allocation20_spill] sm:$0xff] %v7902_v6  ;;  %v3493_v23 = vadd.f32 %v3492_v3, %v7804_v31  ;;  %v5880_v7 = vor.u32 %v6228_v52, %v5879_v37  ;;  %v5943_v3 = vld [vmem:[#allocation4 + $0x5b8] sm:$0xf]  ;;  %v6227_v52 = vld [vmem:[#allocation4 + $0x1bc] sm:$0xf] }
 0x3c0   :  { %v3641_v20 = vmul.f32 %v3585_v19, %v3441_v48  ;;  %3915 = vmatmul.bf16.gmra.mxu2 %v8466_v54  ;;  %3964 = vmatmul.bf16.gmra.mxu3 %v8467_v26 }
 0x3c1   :  { %v3542_v11 = vadd.f32 %v3541_v28, %v3493_v23  ;;  %4013 = vmatmul.bf16.gmra.mxu0 %v8466_v54  ;;  %4062 = vmatmul.bf16.gmra.mxu1 %v8467_v26  ;;  %v6244_v28 = vld [vmem:[#allocation4 + $0x5f4] sm:$0xf0] }
 0x3c2   :  { %v7910_v0 = vadd.f32 %v3641_v20, %v8468_v12  ;;  %4150 = vperm.xlu2 %6287, %v8470_v44   ;;  %4423 = vmatpush.bf16.msra.mxu2 %v5880_v7  ;;  %v5944_v12 = vor.u32 %v6244_v28, %v5943_v3  ;;  %v3593_v44 = vpop.permute.xlu0 %3592 }
 0x3c3   :  { %v3644_v63 = vmul.f32 %v3589_v21, %v3542_v11  ;;  %v3394_v57 = vpop.f32.mrf.mxu2  ;;  %v3443_v19 = vpop.f32.mrf.mxu3 }
 0x3c4   :  { %8469 = vst [vmem:[#allocation26_spill] sm:$0xff] %v7910_v0  ;;  %v3395_v60 = vadd.f32 %v3394_v57, %v7813_v45  ;;  %4472 = vmatpush.bf16.msra.mxu3 %v5944_v12  ;;  %v5881_v57 = vld [vmem:[#allocation4 + $0x1f8] sm:$0xf0] }
 0x3c5   :  { %v7915_v48 = vadd.f32 %v3644_v63, %v8471_v38  ;;  %v6243_v63 = vld [vmem:[#allocation4 + $0x5bc] sm:$0xf]  ;;  %v5884_v6 = vor.u32 %v6227_v52, %v5881_v57 }
 0x3c6   :  { %v3444_v23 = vadd.f32 %v3443_v19, %v3395_v60  ;;  %v3494_v26 = vpop.f32.mrf.mxu0  ;;  %v3543_v20 = vpop.f32.mrf.mxu1  ;;  %v5945_v19 = vld [vmem:[#allocation4 + $0x5f8] sm:$0xf0] }
 0x3c7   :  { %8472 = vst [vmem:[#allocation27_spill] sm:$0xff] %v7915_v48  ;;  %v3495_v0 = vadd.f32 %v3494_v26, %v7804_v31  ;;  %v5948_v3 = vor.u32 %v6243_v63, %v5945_v19  ;;  %4521 = vmatpush.bf16.msra.mxu0 %v5884_v6  ;;  %v5871_v6 = vld [vmem:[#allocation4 + $0x138] sm:$0xf] }
 0x3c8   :  { %v3643_v54 = vmul.f32 %v3589_v21, %v3444_v23  ;;  %v3597_v23 = vpop.permute.xlu1 %3596 }
 0x3c9   :  { %v3544_v11 = vadd.f32 %v3543_v20, %v3495_v0  ;;  %4570 = vmatpush.bf16.msra.mxu1 %v5948_v3 }
 0x3ca   :  { %v7919_v37 = vadd.f32 %v3643_v54, %v7681_v61 }
 0x3cb   :  { %v3646_v38 = vmul.f32 %v3593_v44, %v3544_v11  ;;  %v3396_v7 = vpop.f32.mrf.mxu2  ;;  %v3445_v48 = vpop.f32.mrf.mxu3 }
 0x3cc   :  { %v3397_v60 = vadd.f32 %v3396_v7, %v7813_v45  ;;  %v6242_v7 = vld [vmem:[#allocation4 + $0x574] sm:$0xf0] }
 0x3cd   :  { %v7923_v26 = vadd.f32 %v3646_v38, %v7685_v35  ;;  %v5935_v38 = vld [vmem:[#allocation4 + $0x538] sm:$0xf] }
 0x3ce   :  { %v3446_v21 = vadd.f32 %v3445_v48, %v3397_v60  ;;  %v3497_v0 = vpop.f32.mrf.mxu0  ;;  %v3546_v28 = vpop.f32.mrf.mxu1  ;;  %v6226_v48 = vld [vmem:[#allocation4 + $0x174] sm:$0xf0] }
 0x3cf   :  { %v3498_v61 = vadd.f32 %v3497_v0, %v7804_v31  ;;  %v5872_v57 = vor.u32 %v6226_v48, %v5871_v6  ;;  %v5873_v6 = vld [vmem:[#allocation4 + $0x178] sm:$0xf0] }
 0x3d0   :  { %v3645_v54 = vmul.f32 %v3593_v44, %v3446_v21  ;;  %3920 = vmatmul.bf16.gmra.mxu2 %v6655_v47  ;;  %3969 = vmatmul.bf16.gmra.mxu3 %v6657_v49  ;;  %v5936_v21 = vor.u32 %v6242_v7, %v5935_v38 }
 0x3d1   :  { %v3547_v20 = vadd.f32 %v3546_v28, %v3498_v61  ;;  %4018 = vmatmul.bf16.gmra.mxu0 %v6655_v47  ;;  %4067 = vmatmul.bf16.gmra.mxu1 %v6657_v49  ;;  %v3601_v28 = vpop.permute.xlu2 %3600 }
 0x3d2   :  { %v7931_v35 = vadd.f32 %v3645_v54, %v7693_v5  ;;  %4424 = vmatpush.bf16.msra.mxu2 %v5872_v57  ;;  %4473 = vmatpush.bf16.msra.mxu3 %v5936_v21  ;;  %v3605_v21 = vpop.permute.xlu0 %3604 }
 0x3d3   :  { %v3648_v12 = vmul.f32 %v3597_v23, %v3547_v20  ;;  %v3399_v11 = vpop.f32.mrf.mxu2  ;;  %v3448_v52 = vpop.f32.mrf.mxu3  ;;  %v6225_v20 = vld [vmem:[#allocation4 + $0x13c] sm:$0xf] }
 0x3d4   :  { %v3400_v44 = vadd.f32 %v3399_v11, %v7813_v45  ;;  %v5876_v57 = vor.u32 %v6225_v20, %v5873_v6 }
 0x3d5   :  { %v7935_v63 = vadd.f32 %v3648_v12, %v7697_v13  ;;  %v6241_v13 = vld [vmem:[#allocation4 + $0x53c] sm:$0xf] }
 0x3d6   :  { %v3449_v19 = vadd.f32 %v3448_v52, %v3400_v44  ;;  %v3499_v60 = vpop.f32.mrf.mxu0  ;;  %v3548_v3 = vpop.f32.mrf.mxu1  ;;  %v5937_v52 = vld [vmem:[#allocation4 + $0x578] sm:$0xf0]  ;;  %4522 = vmatpush.bf16.msra.mxu0 %v5876_v57  ;;  %v6240_v57 = vld [vmem:[#allocation4 + $0x4f4] sm:$0xf0] }
 0x3d7   :  { %v3500_v5 = vadd.f32 %v3499_v60, %v7804_v31  ;;  %v5940_v38 = vor.u32 %v6241_v13, %v5937_v52 }
 0x3d8   :  { %v3647_v0 = vmul.f32 %v3597_v23, %v3449_v19 }
 0x3d9   :  { %v3549_v61 = vadd.f32 %v3548_v3, %v3500_v5  ;;  %4571 = vmatpush.bf16.msra.mxu1 %v5940_v38 }
 0x3da   :  { %v7939_v54 = vadd.f32 %v3647_v0, %v7701_v53  ;;  %v5863_v0 = vld [vmem:[#allocation4 + $0xb8] sm:$0xf] }
 0x3db   :  { %v3650_v48 = vmul.f32 %v3601_v28, %v3549_v61  ;;  %v3401_v12 = vpop.f32.mrf.mxu2  ;;  %v3450_v11 = vpop.f32.mrf.mxu3  ;;  %v6224_v61 = vld [vmem:[#allocation4 + $0xf4] sm:$0xf0] }
 0x3dc   :  { %v3402_v44 = vadd.f32 %v3401_v12, %v7813_v45 }
 0x3dd   :  { %v7943_v7 = vadd.f32 %v3650_v48, %v7705_v32  ;;  %v5864_v48 = vor.u32 %v6224_v61, %v5863_v0  ;;  %v5865_v0 = vld [vmem:[#allocation4 + $0xf8] sm:$0xf0] }
 0x3de   :  { %v3451_v23 = vadd.f32 %v3450_v11, %v3402_v44  ;;  %v3502_v19 = vpop.f32.mrf.mxu0  ;;  %v3551_v60 = vpop.f32.mrf.mxu1  ;;  %v5927_v11 = vld [vmem:[#allocation4 + $0x4b8] sm:$0xf] }
 0x3df   :  { %v3503_v53 = vadd.f32 %v3502_v19, %v7804_v31  ;;  %4425 = vmatpush.bf16.msra.mxu2 %v5864_v48 }
 0x3e0   :  { %v3649_v3 = vmul.f32 %v3601_v28, %v3451_v23  ;;  %3925 = vmatmul.bf16.gmra.mxu2 %v6679_v30  ;;  %3974 = vmatmul.bf16.gmra.mxu3 %v6681_v51  ;;  %v5928_v23 = vor.u32 %v6240_v57, %v5927_v11 }
 0x3e1   :  { %v3552_v5 = vadd.f32 %v3551_v60, %v3503_v53  ;;  %4023 = vmatmul.bf16.gmra.mxu0 %v6679_v30  ;;  %4072 = vmatmul.bf16.gmra.mxu1 %v6681_v51  ;;  %v3609_v60 = vpop.permute.xlu1 %3608 }
 0x3e2   :  { %v7951_v32 = vadd.f32 %v3649_v3, %v7713_v34  ;;  %4474 = vmatpush.bf16.msra.mxu3 %v5928_v23  ;;  %v3613_v23 = vpop.permute.xlu2 %3612 }
 0x3e3   :  { %v3652_v20 = vmul.f32 %v3605_v21, %v3552_v5  ;;  %v3404_v6 = vpop.f32.mrf.mxu2  ;;  %v3453_v13 = vpop.f32.mrf.mxu3  ;;  %v6223_v5 = vld [vmem:[#allocation4 + $0xbc] sm:$0xf] }
 0x3e4   :  { %v3405_v28 = vadd.f32 %v3404_v6, %v7813_v45  ;;  %v5868_v48 = vor.u32 %v6223_v5, %v5865_v0 }
 0x3e5   :  { %v7955_v12 = vadd.f32 %v3652_v20, %v7717_v29  ;;  %v6239_v29 = vld [vmem:[#allocation4 + $0x4bc] sm:$0xf] }
 0x3e6   :  { %v3454_v52 = vadd.f32 %v3453_v13, %v3405_v28  ;;  %v3504_v44 = vpop.f32.mrf.mxu0  ;;  %v3553_v38 = vpop.f32.mrf.mxu1  ;;  %v5929_v13 = vld [vmem:[#allocation4 + $0x4f8] sm:$0xf0]  ;;  %4523 = vmatpush.bf16.msra.mxu0 %v5868_v48  ;;  %v5919_v48 = vld [vmem:[#allocation4 + $0x438] sm:$0xf] }
 0x3e7   :  { %v3505_v34 = vadd.f32 %v3504_v44, %v7804_v31  ;;  %v5932_v11 = vor.u32 %v6239_v29, %v5929_v13  ;;  %v6238_v13 = vld [vmem:[#allocation4 + $0x474] sm:$0xf0] }
 0x3e8   :  { %v3651_v19 = vmul.f32 %v3605_v21, %v3454_v52 }
 0x3e9   :  { %v3554_v53 = vadd.f32 %v3553_v38, %v3505_v34  ;;  %4572 = vmatpush.bf16.msra.mxu1 %v5932_v11 }
 0x3ea   :  { %v7959_v3 = vadd.f32 %v3651_v19, %v7721_v22  ;;  %v5855_v19 = vld [vmem:[#allocation4 + $0x38] sm:$0xf] }
 0x3eb   :  { %v3654_v61 = vmul.f32 %v3609_v60, %v3554_v53  ;;  %v3406_v20 = vpop.f32.mrf.mxu2  ;;  %v3455_v6 = vpop.f32.mrf.mxu3  ;;  %v6222_v53 = vld [vmem:[#allocation4 + $0x74] sm:$0xf0] }
 0x3ec   :  { %v3407_v28 = vadd.f32 %v3406_v20, %v7813_v45  ;;  %v8473_v20 = vld [vmem:[#allocation25_spill] sm:$0xff] }
 0x3ed   :  { %v7963_v57 = vadd.f32 %v3654_v61, %v7725_v2  ;;  %v5856_v61 = vor.u32 %v6222_v53, %v5855_v19  ;;  %v6221_v19 = vld [vmem:[#allocation4 + $0x3c] sm:$0xf] }
 0x3ee   :  { %v3456_v21 = vadd.f32 %v3455_v6, %v3407_v28  ;;  %v3507_v52 = vpop.f32.mrf.mxu0  ;;  %v3556_v44 = vpop.f32.mrf.mxu1  ;;  %v5857_v53 = vld [vmem:[#allocation4 + $0x78] sm:$0xf0] }
 0x3ef   :  { %v3508_v22 = vadd.f32 %v3507_v52, %v7804_v31  ;;  %4426 = vmatpush.bf16.msra.mxu2 %v5856_v61  ;;  %v5920_v52 = vor.u32 %v6238_v13, %v5919_v48 }
 0x3f0   :  { %v3653_v38 = vmul.f32 %v3609_v60, %v3456_v21  ;;  %3930 = vmatmul.bf16.gmra.mxu2 %v6699_v58  ;;  %3979 = vmatmul.bf16.gmra.mxu3 %v6701_v59 }
 0x3f1   :  { %v3557_v34 = vadd.f32 %v3556_v44, %v3508_v22  ;;  %4028 = vmatmul.bf16.gmra.mxu0 %v6699_v58  ;;  %4077 = vmatmul.bf16.gmra.mxu1 %v6701_v59  ;;  %v3617_v22 = vpop.permute.xlu0 %3616 }
 0x3f2   :  { %v7971_v2 = vadd.f32 %v3653_v38, %v7733_v24  ;;  %4475 = vmatpush.bf16.msra.mxu3 %v5920_v52  ;;  %v8475_v52 = vld [vmem:[#allocation15_spill] sm:$0xff] }
 0x3f3   :  { %v3656_v5 = vmul.f32 %v3613_v23, %v3557_v34  ;;  %v3409_v0 = vpop.f32.mrf.mxu2  ;;  %v3458_v29 = vpop.f32.mrf.mxu3 }
 0x3f4   :  { %v3410_v60 = vadd.f32 %v3409_v0, %v7813_v45 }
 0x3f5   :  { %v7975_v6 = vadd.f32 %v3656_v5, %v8473_v20  ;;  %v6237_v5 = vld [vmem:[#allocation4 + $0x43c] sm:$0xf] }
 0x3f6   :  { %v3459_v28 = vadd.f32 %v3458_v29, %v3410_v60  ;;  %v3509_v11 = vpop.f32.mrf.mxu0  ;;  %v3558_v21 = vpop.f32.mrf.mxu1  ;;  %v5921_v29 = vld [vmem:[#allocation4 + $0x478] sm:$0xf0] }
 0x3f7   :  { %8474 = vst [vmem:[#allocation24_spill] sm:$0xff] %v7975_v6  ;;  %v3510_v24 = vadd.f32 %v3509_v11, %v7804_v31  ;;  %v5860_v6 = vor.u32 %v6221_v19, %v5857_v53  ;;  %v5924_v48 = vor.u32 %v6237_v5, %v5921_v29 }
 0x3f8   :  { %v3655_v44 = vmul.f32 %v3613_v23, %v3459_v28 }
 0x3f9   :  { %v3559_v38 = vadd.f32 %v3558_v21, %v3510_v24  ;;  %4524 = vmatpush.bf16.msra.mxu0 %v5860_v6  ;;  %4573 = vmatpush.bf16.msra.mxu1 %v5924_v48  ;;  %v8476_v24 = vld [vmem:[#allocation16_spill] sm:$0xff] }
 0x3fa   :  { %v7979_v34 = vadd.f32 %v3655_v44, %v7741_v8  ;;  %v3621_v44 = vpop.permute.xlu1 %3620 }
 0x3fb   :  { %v3658_v0 = vmul.f32 %v3617_v22, %v3559_v38  ;;  %v3411_v61 = vpop.f32.mrf.mxu2  ;;  %v3460_v20 = vpop.f32.mrf.mxu3 }
 0x3fc   :  { %v3412_v60 = vadd.f32 %v3411_v61, %v7813_v45  ;;  %v8479_v61 = vld [vmem:[#allocation19_spill] sm:$0xff] }
 0x3fd   :  { %v7983_v13 = vadd.f32 %v3658_v0, %v7745_v50  ;;  %v8477_v50 = vld [vmem:[#allocation31_spill] sm:$0xff] }
 0x3fe   :  { %v3461_v23 = vadd.f32 %v3460_v20, %v3412_v60  ;;  %v3512_v28 = vpop.f32.mrf.mxu0  ;;  %v3561_v11 = vpop.f32.mrf.mxu1 }
 0x3ff   :  { %v3513_v8 = vadd.f32 %v3512_v28, %v7804_v31  ;;  %v3625_v28 = vpop.permute.xlu2 %3624 }
 0x400   :  { %v3657_v21 = vmul.f32 %v3617_v22, %v3461_v23  ;;  %3935 = vmatmul.bf16.gmra.mxu2 %v8475_v52  ;;  %3984 = vmatmul.bf16.gmra.mxu3 %v8476_v24 }
 0x401   :  { %v3562_v38 = vadd.f32 %v3561_v11, %v3513_v8  ;;  %4033 = vmatmul.bf16.gmra.mxu0 %v8475_v52  ;;  %4082 = vmatmul.bf16.gmra.mxu1 %v8476_v24 }
 0x402   :  { %v7991_v19 = vadd.f32 %v3657_v21, %v8477_v50 }
 0x403   :  { %v3660_v6 = vmul.f32 %v3621_v44, %v3562_v38  ;;  %v3414_v53 = vpop.f32.mrf.mxu2  ;;  %v3463_v5 = vpop.f32.mrf.mxu3 }
 0x404   :  { %8478 = vst [vmem:[#allocation17_spill] sm:$0xff] %v7991_v19  ;;  %v3415_v0 = vadd.f32 %v3414_v53, %v7813_v45 }
 0x405   :  { %v7995_v22 = vadd.f32 %v3660_v6, %v8479_v61 }
 0x406   :  { %v3464_v20 = vadd.f32 %v3463_v5, %v3415_v0  ;;  %v3514_v29 = vpop.f32.mrf.mxu0  ;;  %v3563_v60 = vpop.f32.mrf.mxu1 }
 0x407   :  { %v3515_v48 = vadd.f32 %v3514_v29, %v7804_v31  ;;  %v6403_v29 = vmov 7  }
 0x408   :  { %v3659_v23 = vmul.f32 %v3621_v44, %v3464_v20  ;;  %6290 = vset.pattern.permute.xlu1 %v6403_v29  ;;  %6292 = vset.pattern.permute.xlu0 %v6403_v29 }
 0x409   :  { %v3564_v11 = vadd.f32 %v3563_v60, %v3515_v48  ;;  %4616 = vperm.xlu1 %6290, %v7801_v39   ;;  %4624 = vperm.xlu0 %6292, %v7792_v14   ;;  %v3633_v39 = vpop.permute.xlu1 %3632  ;;  %v3731_v14 = vld [vmem:[%s8300_s5 + $0xc] sm:$0x3] }
 0x40a   :  { %v7999_v8 = vadd.f32 %v3659_v23, %v7761_v40  ;;  %v3629_v40 = vpop.permute.xlu0 %3628  ;;  %6291 = vset.pattern.permute.xlu2 %v6403_v29 }
 0x40b   :  { %v3662_v21 = vmul.f32 %v3625_v28, %v3564_v11  ;;  %v3416_v38 = vpop.f32.mrf.mxu2  ;;  %v3465_v50 = vpop.f32.mrf.mxu3  ;;  %4620 = vperm.xlu2 %6291, %v7786_v43  }
 0x40c   :  { %v3417_v19 = vadd.f32 %v3416_v38, %v7813_v45 }
 0x40d   :  { %v8003_v53 = vadd.f32 %v3662_v21, %v7765_v1 }
 0x40e   :  { %v3466_v6 = vadd.f32 %v3465_v50, %v3417_v19  ;;  %v3517_v5 = vpop.f32.mrf.mxu0  ;;  %v3566_v0 = vpop.f32.mrf.mxu1 }
 0x40f   :  { %v3518_v61 = vadd.f32 %v3517_v5, %v7804_v31 }
 0x410   :  { %v3661_v44 = vmul.f32 %v3625_v28, %v3466_v6  ;;  %3940 = vmatmul.bf16.gmra.mxu2 %v6733_v55  ;;  %3989 = vmatmul.bf16.gmra.mxu3 %v6735_v56 }
 0x411   :  { %v3567_v20 = vadd.f32 %v3566_v0, %v3518_v61  ;;  %4038 = vmatmul.bf16.gmra.mxu0 %v6733_v55  ;;  %4087 = vmatmul.bf16.gmra.mxu1 %v6735_v56  ;;  %v8029_v61 = vperm.slane %v3731_v14, 1 }
 0x412   :  { %v8011_v1 = vadd.f32 %v3661_v44, %v7773_v9  ;;  %4628 = vperm.xlu1 %6290, %v7829_v33   ;;  %4644 = vperm.xlu0 %6292, %v7849_v62   ;;  %v8481_v62 = vld [vmem:[#allocation11_spill] sm:$0xff] }
 0x413   :  { %v3664_v19 = vmul.f32 %v3629_v40, %v3567_v20  ;;  %v3419_v60 = vpop.f32.mrf.mxu2  ;;  %v3468_v48 = vpop.f32.mrf.mxu3  ;;  %4632 = vperm.xlu2 %6291, %v7823_v16  }
 0x414   :  { %v3420_v23 = vadd.f32 %v3419_v60, %v7813_v45  ;;  %v4095_v60 = vpop.permute.xlu2 %4094 }
 0x415   :  { %v8018_v28 = vadd.f32 %v3664_v19, %v7777_v18  ;;  %v8480_v19 = vld [vmem:[#allocation10_spill] sm:$0xff] }
 0x416   :  { %v3469_v11 = vadd.f32 %v3468_v48, %v3420_v23  ;;  %v3519_v21 = vpop.f32.mrf.mxu0  ;;  %v3568_v38 = vpop.f32.mrf.mxu1  ;;  %v8039_v48 = vperm.slane %v3731_v14, 0 }
 0x417   :  { %v3520_v9 = vadd.f32 %v3519_v21, %v7804_v31 }
 0x418   :  { %v3663_v50 = vmul.f32 %v3629_v40, %v3469_v11 }
 0x419   :  { %v3569_v6 = vadd.f32 %v3568_v38, %v3520_v9  ;;  %v8483_v9 = vld [vmem:[#allocation18_spill] sm:$0xff] }
 0x41a   :  { %v8025_v5 = vadd.f32 %v3663_v50, %v7796_v27  ;;  %4636 = vperm.xlu1 %6290, %v7855_v46   ;;  %4656 = vperm.xlu0 %6292, %v7879_v15  }
 0x41b   :  { %v3666_v18 = vmul.f32 %v3633_v39, %v3569_v6  ;;  %v3421_v43 = vpop.f32.mrf.mxu2  ;;  %v3470_v0 = vpop.f32.mrf.mxu3  ;;  %4640 = vperm.xlu2 %6291, %v8483_v9  }
 0x41c   :  { %v3422_v31 = vadd.f32 %v3421_v43, %v7813_v45 }
 0x41d   :  { %v8034_v29 = vadd.f32 %v3666_v18, %v7808_v36  ;;  %v8482_v36 = vld [vmem:[#allocation29_spill] sm:$0xff] }
 0x41e   :  { %v3471_v44 = vadd.f32 %v3470_v0, %v3422_v31  ;;  %v4004_v40 = vpop.f32.mrf.mxu0  ;;  %v4053_v27 = vpop.f32.mrf.mxu1  ;;  %v6336_v31 = vld [vmem:[%s8296_s1 + $0x40] sm:$0xff] }
 0x41f   :  { %v4005_v20 = vadd.f32 %v4004_v40, %v8029_v61  ;;  %v4099_v0 = vpop.permute.xlu0 %4098 }
 0x420   :  { %v3665_v33 = vmul.f32 %v3633_v39, %v3471_v44  ;;  %4427 = vmatmul.bf16.vlgmr.msra.gmra.mxu2 %v8480_v19  ;;  %4476 = vmatmul.bf16.vlgmr.msra.gmra.mxu3 %v8481_v62 }
 0x421   :  { %v4054_v23 = vadd.f32 %v4053_v27, %v4005_v20  ;;  %4525 = vmatmul.bf16.vlgmr.msra.gmra.mxu0 %v8480_v19  ;;  %4574 = vmatmul.bf16.vlgmr.msra.gmra.mxu1 %v8481_v62 }
 0x422   :  { %v8044_v45 = vadd.f32 %v3665_v33, %v8482_v36  ;;  %4648 = vperm.xlu1 %6290, %v6336_v31   ;;  %v8484_v33 = vld [vmem:[#allocation21_spill] sm:$0xff] }
 0x423   :  { %v4158_v16 = vmul.f32 %v4095_v60, %v4054_v23  ;;  %v3906_v11 = vpop.f32.mrf.mxu2  ;;  %v3955_v21 = vpop.f32.mrf.mxu3  ;;  %4652 = vperm.xlu2 %6291, %v8484_v33   ;;  %v6339_v33 = vld [vmem:[%s8296_s1 + $0x70] sm:$0xff] }
 0x424   :  { %v3907_v38 = vadd.f32 %v3906_v11, %v8039_v48  ;;  %v4103_v11 = vpop.permute.xlu1 %4102 }
 0x425   :  { %v8051_v50 = vadd.f32 %v4158_v16, %v7840_v10  ;;  %v6337_v10 = vld [vmem:[%s8296_s1 + $0x68] sm:$0xff]  ;;  %v8485_v16 = vld [vmem:[#allocation12_spill] sm:$0xff] }
 0x426   :  { %v3956_v39 = vadd.f32 %v3955_v21, %v3907_v38  ;;  %v4006_v14 = vpop.f32.mrf.mxu0  ;;  %v4055_v6 = vpop.f32.mrf.mxu1  ;;  %4668 = vperm.xlu0 %6292, %v6337_v10   ;;  %v8486_v38 = vld [vmem:[#allocation22_spill] sm:$0xff] }
 0x427   :  { %v4007_v18 = vadd.f32 %v4006_v14, %v8029_v61 }
 0x428   :  { %v4157_v43 = vmul.f32 %v4095_v60, %v3956_v39 }
 0x429   :  { %v4056_v46 = vadd.f32 %v4055_v6, %v4007_v18 }
 0x42a   :  { %v8055_v15 = vadd.f32 %v4157_v43, %v7844_v4  ;;  %v8487_v43 = vld [vmem:[#allocation23_spill] sm:$0xff] }
 0x42b   :  { %v4160_v44 = vmul.f32 %v4099_v0, %v4056_v46  ;;  %v3908_v40 = vpop.f32.mrf.mxu2  ;;  %v3957_v27 = vpop.f32.mrf.mxu3  ;;  %4664 = vperm.xlu2 %6291, %v8487_v43   ;;  %v8491_v43 = vld [vmem:[#allocation26_spill] sm:$0xff] }
 0x42c   :  { %v3909_v20 = vadd.f32 %v3908_v40, %v8039_v48  ;;  %v4107_v40 = vpop.permute.xlu2 %4106 }
 0x42d   :  { %v8066_v4 = vadd.f32 %v4160_v44, %v7866_v42  ;;  %v6338_v42 = vld [vmem:[%s8296_s1 + $0x58] sm:$0xff] }
 0x42e   :  { %v3958_v19 = vadd.f32 %v3957_v27, %v3909_v20  ;;  %v4009_v62 = vpop.f32.mrf.mxu0  ;;  %v4058_v60 = vpop.f32.mrf.mxu1  ;;  %4660 = vperm.xlu1 %6290, %v6338_v42  }
 0x42f   :  { %v4010_v23 = vadd.f32 %v4009_v62, %v8029_v61 }
 0x430   :  { %v4159_v36 = vmul.f32 %v4099_v0, %v3958_v19  ;;  %4432 = vmatmul.bf16.gmra.mxu2 %v6588_v25  ;;  %4481 = vmatmul.bf16.gmra.mxu3 %v8485_v16 }
 0x431   :  { %v4059_v21 = vadd.f32 %v4058_v60, %v4010_v23  ;;  %4530 = vmatmul.bf16.gmra.mxu0 %v6588_v25  ;;  %4579 = vmatmul.bf16.gmra.mxu1 %v8485_v16  ;;  %v6340_v23 = vld [vmem:[%s8296_s1 + $0x78] sm:$0xff] }
 0x432   :  { %v8074_v9 = vadd.f32 %v4159_v36, %v8486_v38  ;;  %v8488_v36 = vld [vmem:[#allocation20_spill] sm:$0xff] }
 0x433   :  { %v4162_v39 = vmul.f32 %v4103_v11, %v4059_v21  ;;  %v3911_v14 = vpop.f32.mrf.mxu2  ;;  %v3960_v6 = vpop.f32.mrf.mxu3  ;;  %4676 = vperm.xlu2 %6291, %v6340_v23  }
 0x434   :  { %v3912_v18 = vadd.f32 %v3911_v14, %v8039_v48  ;;  %v8490_v14 = vld [vmem:[#allocation14_spill] sm:$0xff]  ;;  %v4115_v23 = vpop.permute.xlu2 %4114 }
 0x435   :  { %v8082_v0 = vadd.f32 %v4162_v39, %v7891_v17  ;;  %v8489_v39 = vld [vmem:[#allocation13_spill] sm:$0xff] }
 0x436   :  { %v3961_v25 = vadd.f32 %v3960_v6, %v3912_v18  ;;  %v4011_v46 = vpop.f32.mrf.mxu0  ;;  %v4060_v31 = vpop.f32.mrf.mxu1  ;;  %4672 = vperm.xlu1 %6290, %v6339_v33  }
 0x437   :  { %v4012_v10 = vadd.f32 %v4011_v46, %v8029_v61  ;;  %v4111_v6 = vpop.permute.xlu1 %4110 }
 0x438   :  { %v4161_v44 = vmul.f32 %v4103_v11, %v3961_v25 }
 0x439   :  { %v4061_v27 = vadd.f32 %v4060_v31, %v4012_v10 }
 0x43a   :  { %v8086_v20 = vadd.f32 %v4161_v44, %v7895_v41 }
 0x43b   :  { %v4164_v19 = vmul.f32 %v4107_v40, %v4061_v27  ;;  %v3913_v62 = vpop.f32.mrf.mxu2  ;;  %v3962_v17 = vpop.f32.mrf.mxu3  ;;  %v8492_v27 = vld [vmem:[#allocation27_spill] sm:$0xff] }
 0x43c   :  { %v3914_v60 = vadd.f32 %v3913_v62, %v8039_v48 }
 0x43d   :  { %v8096_v16 = vadd.f32 %v4164_v19, %v8488_v36 }
 0x43e   :  { %v3963_v41 = vadd.f32 %v3962_v17, %v3914_v60  ;;  %v4014_v11 = vpop.f32.mrf.mxu0  ;;  %v4063_v21 = vpop.f32.mrf.mxu1 }
 0x43f   :  { %v4015_v38 = vadd.f32 %v4014_v11, %v8029_v61 }
 0x440   :  { %v4163_v42 = vmul.f32 %v4107_v40, %v3963_v41  ;;  %4437 = vmatmul.bf16.gmra.mxu2 %v8489_v39  ;;  %4486 = vmatmul.bf16.gmra.mxu3 %v8490_v14 }
 0x441   :  { %v4064_v18 = vadd.f32 %v4063_v21, %v4015_v38  ;;  %4535 = vmatmul.bf16.gmra.mxu0 %v8489_v39  ;;  %4584 = vmatmul.bf16.gmra.mxu1 %v8490_v14 }
 0x442   :  { %v8104_v25 = vadd.f32 %v4163_v42, %v8491_v43 }
 0x443   :  { %v4166_v46 = vmul.f32 %v4111_v6, %v4064_v18  ;;  %v3916_v31 = vpop.f32.mrf.mxu2  ;;  %v3965_v10 = vpop.f32.mrf.mxu3 }
 0x444   :  { %v3917_v44 = vadd.f32 %v3916_v31, %v8039_v48 }
 0x445   :  { %v8108_v40 = vadd.f32 %v4166_v46, %v8492_v27 }
 0x446   :  { %v3966_v33 = vadd.f32 %v3965_v10, %v3917_v44  ;;  %v4016_v19 = vpop.f32.mrf.mxu0  ;;  %v4065_v62 = vpop.f32.mrf.mxu1 }
 0x447   :  { %v4017_v17 = vadd.f32 %v4016_v19, %v8029_v61 }
 0x448   :  { %v4165_v60 = vmul.f32 %v4111_v6, %v3966_v33 }
 0x449   :  { %v4066_v36 = vadd.f32 %v4065_v62, %v4017_v17 }
 0x44a   :  { %v8112_v41 = vadd.f32 %v4165_v60, %v7919_v37  ;;  %v4119_v37 = vpop.permute.xlu0 %4118 }
 0x44b   :  { %v4168_v11 = vmul.f32 %v4115_v23, %v4066_v36  ;;  %v3918_v21 = vpop.f32.mrf.mxu2  ;;  %v3967_v38 = vpop.f32.mrf.mxu3 }
 0x44c   :  { %v3919_v42 = vadd.f32 %v3918_v21, %v8039_v48 }
 0x44d   :  { %v8116_v39 = vadd.f32 %v4168_v11, %v7923_v26 }
 0x44e   :  { %v3968_v14 = vadd.f32 %v3967_v38, %v3919_v42  ;;  %v4019_v18 = vpop.f32.mrf.mxu0  ;;  %v4068_v43 = vpop.f32.mrf.mxu1 }
 0x44f   :  { %v4020_v46 = vadd.f32 %v4019_v18, %v8029_v61 }
 0x450   :  { %v4167_v31 = vmul.f32 %v4115_v23, %v3968_v14  ;;  %4442 = vmatmul.bf16.gmra.mxu2 %v6655_v47  ;;  %4491 = vmatmul.bf16.gmra.mxu3 %v6657_v49 }
 0x451   :  { %v4069_v6 = vadd.f32 %v4068_v43, %v4020_v46  ;;  %4540 = vmatmul.bf16.gmra.mxu0 %v6655_v47  ;;  %4589 = vmatmul.bf16.gmra.mxu1 %v6657_v49  ;;  %v4123_v47 = vpop.permute.xlu1 %4122 }
 0x452   :  { %v8124_v10 = vadd.f32 %v4167_v31, %v7931_v35 }
 0x453   :  { %v4170_v26 = vmul.f32 %v4119_v37, %v4069_v6  ;;  %v3921_v44 = vpop.f32.mrf.mxu2  ;;  %v3970_v27 = vpop.f32.mrf.mxu3 }
 0x454   :  { %v3922_v33 = vadd.f32 %v3921_v44, %v8039_v48 }
 0x455   :  { %v8128_v19 = vadd.f32 %v4170_v26, %v7935_v63 }
 0x456   :  { %v3971_v62 = vadd.f32 %v3970_v27, %v3922_v33  ;;  %v4021_v17 = vpop.f32.mrf.mxu0  ;;  %v4070_v60 = vpop.f32.mrf.mxu1 }
 0x457   :  { %v4022_v23 = vadd.f32 %v4021_v17, %v8029_v61 }
 0x458   :  { %v4169_v36 = vmul.f32 %v4119_v37, %v3971_v62 }
 0x459   :  { %v4071_v11 = vadd.f32 %v4070_v60, %v4022_v23 }
 0x45a   :  { %v8132_v49 = vadd.f32 %v4169_v36, %v7939_v54  ;;  %v4127_v54 = vpop.permute.xlu2 %4126 }
 0x45b   :  { %v4172_v35 = vmul.f32 %v4123_v47, %v4071_v11  ;;  %v3923_v21 = vpop.f32.mrf.mxu2  ;;  %v3972_v38 = vpop.f32.mrf.mxu3 }
 0x45c   :  { %v3924_v42 = vadd.f32 %v3923_v21, %v8039_v48 }
 0x45d   :  { %v8136_v14 = vadd.f32 %v4172_v35, %v7943_v7 }
 0x45e   :  { %v3973_v63 = vadd.f32 %v3972_v38, %v3924_v42  ;;  %v4024_v18 = vpop.f32.mrf.mxu0  ;;  %v4073_v43 = vpop.f32.mrf.mxu1 }
 0x45f   :  { %v4025_v46 = vadd.f32 %v4024_v18, %v8029_v61 }
 0x460   :  { %v4171_v31 = vmul.f32 %v4123_v47, %v3973_v63  ;;  %4447 = vmatmul.bf16.gmra.mxu2 %v6679_v30  ;;  %4496 = vmatmul.bf16.gmra.mxu3 %v6681_v51 }
 0x461   :  { %v4074_v37 = vadd.f32 %v4073_v43, %v4025_v46  ;;  %4545 = vmatmul.bf16.gmra.mxu0 %v6679_v30  ;;  %4594 = vmatmul.bf16.gmra.mxu1 %v6681_v51  ;;  %v4131_v30 = vpop.permute.xlu0 %4130 }
 0x462   :  { %v8144_v6 = vadd.f32 %v4171_v31, %v7951_v32 }
 0x463   :  { %v4174_v7 = vmul.f32 %v4127_v54, %v4074_v37  ;;  %v3926_v26 = vpop.f32.mrf.mxu2  ;;  %v3975_v44 = vpop.f32.mrf.mxu3 }
 0x464   :  { %v3927_v27 = vadd.f32 %v3926_v26, %v8039_v48  ;;  %v8493_v26 = vld [vmem:[#allocation24_spill] sm:$0xff] }
 0x465   :  { %v8148_v33 = vadd.f32 %v4174_v7, %v7955_v12 }
 0x466   :  { %v3976_v62 = vadd.f32 %v3975_v44, %v3927_v27  ;;  %v4026_v17 = vpop.f32.mrf.mxu0  ;;  %v4075_v60 = vpop.f32.mrf.mxu1 }
 0x467   :  { %v4027_v23 = vadd.f32 %v4026_v17, %v8029_v61 }
 0x468   :  { %v4173_v36 = vmul.f32 %v4127_v54, %v3976_v62 }
 0x469   :  { %v4076_v47 = vadd.f32 %v4075_v60, %v4027_v23 }
 0x46a   :  { %v8152_v51 = vadd.f32 %v4173_v36, %v7959_v3  ;;  %v4135_v3 = vpop.permute.xlu1 %4134 }
 0x46b   :  { %v4176_v32 = vmul.f32 %v4131_v30, %v4076_v47  ;;  %v3928_v11 = vpop.f32.mrf.mxu2  ;;  %v3977_v35 = vpop.f32.mrf.mxu3 }
 0x46c   :  { %v3929_v21 = vadd.f32 %v3928_v11, %v8039_v48 }
 0x46d   :  { %v8156_v38 = vadd.f32 %v4176_v32, %v7963_v57 }
 0x46e   :  { %v3978_v12 = vadd.f32 %v3977_v35, %v3929_v21  ;;  %v4029_v42 = vpop.f32.mrf.mxu0  ;;  %v4078_v63 = vpop.f32.mrf.mxu1 }
 0x46f   :  { %v4030_v18 = vadd.f32 %v4029_v42, %v8029_v61 }
 0x470   :  { %v4175_v43 = vmul.f32 %v4131_v30, %v3978_v12  ;;  %4452 = vmatmul.bf16.gmra.mxu2 %v6699_v58  ;;  %4501 = vmatmul.bf16.gmra.mxu3 %v6701_v59 }
 0x471   :  { %v4079_v46 = vadd.f32 %v4078_v63, %v4030_v18  ;;  %4550 = vmatmul.bf16.gmra.mxu0 %v6699_v58  ;;  %4599 = vmatmul.bf16.gmra.mxu1 %v6701_v59  ;;  %v4139_v58 = vpop.permute.xlu2 %4138 }
 0x472   :  { %v8164_v31 = vadd.f32 %v4175_v43, %v7971_v2  ;;  %v8494_v43 = vld [vmem:[#allocation17_spill] sm:$0xff] }
 0x473   :  { %v4178_v57 = vmul.f32 %v4135_v3, %v4079_v46  ;;  %v3931_v54 = vpop.f32.mrf.mxu2  ;;  %v3980_v37 = vpop.f32.mrf.mxu3 }
 0x474   :  { %v3932_v7 = vadd.f32 %v3931_v54, %v8039_v48 }
 0x475   :  { %v8168_v44 = vadd.f32 %v4178_v57, %v8493_v26 }
 0x476   :  { %v3981_v27 = vadd.f32 %v3980_v37, %v3932_v7  ;;  %v4031_v62 = vpop.f32.mrf.mxu0  ;;  %v4080_v17 = vpop.f32.mrf.mxu1 }
 0x477   :  { %v4032_v60 = vadd.f32 %v4031_v62, %v8029_v61 }
 0x478   :  { %v4177_v23 = vmul.f32 %v4135_v3, %v3981_v27 }
 0x479   :  { %v4081_v36 = vadd.f32 %v4080_v17, %v4032_v60 }
 0x47a   :  { %v8172_v59 = vadd.f32 %v4177_v23, %v7979_v34  ;;  %v4143_v34 = vpop.permute.xlu0 %4142 }
 0x47b   :  { %v4180_v2 = vmul.f32 %v4139_v58, %v4081_v36  ;;  %v3933_v30 = vpop.f32.mrf.mxu2  ;;  %v3982_v47 = vpop.f32.mrf.mxu3 }
 0x47c   :  { %v3934_v32 = vadd.f32 %v3933_v30, %v8039_v48 }
 0x47d   :  { %v8176_v11 = vadd.f32 %v4180_v2, %v7983_v13 }
 0x47e   :  { %v3983_v35 = vadd.f32 %v3982_v47, %v3934_v32  ;;  %v4034_v21 = vpop.f32.mrf.mxu0  ;;  %v4083_v12 = vpop.f32.mrf.mxu1 }
 0x47f   :  { %v4035_v42 = vadd.f32 %v4034_v21, %v8029_v61 }
 0x480   :  { %v4179_v63 = vmul.f32 %v4139_v58, %v3983_v35  ;;  %4457 = vmatmul.bf16.gmra.mxu2 %v8475_v52  ;;  %4506 = vmatmul.bf16.gmra.mxu3 %v8476_v24 }
 0x481   :  { %v4084_v18 = vadd.f32 %v4083_v12, %v4035_v42  ;;  %4555 = vmatmul.bf16.gmra.mxu0 %v8475_v52  ;;  %4604 = vmatmul.bf16.gmra.mxu1 %v8476_v24  ;;  %v4147_v52 = vpop.permute.xlu1 %4146 }
 0x482   :  { %v8184_v3 = vadd.f32 %v4179_v63, %v8494_v43 }
 0x483   :  { %v4182_v13 = vmul.f32 %v4143_v34, %v4084_v18  ;;  %v3936_v46 = vpop.f32.mrf.mxu2  ;;  %v3985_v57 = vpop.f32.mrf.mxu3 }
 0x484   :  { %v3937_v54 = vadd.f32 %v3936_v46, %v8039_v48 }
 0x485   :  { %v8188_v37 = vadd.f32 %v4182_v13, %v7995_v22 }
 0x486   :  { %v3986_v7 = vadd.f32 %v3985_v57, %v3937_v54  ;;  %v4036_v26 = vpop.f32.mrf.mxu0  ;;  %v4085_v27 = vpop.f32.mrf.mxu1 }
 0x487   :  { %v4037_v62 = vadd.f32 %v4036_v26, %v8029_v61 }
 0x488   :  { %v4181_v17 = vmul.f32 %v4143_v34, %v3986_v7 }
 0x489   :  { %v4086_v60 = vadd.f32 %v4085_v27, %v4037_v62 }
 0x48a   :  { %v8192_v24 = vadd.f32 %v4181_v17, %v7999_v8  ;;  %v4151_v8 = vpop.permute.xlu2 %4150 }
 0x48b   :  { %v4184_v23 = vmul.f32 %v4147_v52, %v4086_v60  ;;  %v3938_v58 = vpop.f32.mrf.mxu2  ;;  %v3987_v36 = vpop.f32.mrf.mxu3 }
 0x48c   :  { %v3939_v2 = vadd.f32 %v3938_v58, %v8039_v48 }
 0x48d   :  { %v8196_v30 = vadd.f32 %v4184_v23, %v8003_v53 }
 0x48e   :  { %v3988_v22 = vadd.f32 %v3987_v36, %v3939_v2  ;;  %v4039_v47 = vpop.f32.mrf.mxu0  ;;  %v4088_v32 = vpop.f32.mrf.mxu1 }
 0x48f   :  { %v4040_v35 = vadd.f32 %v4039_v47, %v8029_v61 }
 0x490   :  { %v4183_v21 = vmul.f32 %v4147_v52, %v3988_v22  ;;  %4462 = vmatmul.bf16.gmra.mxu2 %v6733_v55  ;;  %4511 = vmatmul.bf16.gmra.mxu3 %v6735_v56 }
 0x491   :  { %v4089_v12 = vadd.f32 %v4088_v32, %v4040_v35  ;;  %4560 = vmatmul.bf16.gmra.mxu0 %v6733_v55  ;;  %4609 = vmatmul.bf16.gmra.mxu1 %v6735_v56  ;;  %v4155_v55 = vpop.permute.xlu0 %4154  ;;  %v4253_v56 = vld [vmem:[%s8300_s5 + $0xe] sm:$0x3]  ;;  %v4617_v32 = vpop.permute.xlu1 %4616  ;;  %s6404_s5 = smov [#allocation7]  }
 0x492   :  { %v8204_v42 = vadd.f32 %v4183_v21, %v8011_v1  ;;  %v8224_v22 = vperm.slane %v4253_v56, 0  ;;  %s4846_s15 = sshll.u32 %s6404_s5, 4  ;;  %s4847_s15 = int_to_ptr.vmem [resolvable:$true] %s4846_s15 }
 0x493   :  { %v4186_v53 = vmul.f32 %v4151_v8, %v4089_v12  ;;  %v3941_v63 = vpop.f32.mrf.mxu2  ;;  %v3990_v34 = vpop.f32.mrf.mxu3 }
 0x494   :  { %v3942_v18 = vadd.f32 %v3941_v63, %v8039_v48 }
 0x495   :  { %v8208_v43 = vadd.f32 %v4186_v53, %v8018_v28  ;;  %v8217_v28 = vperm.slane %v4253_v56, 1 }
 0x496   :  { %v3991_v13 = vadd.f32 %v3990_v34, %v3942_v18  ;;  %v4041_v46 = vpop.f32.mrf.mxu0  ;;  %v4090_v57 = vpop.f32.mrf.mxu1 }
 0x497   :  { %v4042_v54 = vadd.f32 %v4041_v46, %v8029_v61 }
 0x498   :  { %v4185_v7 = vmul.f32 %v4151_v8, %v3991_v13 }
 0x499   :  { %v4091_v1 = vadd.f32 %v4090_v57, %v4042_v54 }
 0x49a   :  { %v8215_v26 = vadd.f32 %v4185_v7, %v8025_v5 }
 0x49b   :  { %v4188_v27 = vmul.f32 %v4155_v55, %v4091_v1  ;;  %v3943_v62 = vpop.f32.mrf.mxu2  ;;  %v3992_v17 = vpop.f32.mrf.mxu3 }
 0x49c   :  { %v3944_v52 = vadd.f32 %v3943_v62, %v8039_v48 }
 0x49d   :  { %v8221_v60 = vadd.f32 %v4188_v27, %v8034_v29 }
 0x49e   :  { %v3993_v61 = vadd.f32 %v3992_v17, %v3944_v52  ;;  %v4526_v23 = vpop.f32.mrf.mxu0  ;;  %v4575_v58 = vpop.f32.mrf.mxu1 }
 0x49f   :  { %v4527_v36 = vadd.f32 %v4526_v23, %v8217_v28  ;;  %v4625_v23 = vpop.permute.xlu0 %4624 }
 0x4a0   :  { %v4187_v2 = vmul.f32 %v4155_v55, %v3993_v61 }
 0x4a1   :  { %v4576_v47 = vadd.f32 %v4575_v58, %v4527_v36 }
 0x4a2   :  { %v8227_v5 = vadd.f32 %v4187_v2, %v8044_v45  ;;  %v4621_v45 = vpop.permute.xlu2 %4620 }
 0x4a3   :  { %v4428_v35 = vpop.f32.mrf.mxu2  ;;  %v4477_v21 = vpop.f32.mrf.mxu3  ;;  %v4680_v8 = vmul.f32 %v4617_v32, %v4576_v47 }
 0x4a4   :  { %v4429_v48 = vadd.f32 %v4428_v35, %v8224_v22 }
 0x4a5   :  { %v4712_v18 = vadd.f32 %v4680_v8, %v8051_v50 }
 0x4a6   :  { %v4478_v29 = vadd.f32 %v4477_v21, %v4429_v48  ;;  %v4528_v12 = vpop.f32.mrf.mxu0  ;;  %v4577_v53 = vpop.f32.mrf.mxu1 }
 0x4a7   :  { %v4529_v63 = vadd.f32 %v4528_v12, %v8217_v28 }
 0x4a8   :  { %v4679_v34 = vmul.f32 %v4617_v32, %v4478_v29 }
 0x4a9   :  { %v4578_v46 = vadd.f32 %v4577_v53, %v4529_v63  ;;  %v4629_v53 = vpop.permute.xlu1 %4628 }
 0x4aa   :  { %v4711_v13 = vadd.f32 %v4679_v34, %v8055_v15 }
 0x4ab   :  { %v4430_v57 = vpop.f32.mrf.mxu2  ;;  %v4479_v54 = vpop.f32.mrf.mxu3  ;;  %v4682_v56 = vmul.f32 %v4621_v45, %v4578_v46 }
 0x4ac   :  { %v4810_v7 = vpack.c.bf16 %v4712_v18, %v4711_v13  ;;  %v4431_v55 = vadd.f32 %v4430_v57, %v8224_v22 }
 0x4ad   :  { %v4714_v61 = vadd.f32 %v4682_v56, %v8066_v4 }
 0x4ae   :  { %4826 = vst [vmem:[#allocation7] sm:$0xff] %v4810_v7  ;;  %v4480_v1 = vadd.f32 %v4479_v54, %v4431_v55  ;;  %v4531_v27 = vpop.f32.mrf.mxu0  ;;  %v4580_v62 = vpop.f32.mrf.mxu1 }
 0x4af   :  { %v4532_v17 = vadd.f32 %v4531_v27, %v8217_v28 }
 0x4b0   :  { %v4681_v52 = vmul.f32 %v4621_v45, %v4480_v1  ;;  %v4633_v1 = vpop.permute.xlu2 %4632 }
 0x4b1   :  { %v4581_v15 = vadd.f32 %v4580_v62, %v4532_v17 }
 0x4b2   :  { %v4713_v50 = vadd.f32 %v4681_v52, %v8074_v9 }
 0x4b3   :  { %v4433_v58 = vpop.f32.mrf.mxu2  ;;  %v4482_v36 = vpop.f32.mrf.mxu3  ;;  %v4684_v32 = vmul.f32 %v4625_v23, %v4581_v15 }
 0x4b4   :  { %v4811_v2 = vpack.c.bf16 %v4714_v61, %v4713_v50  ;;  %v4434_v47 = vadd.f32 %v4433_v58, %v8224_v22 }
 0x4b5   :  { %v4716_v12 = vadd.f32 %v4684_v32, %v8082_v0 }
 0x4b6   :  { %4827 = vst [vmem:[#allocation7 + $0x8] sm:$0xff] %v4811_v2  ;;  %v4483_v35 = vadd.f32 %v4482_v36, %v4434_v47  ;;  %v4533_v21 = vpop.f32.mrf.mxu0  ;;  %v4582_v48 = vpop.f32.mrf.mxu1 }
 0x4b7   :  { %v4534_v8 = vadd.f32 %v4533_v21, %v8217_v28  ;;  %v4637_v47 = vpop.permute.xlu1 %4636 }
 0x4b8   :  { %v4683_v29 = vmul.f32 %v4625_v23, %v4483_v35 }
 0x4b9   :  { %v4583_v9 = vadd.f32 %v4582_v48, %v4534_v8 }
 0x4ba   :  { %v4715_v4 = vadd.f32 %v4683_v29, %v8086_v20 }
 0x4bb   :  { %v4435_v63 = vpop.f32.mrf.mxu2  ;;  %v4484_v34 = vpop.f32.mrf.mxu3  ;;  %v4686_v46 = vmul.f32 %v4629_v53, %v4583_v9 }
 0x4bc   :  { %v4812_v18 = vpack.c.bf16 %v4716_v12, %v4715_v4  ;;  %v4436_v13 = vadd.f32 %v4435_v63, %v8224_v22 }
 0x4bd   :  { %v4718_v56 = vadd.f32 %v4686_v46, %v8096_v16 }
 0x4be   :  { %4828 = vst [vmem:[#allocation7 + $0x10] sm:$0xff] %v4812_v18  ;;  %v4485_v45 = vadd.f32 %v4484_v34, %v4436_v13  ;;  %v4536_v57 = vpop.f32.mrf.mxu0  ;;  %v4585_v54 = vpop.f32.mrf.mxu1 }
 0x4bf   :  { %v4537_v7 = vadd.f32 %v4536_v57, %v8217_v28  ;;  %v4641_v34 = vpop.permute.xlu2 %4640 }
 0x4c0   :  { %v4685_v55 = vmul.f32 %v4629_v53, %v4485_v45 }
 0x4c1   :  { %v4586_v20 = vadd.f32 %v4585_v54, %v4537_v7 }
 0x4c2   :  { %v4717_v0 = vadd.f32 %v4685_v55, %v8104_v25 }
 0x4c3   :  { %v4438_v27 = vpop.f32.mrf.mxu2  ;;  %v4487_v62 = vpop.f32.mrf.mxu3  ;;  %v4688_v61 = vmul.f32 %v4633_v1, %v4586_v20 }
 0x4c4   :  { %v4813_v17 = vpack.c.bf16 %v4718_v56, %v4717_v0  ;;  %v4439_v52 = vadd.f32 %v4438_v27, %v8224_v22 }
 0x4c5   :  { %v4720_v2 = vadd.f32 %v4688_v61, %v8108_v40 }
 0x4c6   :  { %4829 = vst [vmem:[#allocation7 + $0x18] sm:$0xff] %v4813_v17  ;;  %v4488_v50 = vadd.f32 %v4487_v62, %v4439_v52  ;;  %v4538_v15 = vpop.f32.mrf.mxu0  ;;  %v4587_v23 = vpop.f32.mrf.mxu1 }
 0x4c7   :  { %v4539_v58 = vadd.f32 %v4538_v15, %v8217_v28 }
 0x4c8   :  { %v4687_v36 = vmul.f32 %v4633_v1, %v4488_v50  ;;  %v4645_v1 = vpop.permute.xlu0 %4644 }
 0x4c9   :  { %v4588_v25 = vadd.f32 %v4587_v23, %v4539_v58 }
 0x4ca   :  { %v4719_v16 = vadd.f32 %v4687_v36, %v8112_v41 }
 0x4cb   :  { %v4440_v32 = vpop.f32.mrf.mxu2  ;;  %v4489_v35 = vpop.f32.mrf.mxu3  ;;  %v4690_v8 = vmul.f32 %v4637_v47, %v4588_v25 }
 0x4cc   :  { %v4814_v21 = vpack.c.bf16 %v4720_v2, %v4719_v16  ;;  %v4441_v48 = vadd.f32 %v4440_v32, %v8224_v22  ;;  %v4649_v16 = vpop.permute.xlu1 %4648 }
 0x4cd   :  { %v4722_v63 = vadd.f32 %v4690_v8, %v8116_v39 }
 0x4ce   :  { %4830 = vst [vmem:[#allocation7 + $0x20] sm:$0xff] %v4814_v21  ;;  %v4490_v29 = vadd.f32 %v4489_v35, %v4441_v48  ;;  %v4541_v12 = vpop.f32.mrf.mxu0  ;;  %v4590_v4 = vpop.f32.mrf.mxu1 }
 0x4cf   :  { %v4542_v9 = vadd.f32 %v4541_v12, %v8217_v28 }
 0x4d0   :  { %v4689_v53 = vmul.f32 %v4637_v47, %v4490_v29 }
 0x4d1   :  { %v4591_v41 = vadd.f32 %v4590_v4, %v4542_v9 }
 0x4d2   :  { %v4721_v40 = vadd.f32 %v4689_v53, %v8124_v10 }
 0x4d3   :  { %v4443_v18 = vpop.f32.mrf.mxu2  ;;  %v4492_v13 = vpop.f32.mrf.mxu3  ;;  %v4692_v57 = vmul.f32 %v4641_v34, %v4591_v41 }
 0x4d4   :  { %v4815_v46 = vpack.c.bf16 %v4722_v63, %v4721_v40  ;;  %v4444_v45 = vadd.f32 %v4443_v18, %v8224_v22 }
 0x4d5   :  { %v4724_v20 = vadd.f32 %v4692_v57, %v8128_v19 }
 0x4d6   :  { %4831 = vst [vmem:[#allocation7 + $0x28] sm:$0xff] %v4815_v46  ;;  %v4493_v54 = vadd.f32 %v4492_v13, %v4444_v45  ;;  %v4543_v7 = vpop.f32.mrf.mxu0  ;;  %v4592_v55 = vpop.f32.mrf.mxu1 }
 0x4d7   :  { %v4544_v56 = vadd.f32 %v4543_v7, %v8217_v28 }
 0x4d8   :  { %v4691_v0 = vmul.f32 %v4641_v34, %v4493_v54  ;;  %v4653_v34 = vpop.permute.xlu2 %4652 }
 0x4d9   :  { %v4593_v10 = vadd.f32 %v4592_v55, %v4544_v56  ;;  %v4657_v55 = vpop.permute.xlu0 %4656 }
 0x4da   :  { %v4723_v39 = vadd.f32 %v4691_v0, %v8132_v49 }
 0x4db   :  { %v4445_v27 = vpop.f32.mrf.mxu2  ;;  %v4494_v62 = vpop.f32.mrf.mxu3  ;;  %v4694_v61 = vmul.f32 %v4645_v1, %v4593_v10 }
 0x4dc   :  { %v4816_v17 = vpack.c.bf16 %v4724_v20, %v4723_v39  ;;  %v4446_v52 = vadd.f32 %v4445_v27, %v8224_v22 }
 0x4dd   :  { %v4726_v2 = vadd.f32 %v4694_v61, %v8136_v14 }
 0x4de   :  { %4832 = vst [vmem:[#allocation7 + $0x30] sm:$0xff] %v4816_v17  ;;  %v4495_v50 = vadd.f32 %v4494_v62, %v4446_v52  ;;  %v4546_v15 = vpop.f32.mrf.mxu0  ;;  %v4595_v23 = vpop.f32.mrf.mxu1 }
 0x4df   :  { %v4547_v58 = vadd.f32 %v4546_v15, %v8217_v28 }
 0x4e0   :  { %v4693_v36 = vmul.f32 %v4645_v1, %v4495_v50 }
 0x4e1   :  { %v4596_v49 = vadd.f32 %v4595_v23, %v4547_v58 }
 0x4e2   :  { %v4725_v19 = vadd.f32 %v4693_v36, %v8144_v6  ;;  %v4661_v36 = vpop.permute.xlu1 %4660 }
 0x4e3   :  { %v4448_v25 = vpop.f32.mrf.mxu2  ;;  %v4497_v47 = vpop.f32.mrf.mxu3  ;;  %v4696_v21 = vmul.f32 %v4649_v16, %v4596_v49 }
 0x4e4   :  { %v4817_v32 = vpack.c.bf16 %v4726_v2, %v4725_v19  ;;  %v4449_v35 = vadd.f32 %v4448_v25, %v8224_v22 }
 0x4e5   :  { %v4728_v9 = vadd.f32 %v4696_v21, %v8148_v33 }
 0x4e6   :  { %4833 = vst [vmem:[#allocation7 + $0x38] sm:$0xff] %v4817_v32  ;;  %v4498_v48 = vadd.f32 %v4497_v47, %v4449_v35  ;;  %v4548_v8 = vpop.f32.mrf.mxu0  ;;  %v4597_v29 = vpop.f32.mrf.mxu1 }
 0x4e7   :  { %v4549_v12 = vadd.f32 %v4548_v8, %v8217_v28 }
 0x4e8   :  { %v4695_v4 = vmul.f32 %v4649_v16, %v4498_v48 }
 0x4e9   :  { %v4598_v6 = vadd.f32 %v4597_v29, %v4549_v12  ;;  %v4665_v29 = vpop.permute.xlu2 %4664 }
 0x4ea   :  { %v4727_v14 = vadd.f32 %v4695_v4, %v8152_v51 }
 0x4eb   :  { %v4450_v53 = vpop.f32.mrf.mxu2  ;;  %v4499_v63 = vpop.f32.mrf.mxu3  ;;  %v4698_v18 = vmul.f32 %v4653_v34, %v4598_v6 }
 0x4ec   :  { %v4818_v40 = vpack.c.bf16 %v4728_v9, %v4727_v14  ;;  %v4451_v41 = vadd.f32 %v4450_v53, %v8224_v22 }
 0x4ed   :  { %v4730_v7 = vadd.f32 %v4698_v18, %v8156_v38 }
 0x4ee   :  { %4834 = vst [vmem:[#allocation7 + $0x40] sm:$0xff] %v4818_v40  ;;  %v4500_v13 = vadd.f32 %v4499_v63, %v4451_v41  ;;  %v4551_v46 = vpop.f32.mrf.mxu0  ;;  %v4600_v45 = vpop.f32.mrf.mxu1 }
 0x4ef   :  { %v4552_v57 = vadd.f32 %v4551_v46, %v8217_v28 }
 0x4f0   :  { %v4697_v54 = vmul.f32 %v4653_v34, %v4500_v13  ;;  %v4669_v13 = vpop.permute.xlu0 %4668 }
 0x4f1   :  { %v4601_v51 = vadd.f32 %v4600_v45, %v4552_v57 }
 0x4f2   :  { %v4729_v33 = vadd.f32 %v4697_v54, %v8164_v31 }
 0x4f3   :  { %v4453_v56 = vpop.f32.mrf.mxu2  ;;  %v4502_v0 = vpop.f32.mrf.mxu3  ;;  %v4700_v10 = vmul.f32 %v4657_v55, %v4601_v51 }
 0x4f4   :  { %v4819_v20 = vpack.c.bf16 %v4730_v7, %v4729_v33  ;;  %v4454_v39 = vadd.f32 %v4453_v56, %v8224_v22 }
 0x4f5   :  { %v4732_v61 = vadd.f32 %v4700_v10, %v8168_v44 }
 0x4f6   :  { %4835 = vst [vmem:[#allocation7 + $0x48] sm:$0xff] %v4819_v20  ;;  %v4503_v1 = vadd.f32 %v4502_v0, %v4454_v39  ;;  %v4553_v27 = vpop.f32.mrf.mxu0  ;;  %v4602_v62 = vpop.f32.mrf.mxu1 }
 0x4f7   :  { %v4554_v17 = vadd.f32 %v4553_v27, %v8217_v28  ;;  %v4673_v39 = vpop.permute.xlu1 %4672 }
 0x4f8   :  { %v4699_v52 = vmul.f32 %v4657_v55, %v4503_v1 }
 0x4f9   :  { %v4603_v31 = vadd.f32 %v4602_v62, %v4554_v17 }
 0x4fa   :  { %v4731_v38 = vadd.f32 %v4699_v52, %v8172_v59 }
 0x4fb   :  { %v4455_v50 = vpop.f32.mrf.mxu2  ;;  %v4504_v15 = vpop.f32.mrf.mxu3  ;;  %v4702_v2 = vmul.f32 %v4661_v36, %v4603_v31 }
 0x4fc   :  { %v4820_v23 = vpack.c.bf16 %v4732_v61, %v4731_v38  ;;  %v4456_v58 = vadd.f32 %v4455_v50, %v8224_v22 }
 0x4fd   :  { %v4734_v32 = vadd.f32 %v4702_v2, %v8176_v11 }
 0x4fe   :  { %4836 = vst [vmem:[#allocation7 + $0x50] sm:$0xff] %v4820_v23  ;;  %v4505_v19 = vadd.f32 %v4504_v15, %v4456_v58  ;;  %v4556_v49 = vpop.f32.mrf.mxu0  ;;  %v4605_v16 = vpop.f32.mrf.mxu1 }
 0x4ff   :  { %v4557_v25 = vadd.f32 %v4556_v49, %v8217_v28  ;;  %v4677_v15 = vpop.permute.xlu2 %4676 }
 0x500   :  { %v4701_v47 = vmul.f32 %v4661_v36, %v4505_v19 }
 0x501   :  { %v4606_v59 = vadd.f32 %v4605_v16, %v4557_v25 }
 0x502   :  { %v4733_v44 = vadd.f32 %v4701_v47, %v8184_v3 }
 0x503   :  { %v4458_v35 = vpop.f32.mrf.mxu2  ;;  %v4507_v21 = vpop.f32.mrf.mxu3  ;;  %v4704_v12 = vmul.f32 %v4665_v29, %v4606_v59 }
 0x504   :  { %v4821_v48 = vpack.c.bf16 %v4734_v32, %v4733_v44  ;;  %v4459_v8 = vadd.f32 %v4458_v35, %v8224_v22 }
 0x505   :  { %v4736_v63 = vadd.f32 %v4704_v12, %v8188_v37 }
 0x506   :  { %4837 = vst [vmem:[#allocation7 + $0x58] sm:$0xff] %v4821_v48  ;;  %v4508_v4 = vadd.f32 %v4507_v21, %v4459_v8  ;;  %v4558_v9 = vpop.f32.mrf.mxu0  ;;  %v4607_v14 = vpop.f32.mrf.mxu1 }
 0x507   :  { %v4559_v6 = vadd.f32 %v4558_v9, %v8217_v28 }
 0x508   :  { %v4703_v53 = vmul.f32 %v4665_v29, %v4508_v4 }
 0x509   :  { %v4608_v3 = vadd.f32 %v4607_v14, %v4559_v6 }
 0x50a   :  { %v4735_v11 = vadd.f32 %v4703_v53, %v8192_v24 }
 0x50b   :  { %v4460_v40 = vpop.f32.mrf.mxu2  ;;  %v4509_v41 = vpop.f32.mrf.mxu3  ;;  %v4706_v46 = vmul.f32 %v4669_v13, %v4608_v3 }
 0x50c   :  { %v4822_v34 = vpack.c.bf16 %v4736_v63, %v4735_v11  ;;  %v4461_v18 = vadd.f32 %v4460_v40, %v8224_v22 }
 0x50d   :  { %v4738_v51 = vadd.f32 %v4706_v46, %v8196_v30 }
 0x50e   :  { %4838 = vst [vmem:[#allocation7 + $0x60] sm:$0xff] %v4822_v34  ;;  %v4510_v45 = vadd.f32 %v4509_v41, %v4461_v18  ;;  %v4561_v57 = vpop.f32.mrf.mxu0  ;;  %v4610_v7 = vpop.f32.mrf.mxu1 }
 0x50f   :  { %v4562_v54 = vadd.f32 %v4561_v57, %v8217_v28 }
 0x510   :  { %v4705_v33 = vmul.f32 %v4669_v13, %v4510_v45 }
 0x511   :  { %v4611_v24 = vadd.f32 %v4610_v7, %v4562_v54 }
 0x512   :  { %v4737_v37 = vadd.f32 %v4705_v33, %v8204_v42 }
 0x513   :  { %v4463_v55 = vpop.f32.mrf.mxu2  ;;  %v4512_v56 = vpop.f32.mrf.mxu3  ;;  %v4708_v10 = vmul.f32 %v4673_v39, %v4611_v24 }
 0x514   :  { %v4823_v0 = vpack.c.bf16 %v4738_v51, %v4737_v37  ;;  %v4464_v20 = vadd.f32 %v4463_v55, %v8224_v22 }
 0x515   :  { %v4740_v61 = vadd.f32 %v4708_v10, %v8208_v43 }
 0x516   :  { %4839 = vst [vmem:[#allocation7 + $0x68] sm:$0xff] %v4823_v0  ;;  %v4513_v1 = vadd.f32 %v4512_v56, %v4464_v20  ;;  %v4563_v27 = vpop.f32.mrf.mxu0  ;;  %v4612_v52 = vpop.f32.mrf.mxu1 }
 0x517   :  { %v4564_v62 = vadd.f32 %v4563_v27, %v8217_v28 }
 0x518   :  { %v4707_v17 = vmul.f32 %v4673_v39, %v4513_v1 }
 0x519   :  { %v4613_v42 = vadd.f32 %v4612_v52, %v4564_v62 }
 0x51a   :  { %v4739_v30 = vadd.f32 %v4707_v17, %v8215_v26 }
 0x51b   :  { %v4465_v38 = vpop.f32.mrf.mxu2  ;;  %v4514_v23 = vpop.f32.mrf.mxu3  ;;  %v4710_v58 = vmul.f32 %v4677_v15, %v4613_v42 }
 0x51c   :  { %v4824_v31 = vpack.c.bf16 %v4740_v61, %v4739_v30  ;;  %v4466_v50 = vadd.f32 %v4465_v38, %v8224_v22 }
 0x51d   :  { %v4742_v43 = vadd.f32 %v4710_v58, %v8221_v60 }
 0x51e   :  { %4840 = vst [vmem:[#allocation7 + $0x70] sm:$0xff] %v4824_v31  ;;  %v4515_v36 = vadd.f32 %v4514_v23, %v4466_v50 }
 0x520   :  { %v4709_v2 = vmul.f32 %v4677_v15, %v4515_v36 }
 0x522   :  { %v4741_v26 = vadd.f32 %v4709_v2, %v8227_v5 }
 0x524   :  { %v4825_v28 = vpack.c.bf16 %v4742_v43, %v4741_v26 }
 0x526   :  { %4841 = vst [vmem:[#allocation7 + $0x78] sm:$0xff] %v4825_v28 }
 0x527   :  { %4854 = dma.vmem_to_hbm [thread:$0]  %s4847_s15, 2048, %s4849_s18, [#allocation6], %s6405_s19, %s6405_s19, %s6406_s20  }
 0x528   :  { %6391 = dma.done.wait [#allocation6], 2048  }
 0x529   :  { %6392 = vsyncadd [#allocation6], 4294965248 }
 0x52a   :  { %4859 = vsyncpa [#allocation5], 1 }
 0x52b   :  { %4860 = vsyncpa [#allocation6], 1 }

</bundles_post_ra>
